<compile_context>
chip_gen: v7x
topology: tpu7x:2x2x1
jax: 0.10.0
libtpu: 0.0.40
codegen_flags: <defaults>
</compile_context>

<pallas_src>
import numpy as np

import jax
import jax.numpy as jnp
from jax.experimental import pallas as pl
from jax.experimental.pallas import tpu as pltpu

H, W = 10, 20          # fixed spatial size implied by x.view(B*A, 1, 10, 20)
KH, KW = 3, 3
C1, C2 = 32, 64        # conv1 / conv2 output channels
BN_EPS = 1e-5

# Flat padded-row layout: pad H by 1 top/bottom, pad W by 1 left and 3 right
# (1 conv pad + 2 alignment columns so the padded width is a multiple of 8).
HP, WP = H + 2, W + 4                     # 12, 24
NROWS = HP * WP                           # 288 flat padded rows per atom
RSTART = WP + 1                           # 25: first valid output row (i_p=1, j_p=1)
RLEN = (H - 1) * WP + W                   # 236: contiguous range of valid rows
PH, PW = H // 2, W // 2                   # pooled spatial 5 x 10
POOL_PIX = PH * PW                        # 50 pooled pixels per atom
PLEN = 2 * WP * (PH - 1) + 2 * (PW - 1) + 2   # 212 rows of the vertical-max buffer
TAP_OFFS = tuple(dy * WP + dx for dy in (-1, 0, 1) for dx in (-1, 0, 1))

assert RLEN == PLEN + WP
assert min(RSTART + o for o in TAP_OFFS) == 0
assert max(RSTART + o for o in TAP_OFFS) + RLEN <= NROWS


def _pool_select_mats():
    """0/1 matrices that gather the 50 pooled rows out of the 212-row max buffer."""
    s0 = np.zeros((POOL_PIX, PLEN), np.float32)
    s1 = np.zeros((POOL_PIX, PLEN), np.float32)
    for q in range(POOL_PIX):
        pi, pj = divmod(q, PW)
        rr = 2 * WP * pi + 2 * pj
        s0[q, rr] = 1.0        # (di maxed already, dj = 0)
        s1[q, rr + 1] = 1.0    # (dj = 1)
    return s0, s1


def _col_mask():
    """1.0 on real columns j_p in [1, W], 0.0 on the padding/alignment columns."""
    m = np.zeros((RLEN, 1), np.float32)
    for rr in range(RLEN):
        jp = (rr + RSTART) % WP
        if 1 <= jp <= W:
            m[rr, 0] = 1.0
    return m


# --------------------------------------------------------------------------
# Kernel 1: conv1 -> BN1 -> ReLU -> conv2 -> BN2 -> ReLU -> 2x2 maxpool.
# grid = (batch, atom); one atom image per grid step, everything in VMEM.
# --------------------------------------------------------------------------
def _conv_pool_kernel(x_ref, wc1_ref, s1_ref, f1_ref, wc2_ref, s2_ref, f2_ref,
                      sel0_ref, sel1_ref, cmask_ref, o_ref, y1pad_ref):
    # Zero only the padding-ring rows of the scratch; the interior [RSTART,
    # RSTART+RLEN) is fully overwritten below.  Done every step (cheap: ~7
    # vreg stores) so the kernel is safe under megacore grid sharding.
    tail = NROWS - RSTART - RLEN
    y1pad_ref[pl.ds(0, RSTART), :] = jnp.zeros((RSTART, C1), jnp.float32)
    y1pad_ref[pl.ds(RSTART + RLEN, tail), :] = jnp.zeros((tail, C1), jnp.float32)

    # ---- conv1 (1 -> 32): nine shifted broadcast-FMA accumulations ---------
    xcol = x_ref[0, 0]                                      # (NROWS, 1)
    acc1 = jnp.zeros((RLEN, C1), jnp.float32)
    for k, off in enumerate(TAP_OFFS):
        s = RSTART + off
        acc1 = acc1 + xcol[s:s + RLEN, :] * wc1_ref[pl.ds(k, 1), :]
    # fused BN1 + ReLU, then zero the wrap-around/alignment columns so they
    # act as conv2's zero padding ring.
    y1 = jnp.maximum(acc1 * s1_ref[...] + f1_ref[...], 0.0) * cmask_ref[...]
    y1pad_ref[pl.ds(RSTART, RLEN), :] = y1

    # ---- conv2 (32 -> 64): nine accumulated matmuls over shifted slices ----
    acc2 = jnp.zeros((RLEN, C2), jnp.float32)
    for k, off in enumerate(TAP_OFFS):
        a_k = y1pad_ref[pl.ds(RSTART + off, RLEN), :]        # (RLEN, C1)
        acc2 = acc2 + jnp.dot(a_k, wc2_ref[k],
                              preferred_element_type=jnp.float32)
    y2 = jnp.maximum(acc2 * s2_ref[...] + f2_ref[...], 0.0)  # (RLEN, C2)

    # ---- 2x2 / stride-2 maxpool ---------------------------------------------
    # Vertical pair: row-shifted max (both slice offsets are 8-aligned).
    m1 = jnp.maximum(y2[:PLEN, :], y2[WP:WP + PLEN, :])      # (PLEN, C2)
    # Horizontal pair + strided row gather via two 0/1 selection matmuls.
    pooled = jnp.maximum(
        jnp.dot(sel0_ref[...], m1, preferred_element_type=jnp.float32),
        jnp.dot(sel1_ref[...], m1, preferred_element_type=jnp.float32))
    # Row q = pi*10 + pj with channels on lanes: the row order fc1's
    # pre-permuted weight expects -> no transpose anywhere downstream.
    o_ref[0, 0] = pooled                                     # (POOL_PIX, C2)


def conv_pool_fused(x, wc1, s1, f1, wc2, s2, f2, sel0, sel1, cmask):
    b, a, h, w = x.shape
    assert (h, w) == (H, W)
    # Tiny wrapper-side layout plumbing: zero-pad each 10x20 image to 12x24
    # and flatten the padded rows (free metadata reshape in HBM).
    xp = jnp.pad(x, ((0, 0), (0, 0), (1, 1), (1, WP - W - 1)))
    xp = xp.reshape(b, a, NROWS, 1)
    return pl.pallas_call(
        _conv_pool_kernel,
        out_shape=jax.ShapeDtypeStruct((b, a, POOL_PIX, C2), jnp.float32),
        grid=(b, a),
        in_specs=[
            pl.BlockSpec((1, 1, NROWS, 1), lambda i, j: (i, j, 0, 0)),   # x column
            pl.BlockSpec((KH * KW, C1), lambda i, j: (0, 0)),            # wc1 (9,32)
            pl.BlockSpec((1, C1), lambda i, j: (0, 0)),                  # s1
            pl.BlockSpec((1, C1), lambda i, j: (0, 0)),                  # f1
            pl.BlockSpec((KH * KW, C1, C2), lambda i, j: (0, 0, 0)),     # wc2 (9,32,64)
            pl.BlockSpec((1, C2), lambda i, j: (0, 0)),                  # s2
            pl.BlockSpec((1, C2), lambda i, j: (0, 0)),                  # f2
            pl.BlockSpec((POOL_PIX, PLEN), lambda i, j: (0, 0)),         # sel0
            pl.BlockSpec((POOL_PIX, PLEN), lambda i, j: (0, 0)),         # sel1
            pl.BlockSpec((RLEN, 1), lambda i, j: (0, 0)),                # column mask
        ],
        out_specs=pl.BlockSpec((1, 1, POOL_PIX, C2), lambda i, j: (i, j, 0, 0)),
        scratch_shapes=[pltpu.VMEM((NROWS, C1), jnp.float32)],           # padded act1
        compiler_params=pltpu.CompilerParams(
            # Both axes independent -> eligible for megacore sharding.  On v7x
            # pltpu.CORE_PARALLEL on the batch axis is the stronger knob.
            dimension_semantics=("parallel", "parallel"),
            vmem_limit_bytes=32 * 1024 * 1024),
    )(xp, wc1, s1, f1, wc2, s2, f2, sel0, sel1, cmask)


# --------------------------------------------------------------------------
# Kernel 2: FC head, K-tiled over fc1's reduction dim (one 3200-row chunk per
# atom, bf16 weights, f32 accumulator).  relu(x@W1+b1) -> relu(@W2+b2) -> @W3+b3
# --------------------------------------------------------------------------
def _mlp_kernel(x_ref, w1_ref, b1_ref, w2_ref, b2_ref, w3_ref, b3_ref,
                o_ref, h1_ref):
    k = pl.program_id(0)

    @pl.when(k == 0)
    def _():
        h1_ref[...] = jnp.zeros_like(h1_ref)

    # bf16 x bf16 MXU matmul, f32 accumulation.
    h1_ref[...] += jnp.dot(x_ref[...].astype(jnp.bfloat16), w1_ref[...],
                           preferred_element_type=jnp.float32)

    @pl.when(k == pl.num_programs(0) - 1)
    def _():
        h1 = jnp.maximum(h1_ref[...] + b1_ref[...], 0.0)
        # TODO(synk): nn.Dropout(p=0.5) is identity in eval mode; training-mode
        # masking not implemented.
        h2 = jnp.maximum(
            jnp.dot(h1, w2_ref[...], preferred_element_type=jnp.float32)
            + b2_ref[...], 0.0)
        o_ref[...] = (jnp.dot(h2, w3_ref[...], preferred_element_type=jnp.float32)
                      + b3_ref[...])


def mlp_head(xf, w1, b1, w2, b2, w3, b3, *, chunk=POOL_PIX * C2):
    bsz, fin = xf.shape
    assert fin % chunk == 0
    nsteps = fin // chunk
    return pl.pallas_call(
        _mlp_kernel,
        out_shape=jax.ShapeDtypeStruct((bsz, 1), jnp.float32),
        grid=(nsteps,),
        in_specs=[
            pl.BlockSpec((bsz, chunk), lambda k: (0, k)),     # activation chunk
            pl.BlockSpec((chunk, 128), lambda k: (k, 0)),     # bf16 fc1 chunk
            pl.BlockSpec((1, 128), lambda k: (0, 0)),
            pl.BlockSpec((128, 64), lambda k: (0, 0)),
            pl.BlockSpec((1, 64), lambda k: (0, 0)),
            pl.BlockSpec((64, 1), lambda k: (0, 0)),
            pl.BlockSpec((1, 1), lambda k: (0, 0)),
        ],
        out_specs=pl.BlockSpec((bsz, 1), lambda k: (0, 0)),
        scratch_shapes=[pltpu.VMEM((bsz, 128), jnp.float32)],  # fc1 accumulator
        compiler_params=pltpu.CompilerParams(
            dimension_semantics=("arbitrary",),
            vmem_limit_bytes=32 * 1024 * 1024),
    )(xf, w1, b1, w2, b2, w3, b3)


# --------------------------------------------------------------------------
# Full forward: conv/pool kernel -> free row-major flatten -> K-tiled MLP.
# --------------------------------------------------------------------------
def cov2d_forward(x, p):
    b = x.shape[0]
    pooled = conv_pool_fused(x, p["wc1"], p["s1"], p["f1"],
                             p["wc2"], p["s2"], p["f2"],
                             p["sel0"], p["sel1"], p["cmask"])  # (B, A, 50, 64)
    flat = pooled.reshape(b, -1)                                # contiguous, free
    return mlp_head(flat, p["w1k"], p["b1"], p["w2"], p["b2"], p["w3"], p["b3"])


# --------------------------------------------------------------------------
# Deterministic synthetic parameters (PyTorch-like fan-in uniform init).
# BatchNorm in inference mode (running_mean=0, running_var=1) folded with the
# conv bias into per-channel scale/shift.  fc1's weight rows are pre-permuted
# once (PyTorch (a,c,i,j) order -> kernel (a,i,j,c) order) and stored bf16.
# --------------------------------------------------------------------------
def init_params(key, num_atoms):
    ks = jax.random.split(key, 14)

    def uniform(k, shape, fan_in):
        bound = 1.0 / np.sqrt(fan_in)
        return jax.random.uniform(k, shape, jnp.float32, -bound, bound)

    p = {}
    # conv1: 1 -> 32
    wc1 = uniform(ks[0], (KH, KW, 1, C1), KH * KW * 1)
    cb1 = uniform(ks[1], (C1,), KH * KW * 1)
    g1 = 1.0 + 0.1 * jax.random.normal(ks[2], (C1,), jnp.float32)
    be1 = 0.1 * jax.random.normal(ks[3], (C1,), jnp.float32)
    rm1, rv1 = jnp.zeros((C1,), jnp.float32), jnp.ones((C1,), jnp.float32)
    s1 = g1 / jnp.sqrt(rv1 + BN_EPS)
    p["wc1"] = wc1.reshape(KH * KW, C1)                       # per-tap rows
    p["s1"], p["f1"] = s1[None, :], ((cb1 - rm1) * s1 + be1)[None, :]
    # conv2: 32 -> 64
    wc2 = uniform(ks[4], (KH, KW, C1, C2), KH * KW * C1)
    cb2 = uniform(ks[5], (C2,), KH * KW * C1)
    g2 = 1.0 + 0.1 * jax.random.normal(ks[6], (C2,), jnp.float32)
    be2 = 0.1 * jax.random.normal(ks[7], (C2,), jnp.float32)
    rm2, rv2 = jnp.zeros((C2,), jnp.float32), jnp.ones((C2,), jnp.float32)
    s2 = g2 / jnp.sqrt(rv2 + BN_EPS)
    p["wc2"] = wc2.reshape(KH * KW, C1, C2)                   # per-tap (32,64)
    p["s2"], p["f2"] = s2[None, :], ((cb2 - rm2) * s2 + be2)[None, :]
    # fc stack
    fin = C2 * PH * PW * num_atoms
    w1 = uniform(ks[8], (fin, 128), fin)                      # PyTorch (a,c,i,j) rows
    p["b1"] = uniform(ks[9], (1, 128), fin)
    p["w2"], p["b2"] = uniform(ks[10], (128, 64), 128), uniform(ks[11], (1, 64), 128)
    p["w3"], p["b3"] = uniform(ks[12], (64, 1), 64), uniform(ks[13], (1, 1), 64)
    # pre-permuted fc1 weight: row ((a*5+i)*10+j)*64 + c  <-  ((a*64+c)*5+i)*10+j
    p["w1k"] = (w1.reshape(num_atoms, C2, PH, PW, 128)
                  .transpose(0, 2, 3, 1, 4)
                  .reshape(fin, 128)).astype(jnp.bfloat16)
    # structural constants for the conv/pool kernel
    sel0, sel1 = _pool_select_mats()
    p["sel0"], p["sel1"] = jnp.asarray(sel0), jnp.asarray(sel1)
    p["cmask"] = jnp.asarray(_col_mask())
    # raw params for the pure-JAX reference
    p["_ref"] = dict(wc1=wc1, cb1=cb1, g1=g1, be1=be1, rm1=rm1, rv1=rv1,
                     wc2=wc2, cb2=cb2, g2=g2, be2=be2, rm2=rm2, rv2=rv2,
                     w1=w1)
    return p


# Pure-JAX reference (no Pallas) for correctness checking.
def reference_forward(x, p):
    r = p["_ref"]
    b, a, h, w = x.shape
    xr = x.reshape(b * a, 1, h, w)

    def conv(inp, wt, cb):
        out = jax.lax.conv_general_dilated(
            inp, wt, window_strides=(1, 1), padding=((1, 1), (1, 1)),
            dimension_numbers=("NCHW", "HWIO", "NCHW"))
        return out + cb[None, :, None, None]

    def bn(y, g, be, rm, rv):
        return (g[None, :, None, None] * (y - rm[None, :, None, None])
                / jnp.sqrt(rv[None, :, None, None] + BN_EPS) + be[None, :, None, None])

    y = jax.nn.relu(bn(conv(xr, r["wc1"], r["cb1"]), r["g1"], r["be1"], r["rm1"], r["rv1"]))
    y = jax.nn.relu(bn(conv(y, r["wc2"], r["cb2"]), r["g2"], r["be2"], r["rm2"], r["rv2"]))
    y = y.reshape(b * a, C2, h // 2, 2, w // 2, 2).max(axis=(3, 5))   # 2x2 maxpool
    flat = y.reshape(b, -1)
    h1 = jax.nn.relu(flat @ r["w1"] + p["b1"])
    h2 = jax.nn.relu(h1 @ p["w2"] + p["b2"])
    return h2 @ p["w3"] + p["b3"]


if __name__ == "__main__":
    batch, num_atoms = 2, 4
    key = jax.random.PRNGKey(0)
    kx, kp = jax.random.split(key)
    x = jax.random.normal(kx, (batch, num_atoms, H, W), jnp.float32)
    params = init_params(kp, num_atoms)

    out = jax.jit(cov2d_forward)(x, params)
    out = jax.block_until_ready(out)
    assert out.shape == (batch, 1) and out.dtype == jnp.float32

    # Tolerance kept at 1e-2 because fc1's weights are intentionally stored in
    # bf16 in the kernel (f32 in the reference); everything else is f32.
    ref = reference_forward(x, params)
    np.testing.assert_allclose(np.asarray(out), np.asarray(ref), rtol=1e-2, atol=1e-2)
    print("KERNEL_OK")
</pallas_src>

<mosaic_0001>
module attributes {stable_mosaic.version = 11 : i64} {
  func.func @_mlp_kernel(%arg0: i32, %arg1: memref<2x3200xf32, #tpu.memory_space<vmem>>, %arg2: memref<3200x128xbf16, #tpu.memory_space<vmem>>, %arg3: memref<1x128xf32, #tpu.memory_space<vmem>>, %arg4: memref<128x64xf32, #tpu.memory_space<vmem>>, %arg5: memref<1x64xf32, #tpu.memory_space<vmem>>, %arg6: memref<64x1xf32, #tpu.memory_space<vmem>>, %arg7: memref<1x1xf32, #tpu.memory_space<vmem>>, %arg8: memref<2x1xf32, #tpu.memory_space<vmem>>, %arg9: memref<2x128xf32, #tpu.memory_space<vmem>>) attributes {dimension_semantics = [#tpu.dimension_semantics<arbitrary>], iteration_bounds = array<i64: 4>, scalar_prefetch = 0 : i64, scratch_operands = 1 : i64, tpu.core_type = #tpu.core_type<tc>, window_params = [{transform_indices = @transform_0, window_bounds = array<i64: 2, 3200>}, {transform_indices = @transform_1, window_bounds = array<i64: 3200, 128>}, {pipeline_mode = #tpu.pipeline_mode<synchronous>, transform_indices = @transform_2, window_bounds = array<i64: 1, 128>}, {pipeline_mode = #tpu.pipeline_mode<synchronous>, transform_indices = @transform_3, window_bounds = array<i64: 128, 64>}, {pipeline_mode = #tpu.pipeline_mode<synchronous>, transform_indices = @transform_4, window_bounds = array<i64: 1, 64>}, {pipeline_mode = #tpu.pipeline_mode<synchronous>, transform_indices = @transform_5, window_bounds = array<i64: 64, 1>}, {pipeline_mode = #tpu.pipeline_mode<synchronous>, transform_indices = @transform_6, window_bounds = array<i64: 1, 1>}, {pipeline_mode = #tpu.pipeline_mode<synchronous>, transform_indices = @transform_7, window_bounds = array<i64: 2, 1>}]} {
    %c0_i32 = arith.constant 0 : i32
    %0 = arith.cmpi eq, %arg0, %c0_i32 : i32
    %1 = arith.extui %0 : i1 to i32
    %c0_i32_0 = arith.constant 0 : i32
    %2 = arith.cmpi ne, %1, %c0_i32_0 : i32
    scf.if %2 {
      %cst_9 = arith.constant 0.000000e+00 : f32
      %13 = vector.broadcast %cst_9 : f32 to vector<2x128xf32>
      %c0_10 = arith.constant 0 : index
      %c0_11 = arith.constant 0 : index
      %14 = vector.load %arg9[%c0_10, %c0_11] : memref<2x128xf32, #tpu.memory_space<vmem>>, vector<2x128xf32>
      tpu.vector_store %arg9[%c0_10, %c0_11], %13 {strides = array<i32>} : memref<2x128xf32, #tpu.memory_space<vmem>>, vector<2x128xf32>,
    } else {
    }
    %c0 = arith.constant 0 : index
    %c0_1 = arith.constant 0 : index
    %3 = vector.load %arg9[%c0, %c0_1] : memref<2x128xf32, #tpu.memory_space<vmem>>, vector<2x128xf32>
    %c0_2 = arith.constant 0 : index
    %c0_3 = arith.constant 0 : index
    %4 = vector.load %arg1[%c0_2, %c0_3] : memref<2x3200xf32, #tpu.memory_space<vmem>>, vector<2x3200xf32>
    %5 = arith.truncf %4 : vector<2x3200xf32> to vector<2x3200xbf16>
    %c0_4 = arith.constant 0 : index
    %c0_5 = arith.constant 0 : index
    %6 = vector.load %arg2[%c0_4, %c0_5] : memref<3200x128xbf16, #tpu.memory_space<vmem>>, vector<3200x128xbf16>
    %cst = arith.constant dense<0.000000e+00> : vector<2x128xf32>
    %7 = tpu.matmul %5, %6, %cst {dimension_numbers = #tpu.dot_dimension_numbers<[1], [0], [0], [1], [0, 0, 1, 1], [], []>} : vector<2x3200xbf16>, vector<3200x128xbf16>, vector<2x128xf32> -> vector<2x128xf32>
    %8 = arith.addf %3, %7 : vector<2x128xf32>
    %c0_6 = arith.constant 0 : index
    %c0_7 = arith.constant 0 : index
    %9 = vector.load %arg9[%c0_6, %c0_7] : memref<2x128xf32, #tpu.memory_space<vmem>>, vector<2x128xf32>
    tpu.vector_store %arg9[%c0_6, %c0_7], %8 {strides = array<i32>} : memref<2x128xf32, #tpu.memory_space<vmem>>, vector<2x128xf32>,
    %c3_i32 = arith.constant 3 : i32
    %10 = arith.cmpi eq, %arg0, %c3_i32 : i32
    %11 = arith.extui %10 : i1 to i32
    %c0_i32_8 = arith.constant 0 : i32
    %12 = arith.cmpi ne, %11, %c0_i32_8 : i32
    scf.if %12 {
      %c0_9 = arith.constant 0 : index
      %c0_10 = arith.constant 0 : index
      %13 = vector.load %arg9[%c0_9, %c0_10] : memref<2x128xf32, #tpu.memory_space<vmem>>, vector<2x128xf32>
      %c0_11 = arith.constant 0 : index
      %c0_12 = arith.constant 0 : index
      %14 = vector.load %arg3[%c0_11, %c0_12] : memref<1x128xf32, #tpu.memory_space<vmem>>, vector<1x128xf32>
      %15 = vector.broadcast %14 : vector<1x128xf32> to vector<2x128xf32>
      %16 = arith.addf %13, %15 : vector<2x128xf32>
      %cst_13 = arith.constant 0.000000e+00 : f32
      %17 = vector.broadcast %cst_13 : f32 to vector<2x128xf32>
      %18 = arith.maximumf %16, %17 : vector<2x128xf32>
      %c0_14 = arith.constant 0 : index
      %c0_15 = arith.constant 0 : index
      %19 = vector.load %arg4[%c0_14, %c0_15] : memref<128x64xf32, #tpu.memory_space<vmem>>, vector<128x64xf32>
      %cst_16 = arith.constant dense<0.000000e+00> : vector<2x64xf32>
      %20 = tpu.matmul %18, %19, %cst_16 {dimension_numbers = #tpu.dot_dimension_numbers<[1], [0], [0], [1], [0, 0, 1, 1], [], []>} : vector<2x128xf32>, vector<128x64xf32>, vector<2x64xf32> -> vector<2x64xf32>
      %c0_17 = arith.constant 0 : index
      %c0_18 = arith.constant 0 : index
      %21 = vector.load %arg5[%c0_17, %c0_18] : memref<1x64xf32, #tpu.memory_space<vmem>>, vector<1x64xf32>
      %22 = vector.broadcast %21 : vector<1x64xf32> to vector<2x64xf32>
      %23 = arith.addf %20, %22 : vector<2x64xf32>
      %cst_19 = arith.constant 0.000000e+00 : f32
      %24 = vector.broadcast %cst_19 : f32 to vector<2x64xf32>
      %25 = arith.maximumf %23, %24 : vector<2x64xf32>
      %c0_20 = arith.constant 0 : index
      %c0_21 = arith.constant 0 : index
      %26 = vector.load %arg6[%c0_20, %c0_21] : memref<64x1xf32, #tpu.memory_space<vmem>>, vector<64x1xf32>
      %cst_22 = arith.constant dense<0.000000e+00> : vector<2x1xf32>
      %27 = tpu.matmul %25, %26, %cst_22 {dimension_numbers = #tpu.dot_dimension_numbers<[1], [0], [0], [1], [0, 0, 1, 1], [], []>} : vector<2x64xf32>, vector<64x1xf32>, vector<2x1xf32> -> vector<2x1xf32>
      %c0_23 = arith.constant 0 : index
      %c0_24 = arith.constant 0 : index
      %28 = vector.load %arg7[%c0_23, %c0_24] : memref<1x1xf32, #tpu.memory_space<vmem>>, vector<1x1xf32>
      %29 = vector.broadcast %28 : vector<1x1xf32> to vector<2x1xf32>
      %30 = arith.addf %27, %29 : vector<2x1xf32>
      %c0_25 = arith.constant 0 : index
      %c0_26 = arith.constant 0 : index
      %31 = vector.load %arg8[%c0_25, %c0_26] : memref<2x1xf32, #tpu.memory_space<vmem>>, vector<2x1xf32>
      tpu.vector_store %arg8[%c0_25, %c0_26], %30 {strides = array<i32>} : memref<2x1xf32, #tpu.memory_space<vmem>>, vector<2x1xf32>,
    } else {
    }
    return
  }
  func.func @transform_0(%arg0: i32) -> (i32, i32) {
    %c0_i32 = arith.constant 0 : i32
    %c0_i32_0 = arith.constant 0 : i32
    return %c0_i32, %arg0 : i32, i32
  }
  func.func @transform_1(%arg0: i32) -> (i32, i32) {
    %c0_i32 = arith.constant 0 : i32
    %c0_i32_0 = arith.constant 0 : i32
    return %arg0, %c0_i32 : i32, i32
  }
  func.func @transform_2(%arg0: i32) -> (i32, i32) {
    %c0_i32 = arith.constant 0 : i32
    %c0_i32_0 = arith.constant 0 : i32
    %c0_i32_1 = arith.constant 0 : i32
    return %c0_i32, %c0_i32_0 : i32, i32
  }
  func.func @transform_3(%arg0: i32) -> (i32, i32) {
    %c0_i32 = arith.constant 0 : i32
    %c0_i32_0 = arith.constant 0 : i32
    %c0_i32_1 = arith.constant 0 : i32
    return %c0_i32, %c0_i32_0 : i32, i32
  }
  func.func @transform_4(%arg0: i32) -> (i32, i32) {
    %c0_i32 = arith.constant 0 : i32
    %c0_i32_0 = arith.constant 0 : i32
    %c0_i32_1 = arith.constant 0 : i32
    return %c0_i32, %c0_i32_0 : i32, i32
  }
  func.func @transform_5(%arg0: i32) -> (i32, i32) {
    %c0_i32 = arith.constant 0 : i32
    %c0_i32_0 = arith.constant 0 : i32
    %c0_i32_1 = arith.constant 0 : i32
    return %c0_i32, %c0_i32_0 : i32, i32
  }
  func.func @transform_6(%arg0: i32) -> (i32, i32) {
    %c0_i32 = arith.constant 0 : i32
    %c0_i32_0 = arith.constant 0 : i32
    %c0_i32_1 = arith.constant 0 : i32
    return %c0_i32, %c0_i32_0 : i32, i32
  }
  func.func @transform_7(%arg0: i32) -> (i32, i32) {
    %c0_i32 = arith.constant 0 : i32
    %c0_i32_0 = arith.constant 0 : i32
    %c0_i32_1 = arith.constant 0 : i32
    return %c0_i32, %c0_i32_0 : i32, i32
  }
}

module attributes {stable_mosaic.version = 11 : i64} {
  func.func @_conv_pool_kernel(%arg0: i32, %arg1: i32, %arg2: memref<1x1x288x1xf32, #tpu.memory_space<vmem>>, %arg3: memref<9x32xf32, #tpu.memory_space<vmem>>, %arg4: memref<1x32xf32, #tpu.memory_space<vmem>>, %arg5: memref<1x32xf32, #tpu.memory_space<vmem>>, %arg6: memref<9x32x64xf32, #tpu.memory_space<vmem>>, %arg7: memref<1x64xf32, #tpu.memory_space<vmem>>, %arg8: memref<1x64xf32, #tpu.memory_space<vmem>>, %arg9: memref<50x212xf32, #tpu.memory_space<vmem>>, %arg10: memref<50x212xf32, #tpu.memory_space<vmem>>, %arg11: memref<236x1xf32, #tpu.memory_space<vmem>>, %arg12: memref<1x1x50x64xf32, #tpu.memory_space<vmem>>, %arg13: memref<288x32xf32, #tpu.memory_space<vmem>>) attributes {dimension_semantics = [#tpu.dimension_semantics<parallel>, #tpu.dimension_semantics<parallel>], iteration_bounds = array<i64: 2, 4>, scalar_prefetch = 0 : i64, scratch_operands = 1 : i64, tpu.core_type = #tpu.core_type<tc>, window_params = [{transform_indices = @transform_0, window_bounds = array<i64: 1, 1, 288, 1>}, {pipeline_mode = #tpu.pipeline_mode<synchronous>, transform_indices = @transform_1, window_bounds = array<i64: 9, 32>}, {pipeline_mode = #tpu.pipeline_mode<synchronous>, transform_indices = @transform_2, window_bounds = array<i64: 1, 32>}, {pipeline_mode = #tpu.pipeline_mode<synchronous>, transform_indices = @transform_3, window_bounds = array<i64: 1, 32>}, {pipeline_mode = #tpu.pipeline_mode<synchronous>, transform_indices = @transform_4, window_bounds = array<i64: 9, 32, 64>}, {pipeline_mode = #tpu.pipeline_mode<synchronous>, transform_indices = @transform_5, window_bounds = array<i64: 1, 64>}, {pipeline_mode = #tpu.pipeline_mode<synchronous>, transform_indices = @transform_6, window_bounds = array<i64: 1, 64>}, {pipeline_mode = #tpu.pipeline_mode<synchronous>, transform_indices = @transform_7, window_bounds = array<i64: 50, 212>}, {pipeline_mode = #tpu.pipeline_mode<synchronous>, transform_indices = @transform_8, window_bounds = array<i64: 50, 212>}, {pipeline_mode = #tpu.pipeline_mode<synchronous>, transform_indices = @transform_9, window_bounds = array<i64: 236, 1>}, {transform_indices = @transform_10, window_bounds = array<i64: 1, 1, 50, 64>}]} {
    %cst = arith.constant 0.000000e+00 : f32
    %0 = vector.broadcast %cst : f32 to vector<25x32xf32>
    %c0 = arith.constant 0 : index
    %c0_0 = arith.constant 0 : index
    %1 = vector.load %arg13[%c0, %c0_0] : memref<288x32xf32, #tpu.memory_space<vmem>>, vector<25x32xf32>
    tpu.vector_store %arg13[%c0, %c0_0], %0 {strides = array<i32>} : memref<288x32xf32, #tpu.memory_space<vmem>>, vector<25x32xf32>,
    %cst_1 = arith.constant 0.000000e+00 : f32
    %2 = vector.broadcast %cst_1 : f32 to vector<27x32xf32>
    %c261 = arith.constant 261 : index
    %c0_2 = arith.constant 0 : index
    %3 = vector.load %arg13[%c261, %c0_2] : memref<288x32xf32, #tpu.memory_space<vmem>>, vector<27x32xf32>
    tpu.vector_store %arg13[%c261, %c0_2], %2 {strides = array<i32>} : memref<288x32xf32, #tpu.memory_space<vmem>>, vector<27x32xf32>,
    %c0_3 = arith.constant 0 : index
    %c0_4 = arith.constant 0 : index
    %c0_5 = arith.constant 0 : index
    %c0_6 = arith.constant 0 : index
    %4 = vector.load %arg2[%c0_3, %c0_4, %c0_5, %c0_6] : memref<1x1x288x1xf32, #tpu.memory_space<vmem>>, vector<1x1x288x1xf32>
    %5 = vector.shape_cast %4 : vector<1x1x288x1xf32> to vector<288x1xf32>
    %cst_7 = arith.constant 0.000000e+00 : f32
    %6 = vector.broadcast %cst_7 : f32 to vector<236x32xf32>
    %7 = vector.extract_strided_slice %5 {offsets = [0, 0], sizes = [236, 1], strides = [1, 1]} : vector<288x1xf32> to vector<236x1xf32>
    %c0_8 = arith.constant 0 : index
    %c0_9 = arith.constant 0 : index
    %8 = vector.load %arg3[%c0_8, %c0_9] : memref<9x32xf32, #tpu.memory_space<vmem>>, vector<1x32xf32>
    %9 = vector.broadcast %7 : vector<236x1xf32> to vector<236x32xf32>
    %10 = vector.broadcast %8 : vector<1x32xf32> to vector<236x32xf32>
    %11 = arith.mulf %9, %10 : vector<236x32xf32>
    %12 = arith.addf %6, %11 : vector<236x32xf32>
    %13 = vector.extract_strided_slice %5 {offsets = [1, 0], sizes = [236, 1], strides = [1, 1]} : vector<288x1xf32> to vector<236x1xf32>
    %c1 = arith.constant 1 : index
    %c0_10 = arith.constant 0 : index
    %14 = vector.load %arg3[%c1, %c0_10] : memref<9x32xf32, #tpu.memory_space<vmem>>, vector<1x32xf32>
    %15 = vector.broadcast %13 : vector<236x1xf32> to vector<236x32xf32>
    %16 = vector.broadcast %14 : vector<1x32xf32> to vector<236x32xf32>
    %17 = arith.mulf %15, %16 : vector<236x32xf32>
    %18 = arith.addf %12, %17 : vector<236x32xf32>
    %19 = vector.extract_strided_slice %5 {offsets = [2, 0], sizes = [236, 1], strides = [1, 1]} : vector<288x1xf32> to vector<236x1xf32>
    %c2 = arith.constant 2 : index
    %c0_11 = arith.constant 0 : index
    %20 = vector.load %arg3[%c2, %c0_11] : memref<9x32xf32, #tpu.memory_space<vmem>>, vector<1x32xf32>
    %21 = vector.broadcast %19 : vector<236x1xf32> to vector<236x32xf32>
    %22 = vector.broadcast %20 : vector<1x32xf32> to vector<236x32xf32>
    %23 = arith.mulf %21, %22 : vector<236x32xf32>
    %24 = arith.addf %18, %23 : vector<236x32xf32>
    %25 = vector.extract_strided_slice %5 {offsets = [24, 0], sizes = [236, 1], strides = [1, 1]} : vector<288x1xf32> to vector<236x1xf32>
    %c3 = arith.constant 3 : index
    %c0_12 = arith.constant 0 : index
    %26 = vector.load %arg3[%c3, %c0_12] : memref<9x32xf32, #tpu.memory_space<vmem>>, vector<1x32xf32>
    %27 = vector.broadcast %25 : vector<236x1xf32> to vector<236x32xf32>
    %28 = vector.broadcast %26 : vector<1x32xf32> to vector<236x32xf32>
    %29 = arith.mulf %27, %28 : vector<236x32xf32>
    %30 = arith.addf %24, %29 : vector<236x32xf32>
    %31 = vector.extract_strided_slice %5 {offsets = [25, 0], sizes = [236, 1], strides = [1, 1]} : vector<288x1xf32> to vector<236x1xf32>
    %c4 = arith.constant 4 : index
    %c0_13 = arith.constant 0 : index
    %32 = vector.load %arg3[%c4, %c0_13] : memref<9x32xf32, #tpu.memory_space<vmem>>, vector<1x32xf32>
    %33 = vector.broadcast %31 : vector<236x1xf32> to vector<236x32xf32>
    %34 = vector.broadcast %32 : vector<1x32xf32> to vector<236x32xf32>
    %35 = arith.mulf %33, %34 : vector<236x32xf32>
    %36 = arith.addf %30, %35 : vector<236x32xf32>
    %37 = vector.extract_strided_slice %5 {offsets = [26, 0], sizes = [236, 1], strides = [1, 1]} : vector<288x1xf32> to vector<236x1xf32>
    %c5 = arith.constant 5 : index
    %c0_14 = arith.constant 0 : index
    %38 = vector.load %arg3[%c5, %c0_14] : memref<9x32xf32, #tpu.memory_space<vmem>>, vector<1x32xf32>
    %39 = vector.broadcast %37 : vector<236x1xf32> to vector<236x32xf32>
    %40 = vector.broadcast %38 : vector<1x32xf32> to vector<236x32xf32>
    %41 = arith.mulf %39, %40 : vector<236x32xf32>
    %42 = arith.addf %36, %41 : vector<236x32xf32>
    %43 = vector.extract_strided_slice %5 {offsets = [48, 0], sizes = [236, 1], strides = [1, 1]} : vector<288x1xf32> to vector<236x1xf32>
    %c6 = arith.constant 6 : index
    %c0_15 = arith.constant 0 : index
    %44 = vector.load %arg3[%c6, %c0_15] : memref<9x32xf32, #tpu.memory_space<vmem>>, vector<1x32xf32>
    %45 = vector.broadcast %43 : vector<236x1xf32> to vector<236x32xf32>
    %46 = vector.broadcast %44 : vector<1x32xf32> to vector<236x32xf32>
    %47 = arith.mulf %45, %46 : vector<236x32xf32>
    %48 = arith.addf %42, %47 : vector<236x32xf32>
    %49 = vector.extract_strided_slice %5 {offsets = [49, 0], sizes = [236, 1], strides = [1, 1]} : vector<288x1xf32> to vector<236x1xf32>
    %c7 = arith.constant 7 : index
    %c0_16 = arith.constant 0 : index
    %50 = vector.load %arg3[%c7, %c0_16] : memref<9x32xf32, #tpu.memory_space<vmem>>, vector<1x32xf32>
    %51 = vector.broadcast %49 : vector<236x1xf32> to vector<236x32xf32>
    %52 = vector.broadcast %50 : vector<1x32xf32> to vector<236x32xf32>
    %53 = arith.mulf %51, %52 : vector<236x32xf32>
    %54 = arith.addf %48, %53 : vector<236x32xf32>
    %55 = vector.extract_strided_slice %5 {offsets = [50, 0], sizes = [236, 1], strides = [1, 1]} : vector<288x1xf32> to vector<236x1xf32>
    %c8 = arith.constant 8 : index
    %c0_17 = arith.constant 0 : index
    %56 = vector.load %arg3[%c8, %c0_17] : memref<9x32xf32, #tpu.memory_space<vmem>>, vector<1x32xf32>
    %57 = vector.broadcast %55 : vector<236x1xf32> to vector<236x32xf32>
    %58 = vector.broadcast %56 : vector<1x32xf32> to vector<236x32xf32>
    %59 = arith.mulf %57, %58 : vector<236x32xf32>
    %60 = arith.addf %54, %59 : vector<236x32xf32>
    %c0_18 = arith.constant 0 : index
    %c0_19 = arith.constant 0 : index
    %61 = vector.load %arg4[%c0_18, %c0_19] : memref<1x32xf32, #tpu.memory_space<vmem>>, vector<1x32xf32>
    %62 = vector.broadcast %61 : vector<1x32xf32> to vector<236x32xf32>
    %63 = arith.mulf %60, %62 : vector<236x32xf32>
    %c0_20 = arith.constant 0 : index
    %c0_21 = arith.constant 0 : index
    %64 = vector.load %arg5[%c0_20, %c0_21] : memref<1x32xf32, #tpu.memory_space<vmem>>, vector<1x32xf32>
    %65 = vector.broadcast %64 : vector<1x32xf32> to vector<236x32xf32>
    %66 = arith.addf %63, %65 : vector<236x32xf32>
    %cst_22 = arith.constant 0.000000e+00 : f32
    %67 = vector.broadcast %cst_22 : f32 to vector<236x32xf32>
    %68 = arith.maximumf %66, %67 : vector<236x32xf32>
    %c0_23 = arith.constant 0 : index
    %c0_24 = arith.constant 0 : index
    %69 = vector.load %arg11[%c0_23, %c0_24] : memref<236x1xf32, #tpu.memory_space<vmem>>, vector<236x1xf32>
    %70 = vector.broadcast %69 : vector<236x1xf32> to vector<236x32xf32>
    %71 = arith.mulf %68, %70 : vector<236x32xf32>
    %c25 = arith.constant 25 : index
    %c0_25 = arith.constant 0 : index
    %72 = vector.load %arg13[%c25, %c0_25] : memref<288x32xf32, #tpu.memory_space<vmem>>, vector<236x32xf32>
    tpu.vector_store %arg13[%c25, %c0_25], %71 {strides = array<i32>} : memref<288x32xf32, #tpu.memory_space<vmem>>, vector<236x32xf32>,
    %cst_26 = arith.constant 0.000000e+00 : f32
    %73 = vector.broadcast %cst_26 : f32 to vector<236x64xf32>
    %c0_27 = arith.constant 0 : index
    %c0_28 = arith.constant 0 : index
    %74 = vector.load %arg13[%c0_27, %c0_28] : memref<288x32xf32, #tpu.memory_space<vmem>>, vector<236x32xf32>
    %c0_29 = arith.constant 0 : index
    %c0_30 = arith.constant 0 : index
    %c0_31 = arith.constant 0 : index
    %75 = vector.load %arg6[%c0_29, %c0_30, %c0_31] : memref<9x32x64xf32, #tpu.memory_space<vmem>>, vector<1x32x64xf32>
    %76 = vector.shape_cast %75 : vector<1x32x64xf32> to vector<32x64xf32>
    %cst_32 = arith.constant dense<0.000000e+00> : vector<236x64xf32>
    %77 = tpu.matmul %74, %76, %cst_32 {dimension_numbers = #tpu.dot_dimension_numbers<[1], [0], [0], [1], [0, 0, 1, 1], [], []>} : vector<236x32xf32>, vector<32x64xf32>, vector<236x64xf32> -> vector<236x64xf32>
    %78 = arith.addf %73, %77 : vector<236x64xf32>
    %c1_33 = arith.constant 1 : index
    %c0_34 = arith.constant 0 : index
    %79 = vector.load %arg13[%c1_33, %c0_34] : memref<288x32xf32, #tpu.memory_space<vmem>>, vector<236x32xf32>
    %c1_35 = arith.constant 1 : index
    %c0_36 = arith.constant 0 : index
    %c0_37 = arith.constant 0 : index
    %80 = vector.load %arg6[%c1_35, %c0_36, %c0_37] : memref<9x32x64xf32, #tpu.memory_space<vmem>>, vector<1x32x64xf32>
    %81 = vector.shape_cast %80 : vector<1x32x64xf32> to vector<32x64xf32>
    %cst_38 = arith.constant dense<0.000000e+00> : vector<236x64xf32>
    %82 = tpu.matmul %79, %81, %cst_38 {dimension_numbers = #tpu.dot_dimension_numbers<[1], [0], [0], [1], [0, 0, 1, 1], [], []>} : vector<236x32xf32>, vector<32x64xf32>, vector<236x64xf32> -> vector<236x64xf32>
    %83 = arith.addf %78, %82 : vector<236x64xf32>
    %c2_39 = arith.constant 2 : index
    %c0_40 = arith.constant 0 : index
    %84 = vector.load %arg13[%c2_39, %c0_40] : memref<288x32xf32, #tpu.memory_space<vmem>>, vector<236x32xf32>
    %c2_41 = arith.constant 2 : index
    %c0_42 = arith.constant 0 : index
    %c0_43 = arith.constant 0 : index
    %85 = vector.load %arg6[%c2_41, %c0_42, %c0_43] : memref<9x32x64xf32, #tpu.memory_space<vmem>>, vector<1x32x64xf32>
    %86 = vector.shape_cast %85 : vector<1x32x64xf32> to vector<32x64xf32>
    %cst_44 = arith.constant dense<0.000000e+00> : vector<236x64xf32>
    %87 = tpu.matmul %84, %86, %cst_44 {dimension_numbers = #tpu.dot_dimension_numbers<[1], [0], [0], [1], [0, 0, 1, 1], [], []>} : vector<236x32xf32>, vector<32x64xf32>, vector<236x64xf32> -> vector<236x64xf32>
    %88 = arith.addf %83, %87 : vector<236x64xf32>
    %c24 = arith.constant 24 : index
    %c0_45 = arith.constant 0 : index
    %89 = vector.load %arg13[%c24, %c0_45] : memref<288x32xf32, #tpu.memory_space<vmem>>, vector<236x32xf32>
    %c3_46 = arith.constant 3 : index
    %c0_47 = arith.constant 0 : index
    %c0_48 = arith.constant 0 : index
    %90 = vector.load %arg6[%c3_46, %c0_47, %c0_48] : memref<9x32x64xf32, #tpu.memory_space<vmem>>, vector<1x32x64xf32>
    %91 = vector.shape_cast %90 : vector<1x32x64xf32> to vector<32x64xf32>
    %cst_49 = arith.constant dense<0.000000e+00> : vector<236x64xf32>
    %92 = tpu.matmul %89, %91, %cst_49 {dimension_numbers = #tpu.dot_dimension_numbers<[1], [0], [0], [1], [0, 0, 1, 1], [], []>} : vector<236x32xf32>, vector<32x64xf32>, vector<236x64xf32> -> vector<236x64xf32>
    %93 = arith.addf %88, %92 : vector<236x64xf32>
    %c25_50 = arith.constant 25 : index
    %c0_51 = arith.constant 0 : index
    %94 = vector.load %arg13[%c25_50, %c0_51] : memref<288x32xf32, #tpu.memory_space<vmem>>, vector<236x32xf32>
    %c4_52 = arith.constant 4 : index
    %c0_53 = arith.constant 0 : index
    %c0_54 = arith.constant 0 : index
    %95 = vector.load %arg6[%c4_52, %c0_53, %c0_54] : memref<9x32x64xf32, #tpu.memory_space<vmem>>, vector<1x32x64xf32>
    %96 = vector.shape_cast %95 : vector<1x32x64xf32> to vector<32x64xf32>
    %cst_55 = arith.constant dense<0.000000e+00> : vector<236x64xf32>
    %97 = tpu.matmul %94, %96, %cst_55 {dimension_numbers = #tpu.dot_dimension_numbers<[1], [0], [0], [1], [0, 0, 1, 1], [], []>} : vector<236x32xf32>, vector<32x64xf32>, vector<236x64xf32> -> vector<236x64xf32>
    %98 = arith.addf %93, %97 : vector<236x64xf32>
    %c26 = arith.constant 26 : index
    %c0_56 = arith.constant 0 : index
    %99 = vector.load %arg13[%c26, %c0_56] : memref<288x32xf32, #tpu.memory_space<vmem>>, vector<236x32xf32>
    %c5_57 = arith.constant 5 : index
    %c0_58 = arith.constant 0 : index
    %c0_59 = arith.constant 0 : index
    %100 = vector.load %arg6[%c5_57, %c0_58, %c0_59] : memref<9x32x64xf32, #tpu.memory_space<vmem>>, vector<1x32x64xf32>
    %101 = vector.shape_cast %100 : vector<1x32x64xf32> to vector<32x64xf32>
    %cst_60 = arith.constant dense<0.000000e+00> : vector<236x64xf32>
    %102 = tpu.matmul %99, %101, %cst_60 {dimension_numbers = #tpu.dot_dimension_numbers<[1], [0], [0], [1], [0, 0, 1, 1], [], []>} : vector<236x32xf32>, vector<32x64xf32>, vector<236x64xf32> -> vector<236x64xf32>
    %103 = arith.addf %98, %102 : vector<236x64xf32>
    %c48 = arith.constant 48 : index
    %c0_61 = arith.constant 0 : index
    %104 = vector.load %arg13[%c48, %c0_61] : memref<288x32xf32, #tpu.memory_space<vmem>>, vector<236x32xf32>
    %c6_62 = arith.constant 6 : index
    %c0_63 = arith.constant 0 : index
    %c0_64 = arith.constant 0 : index
    %105 = vector.load %arg6[%c6_62, %c0_63, %c0_64] : memref<9x32x64xf32, #tpu.memory_space<vmem>>, vector<1x32x64xf32>
    %106 = vector.shape_cast %105 : vector<1x32x64xf32> to vector<32x64xf32>
    %cst_65 = arith.constant dense<0.000000e+00> : vector<236x64xf32>
    %107 = tpu.matmul %104, %106, %cst_65 {dimension_numbers = #tpu.dot_dimension_numbers<[1], [0], [0], [1], [0, 0, 1, 1], [], []>} : vector<236x32xf32>, vector<32x64xf32>, vector<236x64xf32> -> vector<236x64xf32>
    %108 = arith.addf %103, %107 : vector<236x64xf32>
    %c49 = arith.constant 49 : index
    %c0_66 = arith.constant 0 : index
    %109 = vector.load %arg13[%c49, %c0_66] : memref<288x32xf32, #tpu.memory_space<vmem>>, vector<236x32xf32>
    %c7_67 = arith.constant 7 : index
    %c0_68 = arith.constant 0 : index
    %c0_69 = arith.constant 0 : index
    %110 = vector.load %arg6[%c7_67, %c0_68, %c0_69] : memref<9x32x64xf32, #tpu.memory_space<vmem>>, vector<1x32x64xf32>
    %111 = vector.shape_cast %110 : vector<1x32x64xf32> to vector<32x64xf32>
    %cst_70 = arith.constant dense<0.000000e+00> : vector<236x64xf32>
    %112 = tpu.matmul %109, %111, %cst_70 {dimension_numbers = #tpu.dot_dimension_numbers<[1], [0], [0], [1], [0, 0, 1, 1], [], []>} : vector<236x32xf32>, vector<32x64xf32>, vector<236x64xf32> -> vector<236x64xf32>
    %113 = arith.addf %108, %112 : vector<236x64xf32>
    %c50 = arith.constant 50 : index
    %c0_71 = arith.constant 0 : index
    %114 = vector.load %arg13[%c50, %c0_71] : memref<288x32xf32, #tpu.memory_space<vmem>>, vector<236x32xf32>
    %c8_72 = arith.constant 8 : index
    %c0_73 = arith.constant 0 : index
    %c0_74 = arith.constant 0 : index
    %115 = vector.load %arg6[%c8_72, %c0_73, %c0_74] : memref<9x32x64xf32, #tpu.memory_space<vmem>>, vector<1x32x64xf32>
    %116 = vector.shape_cast %115 : vector<1x32x64xf32> to vector<32x64xf32>
    %cst_75 = arith.constant dense<0.000000e+00> : vector<236x64xf32>
    %117 = tpu.matmul %114, %116, %cst_75 {dimension_numbers = #tpu.dot_dimension_numbers<[1], [0], [0], [1], [0, 0, 1, 1], [], []>} : vector<236x32xf32>, vector<32x64xf32>, vector<236x64xf32> -> vector<236x64xf32>
    %118 = arith.addf %113, %117 : vector<236x64xf32>
    %c0_76 = arith.constant 0 : index
    %c0_77 = arith.constant 0 : index
    %119 = vector.load %arg7[%c0_76, %c0_77] : memref<1x64xf32, #tpu.memory_space<vmem>>, vector<1x64xf32>
    %120 = vector.broadcast %119 : vector<1x64xf32> to vector<236x64xf32>
    %121 = arith.mulf %118, %120 : vector<236x64xf32>
    %c0_78 = arith.constant 0 : index
    %c0_79 = arith.constant 0 : index
    %122 = vector.load %arg8[%c0_78, %c0_79] : memref<1x64xf32, #tpu.memory_space<vmem>>, vector<1x64xf32>
    %123 = vector.broadcast %122 : vector<1x64xf32> to vector<236x64xf32>
    %124 = arith.addf %121, %123 : vector<236x64xf32>
    %cst_80 = arith.constant 0.000000e+00 : f32
    %125 = vector.broadcast %cst_80 : f32 to vector<236x64xf32>
    %126 = arith.maximumf %124, %125 : vector<236x64xf32>
    %127 = vector.extract_strided_slice %126 {offsets = [0, 0], sizes = [212, 64], strides = [1, 1]} : vector<236x64xf32> to vector<212x64xf32>
    %128 = vector.extract_strided_slice %126 {offsets = [24, 0], sizes = [212, 64], strides = [1, 1]} : vector<236x64xf32> to vector<212x64xf32>
    %129 = arith.maximumf %127, %128 : vector<212x64xf32>
    %c0_81 = arith.constant 0 : index
    %c0_82 = arith.constant 0 : index
    %130 = vector.load %arg9[%c0_81, %c0_82] : memref<50x212xf32, #tpu.memory_space<vmem>>, vector<50x212xf32>
    %cst_83 = arith.constant dense<0.000000e+00> : vector<50x64xf32>
    %131 = tpu.matmul %130, %129, %cst_83 {dimension_numbers = #tpu.dot_dimension_numbers<[1], [0], [0], [1], [0, 0, 1, 1], [], []>} : vector<50x212xf32>, vector<212x64xf32>, vector<50x64xf32> -> vector<50x64xf32>
    %c0_84 = arith.constant 0 : index
    %c0_85 = arith.constant 0 : index
    %132 = vector.load %arg10[%c0_84, %c0_85] : memref<50x212xf32, #tpu.memory_space<vmem>>, vector<50x212xf32>
    %cst_86 = arith.constant dense<0.000000e+00> : vector<50x64xf32>
    %133 = tpu.matmul %132, %129, %cst_86 {dimension_numbers = #tpu.dot_dimension_numbers<[1], [0], [0], [1], [0, 0, 1, 1], [], []>} : vector<50x212xf32>, vector<212x64xf32>, vector<50x64xf32> -> vector<50x64xf32>
    %134 = arith.maximumf %131, %133 : vector<50x64xf32>
    %c0_87 = arith.constant 0 : index
    %c0_88 = arith.constant 0 : index
    %c0_89 = arith.constant 0 : index
    %c0_90 = arith.constant 0 : index
    %135 = vector.load %arg12[%c0_87, %c0_88, %c0_89, %c0_90] : memref<1x1x50x64xf32, #tpu.memory_space<vmem>>, vector<1x1x50x64xf32>
    %136 = vector.shape_cast %135 : vector<1x1x50x64xf32> to vector<50x64xf32>
    %137 = vector.shape_cast %134 : vector<50x64xf32> to vector<1x1x50x64xf32>
    tpu.vector_store %arg12[%c0_87, %c0_88, %c0_89, %c0_90], %137 {strides = array<i32>} : memref<1x1x50x64xf32, #tpu.memory_space<vmem>>, vector<1x1x50x64xf32>,
    return
  }
  func.func @transform_0(%arg0: i32, %arg1: i32) -> (i32, i32, i32, i32) {
    %c0_i32 = arith.constant 0 : i32
    %c0_i32_0 = arith.constant 0 : i32
    %c0_i32_1 = arith.constant 0 : i32
    return %arg0, %arg1, %c0_i32, %c0_i32_0 : i32, i32, i32, i32
  }
  func.func @transform_1(%arg0: i32, %arg1: i32) -> (i32, i32) {
    %c0_i32 = arith.constant 0 : i32
    %c0_i32_0 = arith.constant 0 : i32
    %c0_i32_1 = arith.constant 0 : i32
    return %c0_i32, %c0_i32_0 : i32, i32
  }
  func.func @transform_2(%arg0: i32, %arg1: i32) -> (i32, i32) {
    %c0_i32 = arith.constant 0 : i32
    %c0_i32_0 = arith.constant 0 : i32
    %c0_i32_1 = arith.constant 0 : i32
    return %c0_i32, %c0_i32_0 : i32, i32
  }
  func.func @transform_3(%arg0: i32, %arg1: i32) -> (i32, i32) {
    %c0_i32 = arith.constant 0 : i32
    %c0_i32_0 = arith.constant 0 : i32
    %c0_i32_1 = arith.constant 0 : i32
    return %c0_i32, %c0_i32_0 : i32, i32
  }
  func.func @transform_4(%arg0: i32, %arg1: i32) -> (i32, i32, i32) {
    %c0_i32 = arith.constant 0 : i32
    %c0_i32_0 = arith.constant 0 : i32
    %c0_i32_1 = arith.constant 0 : i32
    %c0_i32_2 = arith.constant 0 : i32
    return %c0_i32, %c0_i32_0, %c0_i32_1 : i32, i32, i32
  }
  func.func @transform_5(%arg0: i32, %arg1: i32) -> (i32, i32) {
    %c0_i32 = arith.constant 0 : i32
    %c0_i32_0 = arith.constant 0 : i32
    %c0_i32_1 = arith.constant 0 : i32
    return %c0_i32, %c0_i32_0 : i32, i32
  }
  func.func @transform_6(%arg0: i32, %arg1: i32) -> (i32, i32) {
    %c0_i32 = arith.constant 0 : i32
    %c0_i32_0 = arith.constant 0 : i32
    %c0_i32_1 = arith.constant 0 : i32
    return %c0_i32, %c0_i32_0 : i32, i32
  }
  func.func @transform_7(%arg0: i32, %arg1: i32) -> (i32, i32) {
    %c0_i32 = arith.constant 0 : i32
    %c0_i32_0 = arith.constant 0 : i32
    %c0_i32_1 = arith.constant 0 : i32
    return %c0_i32, %c0_i32_0 : i32, i32
  }
  func.func @transform_8(%arg0: i32, %arg1: i32) -> (i32, i32) {
    %c0_i32 = arith.constant 0 : i32
    %c0_i32_0 = arith.constant 0 : i32
    %c0_i32_1 = arith.constant 0 : i32
    return %c0_i32, %c0_i32_0 : i32, i32
  }
  func.func @transform_9(%arg0: i32, %arg1: i32) -> (i32, i32) {
    %c0_i32 = arith.constant 0 : i32
    %c0_i32_0 = arith.constant 0 : i32
    %c0_i32_1 = arith.constant 0 : i32
    return %c0_i32, %c0_i32_0 : i32, i32
  }
  func.func @transform_10(%arg0: i32, %arg1: i32) -> (i32, i32, i32, i32) {
    %c0_i32 = arith.constant 0 : i32
    %c0_i32_0 = arith.constant 0 : i32
    %c0_i32_1 = arith.constant 0 : i32
    return %arg0, %arg1, %c0_i32, %c0_i32_0 : i32, i32, i32, i32
  }
}

</mosaic_0001>

<bundles_post_ra>
// kernel: cov2d_forward.3
= control target key start
LH: loop header
LB: loop body
LE: loop exit
PB: predicated region body
PF: predicated region fallthrough
CT: control target
= control target key end

     0   :  { %s3734_s26 = smov 0   ;;  %s4063_s0 = inlined_call_operand.vmem [shape: f32[2,12800], index: 0, kind: input, shape index: {}]   ;;  %s4064_s1 = inlined_call_operand.vmem [shape: bf16[12800,128], index: 1, kind: input, shape index: {}]   ;;  %s4065_s2 = inlined_call_operand.vmem [shape: f32[1,128], index: 2, kind: input, shape index: {}]   ;;  %s4066_s3 = inlined_call_operand.vmem [shape: f32[128,64], index: 3, kind: input, shape index: {}]   ;;  %s4067_s4 = inlined_call_operand.vmem [shape: f32[1,64], index: 4, kind: input, shape index: {}]   ;;  %s4068_s5 = inlined_call_operand.vmem [shape: f32[64,1], index: 5, kind: input, shape index: {}]   ;;  %s4069_s6 = inlined_call_operand.<no memory space> [shape: f32[1,1], index: 6, kind: input, shape index: {}]   ;;  %s4070_s7 = inlined_call_operand.vmem [shape: f32[2,1], index: 7, kind: output, shape index: {}]  }
   0x1   :  { %v12_v0 = vstv %s4069_s6 }
   0x2   :  { %13 = vst [vmem:[#allocation3] sm:$0x1] %v12_v0 }
   0x3 LB: > { %s3740_s27 = sadd.s32 4294967295, %s3682_s26   ;;  %p2834_p0 = scmp.ge.s32.totalorder %s3682_s26, 1  ;;  %s3682_s26 = sphi %s3734_s26, %s19_s26  }
   0x4   : > { %p246_p1 = scmp.lt.s32.totalorder %s3682_s26, 5 }
   0x6   : > { %p247_p2 = pnand %p2834_p0, %p246_p1 }
   0x7   : > { %s278_s6 = smul.u32 (!%p247_p2), 25, %s3740_s27  ;;  %p2837_p5 = scmp.ne.s32.totalorder (!%p247_p2), %s3740_s27, 0 }
   0x8   : > { %250 = sbr.rel (%p247_p2) target bundleno = 910 (0x38e), region = 48 }
   0x9   : > { %s284_s28 = smul.u32 (!%p247_p2), 400, %s3740_s27  ;;  %p279_p3 = scmp.lt.s32.totalorder (!%p247_p2), %s278_s6, 99 }
   0xb   : > { %p285_p4 = scmp.lt.s32.totalorder (!%p247_p2), %s284_s28, 1599 }
   0xf   : > { %s4072_s6 = smov (!%p279_p3, %s278_s6), 99  ;;  %s4074_s28 = smov (!%p285_p4, %s284_s28), 1599 }
  0x10   : > { %s2835_s29 = sshll.u32 %s4072_s6, 1  ;;  %s2836_s10 = sshll.u32 %s4074_s28, 2  ;;  %v3684_v1 = vmov (!%p2837_p5), 0.0  }
  0x11   : > { %s3749_s9 = scalar_lea.vmem %s4063_s0, %s2835_s29  ;;  %s3754_s13 = scalar_lea.vmem %s4064_s1, %s2836_s10  ;;  %295 = vst [vmem:[#allocation2] sm:$0x3] (!%p2837_p5), %v3684_v1 }
  0x12   : > { %294 = sbr.rel (%p2837_p5) target bundleno = 25 (0x19), region = 52 }
  0x19 PF: > { %v3470_v2 = vld [vmem:[%s3754_s13 + $0x40] sm:$0xff]   ;;  %v3474_v6 = vld [vmem:[%s3754_s13 + $0x48] sm:$0xff]   ;;  %v3478_v10 = vld [vmem:[%s3754_s13 + $0x50] sm:$0xff]   ;;  %v315_v30 = vlaneseq  ;;  %v3685_v38 = vmov 1983009808   ;;  %vm3687_vm0 = vmmov 0  }
  0x1a   : > { %v3471_v3 = vld [vmem:[%s3754_s13 + $0xc0] sm:$0xff]   ;;  %3046 = vmatprep.subr.bf16.mxu0 %v3470_v2  ;;  %v3475_v7 = vld [vmem:[%s3754_s13 + $0xc8] sm:$0xff]   ;;  %v3479_v11 = vld [vmem:[%s3754_s13 + $0xd0] sm:$0xff]   ;;  %v313_v39 = vunpack.c.l.s4 %v3685_v38  ;;  %p3039_p6 = scmp.ne.s32.totalorder %s3740_s27, 3 }
  0x1b   : > { %v3472_v4 = vld [vmem:[%s3754_s13] sm:$0xff]   ;;  %3068 = vmatprep.subr.bf16.mxu1 %v3471_v3  ;;  %v3476_v8 = vld [vmem:[%s3754_s13 + $0x8] sm:$0xff]   ;;  %v3480_v12 = vld [vmem:[%s3754_s13 + $0x10] sm:$0xff]   ;;  %v316_v35 = vshrl.u32 %v315_v30, 7  ;;  %vm3689_vm1 = vmmov (!%p3039_p6), 0   ;;  %vm2715_vm2 = vcmask (!%p3039_p6), 523264  }
  0x1c   : > { %v3473_v5 = vld [vmem:[%s3754_s13 + $0x80] sm:$0xff]   ;;  %3047 = vmatpush3.bf16.msra.mxu0 %v3472_v4  ;;  %v3477_v9 = vld [vmem:[%s3754_s13 + $0x88] sm:$0xff]   ;;  %v3481_v13 = vld [vmem:[%s3754_s13 + $0x90] sm:$0xff]   ;;  %v314_v40 = vunpack.c.0.s8 %v313_v39  ;;  %vm2789_vm3 = vcmask (!%p3039_p6), 1024  }
  0x1d   : > { %3069 = vmatpush3.bf16.msra.mxu1 %v3473_v5  ;;  %3048 = vmatprep.subr.bf16.mxu0 %v3474_v6  ;;  %v3482_v14 = vld [vmem:[%s3754_s13 + $0x58] sm:$0xff]   ;;  %v3486_v18 = vld [vmem:[%s3754_s13 + $0x60] sm:$0xff]   ;;  %v3490_v22 = vld [vmem:[%s3754_s13 + $0x68] sm:$0xff]  }
  0x1e   : > { %3070 = vmatprep.subr.bf16.mxu1 %v3475_v7  ;;  %v3483_v15 = vld [vmem:[%s3754_s13 + $0xd8] sm:$0xff]   ;;  %v3487_v19 = vld [vmem:[%s3754_s13 + $0xe0] sm:$0xff]   ;;  %v3491_v23 = vld [vmem:[%s3754_s13 + $0xe8] sm:$0xff]   ;;  %v3792_v43 = vsub.s32 %v314_v40, %v316_v35 }
  0x1f   : > { %v3484_v16 = vld [vmem:[%s3754_s13 + $0x18] sm:$0xff]   ;;  %v3488_v20 = vld [vmem:[%s3754_s13 + $0x20] sm:$0xff]   ;;  %v3492_v24 = vld [vmem:[%s3754_s13 + $0x28] sm:$0xff]  }
  0x20   : > { %3049 = vmatpush3.bf16.msra.mxu0 %v3476_v8  ;;  %v3485_v17 = vld [vmem:[%s3754_s13 + $0x98] sm:$0xff]   ;;  %v3489_v21 = vld [vmem:[%s3754_s13 + $0xa0] sm:$0xff]   ;;  %v3493_v25 = vld [vmem:[%s3754_s13 + $0xa8] sm:$0xff]  }
  0x21   : > { %3071 = vmatpush3.bf16.msra.mxu1 %v3477_v9  ;;  %3050 = vmatprep.subr.bf16.mxu0 %v3478_v10  ;;  %v3494_v26 = vld [vmem:[%s3754_s13 + $0x70] sm:$0xff]   ;;  %v3498_v31 = vld [vmem:[%s3754_s13 + $0x78] sm:$0xff]   ;;  %v297_v36 = vld [vmem:[%s3749_s9] sm:$0xff] }
  0x22   : > { %3072 = vmatprep.subr.bf16.mxu1 %v3479_v11  ;;  %v3495_v27 = vld [vmem:[%s3754_s13 + $0xf0] sm:$0xff]   ;;  %v3499_v32 = vld [vmem:[%s3754_s13 + $0xf8] sm:$0xff]   ;;  %v3503_v37 = vld [vmem:[%s3754_s13 + $0x140] sm:$0xff]   ;;  %v311_v41 = vcombine.high %v297_v36, %v297_v36  ;;  %v318_v44 = vrot.slane %v297_v36, %v3792_v43 }
  0x23   : > { %v3496_v28 = vld [vmem:[%s3754_s13 + $0x30] sm:$0xff]   ;;  %v3500_v33 = vld [vmem:[%s3754_s13 + $0x38] sm:$0xff]   ;;  %v3505_v42 = vld [vmem:[%s3754_s13 + $0x1c0] sm:$0xff]  }
  0x24   : > { %3051 = vmatpush3.bf16.msra.mxu0 %v3480_v12  ;;  %v3497_v29 = vld [vmem:[%s3754_s13 + $0xb0] sm:$0xff]   ;;  %v3501_v34 = vld [vmem:[%s3754_s13 + $0xb8] sm:$0xff]   ;;  %v325_v45 = vrot.slane %v311_v41, %v3792_v43  ;;  %v326_v46 = vcombine.high %v318_v44, %v318_v44  ;;  %v3504_v48 = vld [vmem:[%s3754_s13 + $0x100] sm:$0xff]   ;;  %v445_v49 = vpack.c.bf16 %v318_v44, %v318_v44 }
  0x25   : > { %3073 = vmatpush3.bf16.msra.mxu1 %v3481_v13  ;;  %3052 = vmatprep.subr.bf16.mxu0 %v3482_v14  ;;  %v3506_v51 = vld [vmem:[%s3754_s13 + $0x180] sm:$0xff]   ;;  %v3507_v54 = vld [vmem:[%s3754_s13 + $0x148] sm:$0xff]   ;;  %v3511_v58 = vld [vmem:[%s3754_s13 + $0x150] sm:$0xff]  }
  0x26   : > { %3074 = vmatprep.subr.bf16.mxu1 %v3483_v15  ;;  %v327_v47 = vcombine.high %v325_v45, %v325_v45  ;;  %v447_v50 = vpack.c.bf16 %v325_v45, %v325_v45  ;;  %v446_v52 = vpack.c.bf16 %v326_v46, %v326_v46  ;;  %v3509_v55 = vld [vmem:[%s3754_s13 + $0x1c8] sm:$0xff]   ;;  %v3513_v59 = vld [vmem:[%s3754_s13 + $0x1d0] sm:$0xff]   ;;  %v3515_v62 = vld [vmem:[%s3754_s13 + $0x158] sm:$0xff]  }
  0x27   : > { %v3508_v56 = vld [vmem:[%s3754_s13 + $0x108] sm:$0xff]   ;;  %v3512_v60 = vld [vmem:[%s3754_s13 + $0x110] sm:$0xff]   ;;  %v3517_v63 = vld [vmem:[%s3754_s13 + $0x1d8] sm:$0xff]  }
  0x28   : > { %3053 = vmatpush3.bf16.msra.mxu0 %v3484_v16  ;;  %v448_v53 = vpack.c.bf16 %v327_v47, %v327_v47  ;;  %2102 = vmatprep.mubr.bf16.mxu0 %v446_v52  ;;  %v3510_v57 = vld [vmem:[%s3754_s13 + $0x188] sm:$0xff]   ;;  %v3514_v61 = vld [vmem:[%s3754_s13 + $0x190] sm:$0xff]   ;;  %v3516_v0 = vld [vmem:[%s3754_s13 + $0x118] sm:$0xff]  }
  0x29   : > { %3075 = vmatpush3.bf16.msra.mxu1 %v3485_v17  ;;  %3054 = vmatprep.subr.bf16.mxu0 %v3486_v18  ;;  %v3518_v1 = vld [vmem:[%s3754_s13 + $0x198] sm:$0xff]   ;;  %v3519_v2 = vld [vmem:[%s3754_s13 + $0x160] sm:$0xff]   ;;  %v3523_v6 = vld [vmem:[%s3754_s13 + $0x168] sm:$0xff]  }
  0x2a   : > { %3076 = vmatprep.subr.bf16.mxu1 %v3487_v19  ;;  %2142 = vmatprep.mubr.bf16.mxu1 %v448_v53  ;;  %v3521_v3 = vld [vmem:[%s3754_s13 + $0x1e0] sm:$0xff]   ;;  %v3525_v7 = vld [vmem:[%s3754_s13 + $0x1e8] sm:$0xff]   ;;  %v3527_v10 = vld [vmem:[%s3754_s13 + $0x170] sm:$0xff]  }
  0x2b   : > { %v3520_v4 = vld [vmem:[%s3754_s13 + $0x120] sm:$0xff]   ;;  %v3524_v8 = vld [vmem:[%s3754_s13 + $0x128] sm:$0xff]   ;;  %v3529_v12 = vld [vmem:[%s3754_s13 + $0x1f0] sm:$0xff]  }
  0x2c   : > { %3055 = vmatpush3.bf16.msra.mxu0 %v3488_v20  ;;  %v3522_v5 = vld [vmem:[%s3754_s13 + $0x1a0] sm:$0xff]   ;;  %v3526_v9 = vld [vmem:[%s3754_s13 + $0x1a8] sm:$0xff]   ;;  %v3528_v15 = vld [vmem:[%s3754_s13 + $0x130] sm:$0xff]  }
  0x2d   : > { %3077 = vmatpush3.bf16.msra.mxu1 %v3489_v21  ;;  %3056 = vmatprep.subr.bf16.mxu0 %v3490_v22  ;;  %v298_v11 = vld [vmem:[%s3749_s9 + $0x8] sm:$0xff]  ;;  %v3530_v16 = vld [vmem:[%s3754_s13 + $0x1b0] sm:$0xff]   ;;  %v3531_v19 = vld [vmem:[%s3754_s13 + $0x178] sm:$0xff]  }
  0x2e   : > { %3078 = vmatprep.subr.bf16.mxu1 %v3491_v23  ;;  %v335_v13 = vrot.slane %v298_v11, %v3792_v43  ;;  %v328_v14 = vcombine.high %v298_v11, %v298_v11  ;;  %v3533_v20 = vld [vmem:[%s3754_s13 + $0x1f8] sm:$0xff]   ;;  %v3543_v35 = vld [vmem:[%s3754_s13 + $0x288] sm:$0xff]   ;;  %v3544_v36 = vld [vmem:[%s3754_s13 + $0x250] sm:$0xff]  }
  0x2f   : > { %v3532_v23 = vld [vmem:[%s3754_s13 + $0x138] sm:$0xff]   ;;  %v3545_v38 = vld [vmem:[%s3754_s13 + $0x210] sm:$0xff]   ;;  %v3552_v45 = vld [vmem:[%s3754_s13 + $0x260] sm:$0xff]  }
  0x30   : > { %3057 = vmatpush3.bf16.msra.mxu0 %v3492_v24  ;;  %v343_v17 = vcombine.high %v335_v13, %v335_v13  ;;  %v342_v18 = vrot.slane %v328_v14, %v3792_v43  ;;  %v3534_v24 = vld [vmem:[%s3754_s13 + $0x1b8] sm:$0xff]   ;;  %v3547_v39 = vld [vmem:[%s3754_s13 + $0x290] sm:$0xff]   ;;  %v3554_v46 = vld [vmem:[%s3754_s13 + $0x2e0] sm:$0xff]  }
  0x31   : > { %3079 = vmatpush3.bf16.msra.mxu1 %v3493_v25  ;;  %3058 = vmatprep.subr.bf16.mxu0 %v3494_v26  ;;  %v3535_v26 = vld [vmem:[%s3754_s13 + $0x240] sm:$0xff]   ;;  %v3548_v40 = vld [vmem:[%s3754_s13 + $0x258] sm:$0xff]   ;;  %v3559_v52 = vld [vmem:[%s3754_s13 + $0x2a8] sm:$0xff]  }
  0x32   : > { %3080 = vmatprep.subr.bf16.mxu1 %v3495_v27  ;;  %v450_v21 = vpack.c.bf16 %v343_v17, %v343_v17  ;;  %v344_v22 = vcombine.high %v342_v18, %v342_v18  ;;  %v3538_v27 = vld [vmem:[%s3754_s13 + $0x2c0] sm:$0xff]   ;;  %v451_v30 = vpack.c.bf16 %v342_v18, %v342_v18  ;;  %v3550_v41 = vld [vmem:[%s3754_s13 + $0x2d8] sm:$0xff]   ;;  %v3560_v53 = vld [vmem:[%s3754_s13 + $0x270] sm:$0xff]  }
  0x33   : > { %v3551_v44 = vld [vmem:[%s3754_s13 + $0x298] sm:$0xff]   ;;  %v3553_v47 = vld [vmem:[%s3754_s13 + $0x220] sm:$0xff]   ;;  %v3573_v11 = vld [vmem:[%s3754_s13 + $0x348] sm:$0xff]  }
  0x34   : > { %3059 = vmatpush3.bf16.msra.mxu0 %v3496_v28  ;;  %v452_v25 = vpack.c.bf16 %v344_v22, %v344_v22  ;;  %v3537_v28 = vld [vmem:[%s3754_s13 + $0x200] sm:$0xff]   ;;  %v3576_v14 = vld [vmem:[%s3754_s13 + $0x388] sm:$0xff]   ;;  %v3578_v17 = vld [vmem:[%s3754_s13 + $0x310] sm:$0xff]  }
  0x35   : > { %3081 = vmatpush3.bf16.msra.mxu1 %v3497_v29  ;;  %3060 = vmatprep.subr.bf16.mxu0 %v3498_v31  ;;  %v449_v29 = vpack.c.bf16 %v335_v13, %v335_v13  ;;  %v3539_v31 = vld [vmem:[%s3754_s13 + $0x280] sm:$0xff]   ;;  %v3574_v13 = vld [vmem:[%s3754_s13 + $0x308] sm:$0xff]   ;;  %v3580_v18 = vld [vmem:[%s3754_s13 + $0x390] sm:$0xff]  }
  0x36   : > { %3082 = vmatprep.subr.bf16.mxu1 %v3499_v32  ;;  %v3540_v32 = vld [vmem:[%s3754_s13 + $0x248] sm:$0xff]   ;;  %v3584_v22 = vld [vmem:[%s3754_s13 + $0x398] sm:$0xff]  }
  0x38   : > { %3061 = vmatpush3.bf16.msra.mxu0 %v3500_v33  ;;  %v3542_v33 = vld [vmem:[%s3754_s13 + $0x2c8] sm:$0xff]  }
  0x39   : > { %3083 = vmatpush3.bf16.msra.mxu1 %v3501_v34  ;;  %3090 = vmatprep.subr.bf16.mxu0 %v3503_v37  ;;  %v3541_v34 = vld [vmem:[%s3754_s13 + $0x208] sm:$0xff]   ;;  %v3546_v37 = vld [vmem:[%s3754_s13 + $0x2d0] sm:$0xff]  }
  0x3a   : > { %3112 = vmatprep.subr.bf16.mxu1 %v3505_v42  ;;  %v3549_v42 = vld [vmem:[%s3754_s13 + $0x218] sm:$0xff]  }
  0x3b   : > { %2103 = vmatmul.mubr.bf16.vlgmr.msra.gmra.mrb[0].mxu0 %v445_v49  ;;  %v3556_v49 = vld [vmem:[%s3754_s13 + $0x268] sm:$0xff]  }
  0x3c   : > { %2143 = vmatmul.mubr.bf16.vlgmr.msra.gmra.mrb[0].mxu1 %v447_v50  ;;  %3091 = vmatpush3.bf16.msra.mxu0 %v3504_v48  ;;  %v3555_v48 = vld [vmem:[%s3754_s13 + $0x2a0] sm:$0xff]   ;;  %v3558_v50 = vld [vmem:[%s3754_s13 + $0x2e8] sm:$0xff]  }
  0x3d   : > { %3113 = vmatpush3.bf16.msra.mxu1 %v3506_v51  ;;  %3092 = vmatprep.subr.bf16.mxu0 %v3507_v54  ;;  %v3557_v51 = vld [vmem:[%s3754_s13 + $0x228] sm:$0xff]   ;;  %v299_v54 = vld [vmem:[%s3749_s9 + $0x10] sm:$0xff] }
  0x3e   : > { %3114 = vmatprep.subr.bf16.mxu1 %v3509_v55  ;;  %2182 = vmatprep.mubr.bf16.mxu0 %v450_v21  ;;  %v3562_v55 = vld [vmem:[%s3754_s13 + $0x2f0] sm:$0xff]   ;;  %v3582_v21 = vld [vmem:[%s3754_s13 + $0x318] sm:$0xff]  }
  0x3f   : > { %2222 = vmatprep.mubr.bf16.mxu1 %v452_v25  ;;  %v3586_v25 = vld [vmem:[%s3754_s13 + $0x320] sm:$0xff]  }
  0x40   : > { %3093 = vmatpush3.bf16.msra.mxu0 %v3508_v56  ;;  %v352_v56 = vrot.slane %v299_v54, %v3792_v43 }
  0x41   : > { %3115 = vmatpush3.bf16.msra.mxu1 %v3510_v57  ;;  %3094 = vmatprep.subr.bf16.mxu0 %v3511_v58  ;;  %v345_v57 = vcombine.high %v299_v54, %v299_v54  ;;  %v3561_v58 = vld [vmem:[%s3754_s13 + $0x230] sm:$0xff]   ;;  %v3606_v54 = vld [vmem:[%s3754_s13 + $0x448] sm:$0xff]  }
  0x42   : > { %3116 = vmatprep.subr.bf16.mxu1 %v3513_v59  ;;  %v3563_v59 = vld [vmem:[%s3754_s13 + $0x2b0] sm:$0xff]  }
  0x44   : > { %3095 = vmatpush3.bf16.msra.mxu0 %v3512_v60  ;;  %v360_v60 = vcombine.high %v352_v56, %v352_v56 }
  0x45   : > { %3117 = vmatpush3.bf16.msra.mxu1 %v3514_v61  ;;  %3096 = vmatprep.subr.bf16.mxu0 %v3515_v62  ;;  %v359_v61 = vrot.slane %v345_v57, %v3792_v43  ;;  %v3564_v62 = vld [vmem:[%s3754_s13 + $0x278] sm:$0xff]   ;;  %v3609_v57 = vld [vmem:[%s3754_s13 + $0x488] sm:$0xff]  }
  0x46   : > { %3118 = vmatprep.subr.bf16.mxu1 %v3517_v63  ;;  %v3566_v63 = vld [vmem:[%s3754_s13 + $0x2f8] sm:$0xff]  }
  0x48   : > { %3097 = vmatpush3.bf16.msra.mxu0 %v3516_v0  ;;  %v454_v0 = vpack.c.bf16 %v360_v60, %v360_v60  ;;  %v3611_v60 = vld [vmem:[%s3754_s13 + $0x410] sm:$0xff]  }
  0x49   : > { %3119 = vmatpush3.bf16.msra.mxu1 %v3518_v1  ;;  %3098 = vmatprep.subr.bf16.mxu0 %v3519_v2  ;;  %v361_v1 = vcombine.high %v359_v61, %v359_v61  ;;  %v3565_v2 = vld [vmem:[%s3754_s13 + $0x238] sm:$0xff]  }
  0x4a   : > { %3120 = vmatprep.subr.bf16.mxu1 %v3521_v3  ;;  %v3567_v3 = vld [vmem:[%s3754_s13 + $0x2b8] sm:$0xff]  }
  0x4c   : > { %3099 = vmatpush3.bf16.msra.mxu0 %v3520_v4  ;;  %v456_v4 = vpack.c.bf16 %v361_v1, %v361_v1  ;;  %v3617_v1 = vld [vmem:[%s3754_s13 + $0x498] sm:$0xff]  }
  0x4d   : > { %3121 = vmatpush3.bf16.msra.mxu1 %v3522_v5  ;;  %3100 = vmatprep.subr.bf16.mxu0 %v3523_v6  ;;  %v3568_v5 = vld [vmem:[%s3754_s13 + $0x340] sm:$0xff]  }
  0x4e   : > { %3122 = vmatprep.subr.bf16.mxu1 %v3525_v7  ;;  %v3571_v6 = vld [vmem:[%s3754_s13 + $0x3c0] sm:$0xff]  }
  0x4f   : > { %v3570_v7 = vld [vmem:[%s3754_s13 + $0x300] sm:$0xff]  }
  0x50   : > { %3101 = vmatpush3.bf16.msra.mxu0 %v3524_v8  ;;  %v453_v8 = vpack.c.bf16 %v352_v56, %v352_v56  ;;  %v3607_v56 = vld [vmem:[%s3754_s13 + $0x408] sm:$0xff]  }
  0x51   : > { %3123 = vmatpush3.bf16.msra.mxu1 %v3526_v9  ;;  %3102 = vmatprep.subr.bf16.mxu0 %v3527_v10  ;;  %v455_v9 = vpack.c.bf16 %v359_v61, %v359_v61  ;;  %v3572_v10 = vld [vmem:[%s3754_s13 + $0x380] sm:$0xff]   ;;  %v3613_v61 = vld [vmem:[%s3754_s13 + $0x490] sm:$0xff]  }
  0x52   : > { %3124 = vmatprep.subr.bf16.mxu1 %v3529_v12  ;;  %v3575_v12 = vld [vmem:[%s3754_s13 + $0x3c8] sm:$0xff]  }
  0x54   : > { %3103 = vmatpush3.bf16.msra.mxu0 %v3528_v15  ;;  %v3577_v15 = vld [vmem:[%s3754_s13 + $0x350] sm:$0xff]  }
  0x55   : > { %3125 = vmatpush3.bf16.msra.mxu1 %v3530_v16  ;;  %3104 = vmatprep.subr.bf16.mxu0 %v3531_v19  ;;  %v3579_v16 = vld [vmem:[%s3754_s13 + $0x3d0] sm:$0xff]   ;;  %v3581_v19 = vld [vmem:[%s3754_s13 + $0x358] sm:$0xff]  }
  0x56   : > { %3126 = vmatprep.subr.bf16.mxu1 %v3533_v20  ;;  %v3583_v20 = vld [vmem:[%s3754_s13 + $0x3d8] sm:$0xff]  }
  0x58   : > { %3105 = vmatpush3.bf16.msra.mxu0 %v3532_v23  ;;  %v3585_v23 = vld [vmem:[%s3754_s13 + $0x360] sm:$0xff]  }
  0x59   : > { %3127 = vmatpush3.bf16.msra.mxu1 %v3534_v24  ;;  %3134 = vmatprep.subr.bf16.mxu0 %v3535_v26  ;;  %v3587_v24 = vld [vmem:[%s3754_s13 + $0x3e0] sm:$0xff]  }
  0x5a   : > { %3156 = vmatprep.subr.bf16.mxu1 %v3538_v27  ;;  %v3588_v26 = vld [vmem:[%s3754_s13 + $0x3a0] sm:$0xff]   ;;  %v3589_v27 = vld [vmem:[%s3754_s13 + $0x368] sm:$0xff]  }
  0x5b   : > { %2183 = vmatmul.mubr.bf16.vlgmr.msra.gmra.mrb[4].mxu0 %v449_v29  ;;  %v3590_v29 = vld [vmem:[%s3754_s13 + $0x328] sm:$0xff]  }
  0x5c   : > { %2223 = vmatmul.mubr.bf16.vlgmr.msra.gmra.mrb[4].mxu1 %v451_v30  ;;  %3135 = vmatpush3.bf16.msra.mxu0 %v3537_v28  ;;  %v3591_v28 = vld [vmem:[%s3754_s13 + $0x3e8] sm:$0xff]  }
  0x5d   : > { %3157 = vmatpush3.bf16.msra.mxu1 %v3539_v31  ;;  %3136 = vmatprep.subr.bf16.mxu0 %v3540_v32  ;;  %v3592_v30 = vld [vmem:[%s3754_s13 + $0x3a8] sm:$0xff]   ;;  %v3593_v31 = vld [vmem:[%s3754_s13 + $0x370] sm:$0xff]  }
  0x5e   : > { %3158 = vmatprep.subr.bf16.mxu1 %v3542_v33  ;;  %2262 = vmatprep.mubr.bf16.mxu0 %v454_v0  ;;  %v3595_v32 = vld [vmem:[%s3754_s13 + $0x3f0] sm:$0xff]   ;;  %v300_v33 = vld [vmem:[%s3749_s9 + $0x18] sm:$0xff] }
  0x5f   : > { %2302 = vmatprep.mubr.bf16.mxu1 %v456_v4  ;;  %v3615_v0 = vld [vmem:[%s3754_s13 + $0x418] sm:$0xff]   ;;  %v3619_v4 = vld [vmem:[%s3754_s13 + $0x420] sm:$0xff]  }
  0x60   : > { %3137 = vmatpush3.bf16.msra.mxu0 %v3541_v34  ;;  %v3594_v34 = vld [vmem:[%s3754_s13 + $0x330] sm:$0xff]  }
  0x61   : > { %3159 = vmatpush3.bf16.msra.mxu1 %v3543_v35  ;;  %3138 = vmatprep.subr.bf16.mxu0 %v3544_v36  ;;  %v369_v35 = vrot.slane %v300_v33, %v3792_v43  ;;  %v362_v36 = vcombine.high %v300_v33, %v300_v33  ;;  %v3641_v33 = vld [vmem:[%s3754_s13 + $0x5c8] sm:$0xff]  }
  0x62   : > { %3160 = vmatprep.subr.bf16.mxu1 %v3546_v37  ;;  %v3596_v37 = vld [vmem:[%s3754_s13 + $0x3b0] sm:$0xff]  }
  0x64   : > { %3139 = vmatpush3.bf16.msra.mxu0 %v3545_v38  ;;  %v3597_v38 = vld [vmem:[%s3754_s13 + $0x378] sm:$0xff]  }
  0x65   : > { %3161 = vmatpush3.bf16.msra.mxu1 %v3547_v39  ;;  %3140 = vmatprep.subr.bf16.mxu0 %v3548_v40  ;;  %v377_v39 = vcombine.high %v369_v35, %v369_v35  ;;  %v376_v40 = vrot.slane %v362_v36, %v3792_v43  ;;  %v3643_v36 = vld [vmem:[%s3754_s13 + $0x550] sm:$0xff]  }
  0x66   : > { %3162 = vmatprep.subr.bf16.mxu1 %v3550_v41  ;;  %v3599_v41 = vld [vmem:[%s3754_s13 + $0x3f8] sm:$0xff]  }
  0x68   : > { %3141 = vmatpush3.bf16.msra.mxu0 %v3549_v42  ;;  %v3598_v42 = vld [vmem:[%s3754_s13 + $0x338] sm:$0xff]  }
  0x69   : > { %3163 = vmatpush3.bf16.msra.mxu1 %v3551_v44  ;;  %3142 = vmatprep.subr.bf16.mxu0 %v3552_v45  ;;  %v458_v44 = vpack.c.bf16 %v377_v39, %v377_v39  ;;  %v378_v45 = vcombine.high %v376_v40, %v376_v40  ;;  %v3646_v39 = vld [vmem:[%s3754_s13 + $0x590] sm:$0xff]  }
  0x6a   : > { %3164 = vmatprep.subr.bf16.mxu1 %v3554_v46  ;;  %v3600_v46 = vld [vmem:[%s3754_s13 + $0x3b8] sm:$0xff]  }
  0x6c   : > { %3143 = vmatpush3.bf16.msra.mxu0 %v3553_v47  ;;  %v3601_v47 = vld [vmem:[%s3754_s13 + $0x440] sm:$0xff]  }
  0x6d   : > { %3165 = vmatpush3.bf16.msra.mxu1 %v3555_v48  ;;  %3144 = vmatprep.subr.bf16.mxu0 %v3556_v49  ;;  %v460_v48 = vpack.c.bf16 %v378_v45, %v378_v45  ;;  %v3604_v49 = vld [vmem:[%s3754_s13 + $0x4c0] sm:$0xff]  }
  0x6e   : > { %3166 = vmatprep.subr.bf16.mxu1 %v3558_v50  ;;  %v3603_v50 = vld [vmem:[%s3754_s13 + $0x400] sm:$0xff]  }
  0x6f   : > { %v3651_v45 = vld [vmem:[%s3754_s13 + $0x560] sm:$0xff]  }
  0x70   : > { %3145 = vmatpush3.bf16.msra.mxu0 %v3557_v51  ;;  %v457_v51 = vpack.c.bf16 %v369_v35, %v369_v35  ;;  %v3642_v35 = vld [vmem:[%s3754_s13 + $0x588] sm:$0xff]  }
  0x71   : > { %3167 = vmatpush3.bf16.msra.mxu1 %v3559_v52  ;;  %3146 = vmatprep.subr.bf16.mxu0 %v3560_v53  ;;  %v459_v52 = vpack.c.bf16 %v376_v40, %v376_v40  ;;  %v3605_v53 = vld [vmem:[%s3754_s13 + $0x480] sm:$0xff]   ;;  %v3647_v40 = vld [vmem:[%s3754_s13 + $0x558] sm:$0xff]  }
  0x72   : > { %3168 = vmatprep.subr.bf16.mxu1 %v3562_v55  ;;  %v3608_v55 = vld [vmem:[%s3754_s13 + $0x4c8] sm:$0xff]  }
  0x74   : > { %3147 = vmatpush3.bf16.msra.mxu0 %v3561_v58  ;;  %v3610_v58 = vld [vmem:[%s3754_s13 + $0x450] sm:$0xff]  }
  0x75   : > { %3169 = vmatpush3.bf16.msra.mxu1 %v3563_v59  ;;  %3148 = vmatprep.subr.bf16.mxu0 %v3564_v62  ;;  %v3612_v59 = vld [vmem:[%s3754_s13 + $0x4d0] sm:$0xff]   ;;  %v3614_v62 = vld [vmem:[%s3754_s13 + $0x458] sm:$0xff]  }
  0x76   : > { %3170 = vmatprep.subr.bf16.mxu1 %v3566_v63  ;;  %v3616_v63 = vld [vmem:[%s3754_s13 + $0x4d8] sm:$0xff]  }
  0x78   : > { %3149 = vmatpush3.bf16.msra.mxu0 %v3565_v2  ;;  %v3618_v2 = vld [vmem:[%s3754_s13 + $0x460] sm:$0xff]  }
  0x79   : > { %3171 = vmatpush3.bf16.msra.mxu1 %v3567_v3  ;;  %3178 = vmatprep.subr.bf16.mxu0 %v3568_v5  ;;  %v3620_v3 = vld [vmem:[%s3754_s13 + $0x4e0] sm:$0xff]  }
  0x7a   : > { %3200 = vmatprep.subr.bf16.mxu1 %v3571_v6  ;;  %v3621_v5 = vld [vmem:[%s3754_s13 + $0x4a0] sm:$0xff]   ;;  %v3622_v6 = vld [vmem:[%s3754_s13 + $0x468] sm:$0xff]  }
  0x7b   : > { %2263 = vmatmul.mubr.bf16.vlgmr.msra.gmra.mrb[8].mxu0 %v453_v8  ;;  %v3623_v8 = vld [vmem:[%s3754_s13 + $0x428] sm:$0xff]  }
  0x7c   : > { %2303 = vmatmul.mubr.bf16.vlgmr.msra.gmra.mrb[8].mxu1 %v455_v9  ;;  %3179 = vmatpush3.bf16.msra.mxu0 %v3570_v7  ;;  %v3624_v7 = vld [vmem:[%s3754_s13 + $0x4e8] sm:$0xff]  }
  0x7d   : > { %3201 = vmatpush3.bf16.msra.mxu1 %v3572_v10  ;;  %3180 = vmatprep.subr.bf16.mxu0 %v3573_v11  ;;  %v3625_v9 = vld [vmem:[%s3754_s13 + $0x4a8] sm:$0xff]   ;;  %v3626_v10 = vld [vmem:[%s3754_s13 + $0x470] sm:$0xff]  }
  0x7e   : > { %3202 = vmatprep.subr.bf16.mxu1 %v3575_v12  ;;  %2342 = vmatprep.mubr.bf16.mxu0 %v458_v44  ;;  %v3628_v11 = vld [vmem:[%s3754_s13 + $0x4f0] sm:$0xff]   ;;  %v301_v12 = vld [vmem:[%s3749_s9 + $0x20] sm:$0xff]  ;;  %v3650_v44 = vld [vmem:[%s3754_s13 + $0x598] sm:$0xff]  }
  0x7f   : > { %2382 = vmatprep.mubr.bf16.mxu1 %v460_v48  ;;  %v3654_v48 = vld [vmem:[%s3754_s13 + $0x5a0] sm:$0xff]  }
  0x80   : > { %3181 = vmatpush3.bf16.msra.mxu0 %v3574_v13  ;;  %v3627_v13 = vld [vmem:[%s3754_s13 + $0x430] sm:$0xff]  }
  0x81   : > { %3203 = vmatpush3.bf16.msra.mxu1 %v3576_v14  ;;  %3182 = vmatprep.subr.bf16.mxu0 %v3577_v15  ;;  %v386_v14 = vrot.slane %v301_v12, %v3792_v43  ;;  %v379_v15 = vcombine.high %v301_v12, %v301_v12  ;;  %v3673_v12 = vld [vmem:[%s3754_s13 + $0x628] sm:$0xff]  }
  0x82   : > { %3204 = vmatprep.subr.bf16.mxu1 %v3579_v16  ;;  %v3629_v16 = vld [vmem:[%s3754_s13 + $0x4b0] sm:$0xff]  }
  0x84   : > { %3183 = vmatpush3.bf16.msra.mxu0 %v3578_v17  ;;  %v3630_v17 = vld [vmem:[%s3754_s13 + $0x478] sm:$0xff]  }
  0x85   : > { %3205 = vmatpush3.bf16.msra.mxu1 %v3580_v18  ;;  %3184 = vmatprep.subr.bf16.mxu0 %v3581_v19  ;;  %v394_v18 = vcombine.high %v386_v14, %v386_v14  ;;  %v393_v19 = vrot.slane %v379_v15, %v3792_v43  ;;  %v2838_v15 = vld.sshfl [vmem:[%s3749_s9 + $0x30] sm:$0x3 pattern:$0x76325410] }
  0x86   : > { %3206 = vmatprep.subr.bf16.mxu1 %v3583_v20  ;;  %v3632_v20 = vld [vmem:[%s3754_s13 + $0x4f8] sm:$0xff]  }
  0x88   : > { %3185 = vmatpush3.bf16.msra.mxu0 %v3582_v21  ;;  %v3631_v21 = vld [vmem:[%s3754_s13 + $0x438] sm:$0xff]  }
  0x89   : > { %3207 = vmatpush3.bf16.msra.mxu1 %v3584_v22  ;;  %3186 = vmatprep.subr.bf16.mxu0 %v3585_v23  ;;  %v462_v22 = vpack.c.bf16 %v394_v18, %v394_v18  ;;  %v395_v23 = vcombine.high %v393_v19, %v393_v19 }
  0x8a   : > { %3208 = vmatprep.subr.bf16.mxu1 %v3587_v24  ;;  %v3633_v24 = vld [vmem:[%s3754_s13 + $0x4b8] sm:$0xff]  }
  0x8c   : > { %3187 = vmatpush3.bf16.msra.mxu0 %v3586_v25  ;;  %v3634_v25 = vld [vmem:[%s3754_s13 + $0x540] sm:$0xff]  }
  0x8d   : > { %3209 = vmatpush3.bf16.msra.mxu1 %v3588_v26  ;;  %3188 = vmatprep.subr.bf16.mxu0 %v3589_v27  ;;  %v464_v26 = vpack.c.bf16 %v395_v23, %v395_v23  ;;  %v3637_v27 = vld [vmem:[%s3754_s13 + $0x5c0] sm:$0xff]  }
  0x8e   : > { %3210 = vmatprep.subr.bf16.mxu1 %v3591_v28  ;;  %v3636_v28 = vld [vmem:[%s3754_s13 + $0x500] sm:$0xff]  }
  0x90   : > { %3189 = vmatpush3.bf16.msra.mxu0 %v3590_v29  ;;  %v461_v29 = vpack.c.bf16 %v386_v14, %v386_v14  ;;  %v3675_v14 = vld [vmem:[%s3754_s13 + $0x638] sm:$0xff]  }
  0x91   : > { %3211 = vmatpush3.bf16.msra.mxu1 %v3592_v30  ;;  %3190 = vmatprep.subr.bf16.mxu0 %v3593_v31  ;;  %v463_v30 = vpack.c.bf16 %v393_v19, %v393_v19  ;;  %v3638_v31 = vld [vmem:[%s3754_s13 + $0x580] sm:$0xff]  }
  0x92   : > { %3212 = vmatprep.subr.bf16.mxu1 %v3595_v32  ;;  %v3639_v32 = vld [vmem:[%s3754_s13 + $0x548] sm:$0xff]  }
  0x94   : > { %3191 = vmatpush3.bf16.msra.mxu0 %v3594_v34  ;;  %v3640_v34 = vld [vmem:[%s3754_s13 + $0x508] sm:$0xff]  }
  0x95   : > { %3213 = vmatpush3.bf16.msra.mxu1 %v3596_v37  ;;  %3192 = vmatprep.subr.bf16.mxu0 %v3597_v38  ;;  %v3645_v37 = vld [vmem:[%s3754_s13 + $0x5d0] sm:$0xff]  }
  0x96   : > { %3214 = vmatprep.subr.bf16.mxu1 %v3599_v41  ;;  %v3644_v38 = vld [vmem:[%s3754_s13 + $0x510] sm:$0xff]   ;;  %v3649_v41 = vld [vmem:[%s3754_s13 + $0x5d8] sm:$0xff]  }
  0x98   : > { %3193 = vmatpush3.bf16.msra.mxu0 %v3598_v42  ;;  %v3648_v42 = vld [vmem:[%s3754_s13 + $0x518] sm:$0xff]  }
  0x99   : > { %3215 = vmatpush3.bf16.msra.mxu1 %v3600_v46  ;;  %3222 = vmatprep.subr.bf16.mxu0 %v3601_v47  ;;  %v3653_v46 = vld [vmem:[%s3754_s13 + $0x5e0] sm:$0xff]  }
  0x9a   : > { %3244 = vmatprep.subr.bf16.mxu1 %v3604_v49  ;;  %v3652_v47 = vld [vmem:[%s3754_s13 + $0x520] sm:$0xff]   ;;  %v3655_v49 = vld [vmem:[%s3754_s13 + $0x568] sm:$0xff]  }
  0x9b   : > { %2343 = vmatmul.mubr.bf16.vlgmr.msra.gmra.mrb[12].mxu0 %v457_v51  ;;  %v3656_v51 = vld [vmem:[%s3754_s13 + $0x528] sm:$0xff]  }
  0x9c   : > { %2383 = vmatmul.mubr.bf16.vlgmr.msra.gmra.mrb[12].mxu1 %v459_v52  ;;  %3223 = vmatpush3.bf16.msra.mxu0 %v3603_v50  ;;  %v3657_v50 = vld [vmem:[%s3754_s13 + $0x5e8] sm:$0xff]  }
  0x9d   : > { %3245 = vmatpush3.bf16.msra.mxu1 %v3605_v53  ;;  %3224 = vmatprep.subr.bf16.mxu0 %v3606_v54  ;;  %v3658_v52 = vld [vmem:[%s3754_s13 + $0x5a8] sm:$0xff]   ;;  %v3659_v53 = vld [vmem:[%s3754_s13 + $0x570] sm:$0xff]  }
  0x9e   : > { %3246 = vmatprep.subr.bf16.mxu1 %v3608_v55  ;;  %2422 = vmatprep.mubr.bf16.mxu0 %v462_v22  ;;  %v3661_v54 = vld [vmem:[%s3754_s13 + $0x5f0] sm:$0xff]   ;;  %v302_v55 = vld [vmem:[%s3749_s9 + $0x28] sm:$0xff] }
  0x9f   : > { %2462 = vmatprep.mubr.bf16.mxu1 %v464_v26 }
  0xa0   : > { %3225 = vmatpush3.bf16.msra.mxu0 %v3607_v56  ;;  %v3660_v56 = vld [vmem:[%s3754_s13 + $0x530] sm:$0xff]  }
  0xa1   : > { %3247 = vmatpush3.bf16.msra.mxu1 %v3609_v57  ;;  %3226 = vmatprep.subr.bf16.mxu0 %v3610_v58  ;;  %v403_v57 = vrot.slane %v302_v55, %v3792_v43  ;;  %v396_v58 = vcombine.high %v302_v55, %v302_v55 }
  0xa2   : > { %3248 = vmatprep.subr.bf16.mxu1 %v3612_v59  ;;  %v3662_v59 = vld [vmem:[%s3754_s13 + $0x5b0] sm:$0xff]  }
  0xa4   : > { %3227 = vmatpush3.bf16.msra.mxu0 %v3611_v60  ;;  %v3663_v60 = vld [vmem:[%s3754_s13 + $0x578] sm:$0xff]  }
  0xa5   : > { %3249 = vmatpush3.bf16.msra.mxu1 %v3613_v61  ;;  %3228 = vmatprep.subr.bf16.mxu0 %v3614_v62  ;;  %v411_v61 = vcombine.high %v403_v57, %v403_v57  ;;  %v410_v62 = vrot.slane %v396_v58, %v3792_v43  ;;  %v3668_v43 = vld [vmem:[%s3754_s13 + $0x600] sm:$0xff]  }
  0xa6   : > { %3250 = vmatprep.subr.bf16.mxu1 %v3616_v63  ;;  %v3665_v63 = vld [vmem:[%s3754_s13 + $0x5f8] sm:$0xff]  }
  0xa8   : > { %3229 = vmatpush3.bf16.msra.mxu0 %v3615_v0  ;;  %v466_v0 = vpack.c.bf16 %v411_v61, %v411_v61 }
  0xa9   : > { %3251 = vmatpush3.bf16.msra.mxu1 %v3617_v1  ;;  %3230 = vmatprep.subr.bf16.mxu0 %v3618_v2  ;;  %v412_v1 = vcombine.high %v410_v62, %v410_v62  ;;  %v3664_v2 = vld [vmem:[%s3754_s13 + $0x538] sm:$0xff]  }
  0xaa   : > { %3252 = vmatprep.subr.bf16.mxu1 %v3620_v3  ;;  %v3666_v3 = vld [vmem:[%s3754_s13 + $0x5b8] sm:$0xff]  }
  0xac   : > { %3231 = vmatpush3.bf16.msra.mxu0 %v3619_v4  ;;  %v468_v4 = vpack.c.bf16 %v412_v1, %v412_v1 }
  0xad   : > { %3253 = vmatpush3.bf16.msra.mxu1 %v3621_v5  ;;  %3232 = vmatprep.subr.bf16.mxu0 %v3622_v6  ;;  %v465_v5 = vpack.c.bf16 %v403_v57, %v403_v57  ;;  %v467_v6 = vpack.c.bf16 %v410_v62, %v410_v62 }
  0xae   : > { %3254 = vmatprep.subr.bf16.mxu1 %v3624_v7  ;;  %v3686_v7 = vmov 0.0  }
  0xb0   : > { %3233 = vmatpush3.bf16.msra.mxu0 %v3623_v8  ;;  %v3669_v8 = vld [vmem:[%s3754_s13 + $0x608] sm:$0xff]  }
  0xb1   : > { %3255 = vmatpush3.bf16.msra.mxu1 %v3625_v9  ;;  %3234 = vmatprep.subr.bf16.mxu0 %v3626_v10  ;;  %v3670_v9 = vld [vmem:[%s3754_s13 + $0x610] sm:$0xff]   ;;  %v3671_v10 = vld [vmem:[%s3754_s13 + $0x618] sm:$0xff]  }
  0xb2   : > { %3256 = vmatprep.subr.bf16.mxu1 %v3628_v11  ;;  %v3672_v11 = vld [vmem:[%s3754_s13 + $0x620] sm:$0xff]  }
  0xb4   : > { %3235 = vmatpush3.bf16.msra.mxu0 %v3627_v13  ;;  %v3674_v13 = vld [vmem:[%s3754_s13 + $0x630] sm:$0xff]  }
  0xb5   : > { %3257 = vmatpush3.bf16.msra.mxu1 %v3629_v16  ;;  %3236 = vmatprep.subr.bf16.mxu0 %v3630_v17  ;;  %v469_v16 = vpack.c.bf16 %v2838_v15, %v2838_v15 }
  0xb6   : > { %3258 = vmatprep.subr.bf16.mxu1 %v3632_v20 }
  0xb8   : > { %3237 = vmatpush3.bf16.msra.mxu0 %v3631_v21 }
  0xb9   : > { %3259 = vmatpush3.bf16.msra.mxu1 %v3633_v24  ;;  %3266 = vmatprep.subr.bf16.mxu0 %v3634_v25 }
  0xba   : > { %3288 = vmatprep.subr.bf16.mxu1 %v3637_v27 }
  0xbb   : > { %2423 = vmatmul.mubr.bf16.vlgmr.msra.gmra.mrb[16].mxu0 %v461_v29 }
  0xbc   : > { %2463 = vmatmul.mubr.bf16.vlgmr.msra.gmra.mrb[16].mxu1 %v463_v30  ;;  %3267 = vmatpush3.bf16.msra.mxu0 %v3636_v28 }
  0xbd   : > { %3289 = vmatpush3.bf16.msra.mxu1 %v3638_v31  ;;  %3268 = vmatprep.subr.bf16.mxu0 %v3639_v32 }
  0xbe   : > { %3290 = vmatprep.subr.bf16.mxu1 %v3641_v33  ;;  %2502 = vmatprep.mubr.bf16.mxu0 %v466_v0 }
  0xbf   : > { %2542 = vmatprep.mubr.bf16.mxu1 %v468_v4 }
  0xc0   : > { %3269 = vmatpush3.bf16.msra.mxu0 %v3640_v34 }
  0xc1   : > { %3291 = vmatpush3.bf16.msra.mxu1 %v3642_v35  ;;  %3270 = vmatprep.subr.bf16.mxu0 %v3643_v36 }
  0xc2   : > { %3292 = vmatprep.subr.bf16.mxu1 %v3645_v37 }
  0xc4   : > { %3271 = vmatpush3.bf16.msra.mxu0 %v3644_v38 }
  0xc5   : > { %3293 = vmatpush3.bf16.msra.mxu1 %v3646_v39  ;;  %3272 = vmatprep.subr.bf16.mxu0 %v3647_v40 }
  0xc6   : > { %3294 = vmatprep.subr.bf16.mxu1 %v3649_v41 }
  0xc8   : > { %3273 = vmatpush3.bf16.msra.mxu0 %v3648_v42 }
  0xc9   : > { %3295 = vmatpush3.bf16.msra.mxu1 %v3650_v44  ;;  %3274 = vmatprep.subr.bf16.mxu0 %v3651_v45 }
  0xca   : > { %3296 = vmatprep.subr.bf16.mxu1 %v3653_v46 }
  0xcc   : > { %3275 = vmatpush3.bf16.msra.mxu0 %v3652_v47 }
  0xcd   : > { %3297 = vmatpush3.bf16.msra.mxu1 %v3654_v48  ;;  %3276 = vmatprep.subr.bf16.mxu0 %v3655_v49 }
  0xce   : > { %3298 = vmatprep.subr.bf16.mxu1 %v3657_v50 }
  0xd0   : > { %3277 = vmatpush3.bf16.msra.mxu0 %v3656_v51 }
  0xd1   : > { %3299 = vmatpush3.bf16.msra.mxu1 %v3658_v52  ;;  %3278 = vmatprep.subr.bf16.mxu0 %v3659_v53 }
  0xd2   : > { %3300 = vmatprep.subr.bf16.mxu1 %v3661_v54 }
  0xd4   : > { %3279 = vmatpush3.bf16.msra.mxu0 %v3660_v56 }
  0xd5   : > { %3301 = vmatpush3.bf16.msra.mxu1 %v3662_v59  ;;  %3280 = vmatprep.subr.bf16.mxu0 %v3663_v60 }
  0xd6   : > { %3302 = vmatprep.subr.bf16.mxu1 %v3665_v63 }
  0xd8   : > { %3281 = vmatpush3.bf16.msra.mxu0 %v3664_v2 }
  0xd9   : > { %3303 = vmatpush3.bf16.msra.mxu1 %v3666_v3  ;;  %3345 = vmatprep.subr.bf16.mxu0 %v3686_v7 }
  0xdb   : > { %2503 = vmatmul.mubr.bf16.vlgmr.msra.gmra.mrb[20].mxu0 %v465_v5 }
  0xdc   : > { %2543 = vmatmul.mubr.bf16.vlgmr.msra.gmra.mrb[20].mxu1 %v467_v6  ;;  %3346 = vmatpush3.bf16.msra.mxu0 %v3668_v43 }
  0xdd   : > { %3361 = vmatprep.mubr.msk.bf16.mxu0 %vm3687_vm0, %v3686_v7  ;;  %3347 = vmatprep.subr.bf16.mxu0 %v3686_v7 }
  0xe0   : > { %3348 = vmatpush3.bf16.msra.mxu0 %v3669_v8 }
  0xe1   : > { %3349 = vmatprep.subr.bf16.mxu0 %v3686_v7 }
  0xe4   : > { %3350 = vmatpush3.bf16.msra.mxu0 %v3670_v9 }
  0xe5   : > { %3351 = vmatprep.subr.bf16.mxu0 %v3686_v7 }
  0xe8   : > { %3352 = vmatpush3.bf16.msra.mxu0 %v3671_v10 }
  0xe9   : > { %3353 = vmatprep.subr.bf16.mxu0 %v3686_v7 }
  0xec   : > { %3354 = vmatpush3.bf16.msra.mxu0 %v3672_v11 }
  0xed   : > { %3355 = vmatprep.subr.bf16.mxu0 %v3686_v7 }
  0xf0   : > { %3356 = vmatpush3.bf16.msra.mxu0 %v3673_v12 }
  0xf1   : > { %3357 = vmatprep.subr.bf16.mxu0 %v3686_v7 }
  0xf4   : > { %3358 = vmatpush3.bf16.msra.mxu0 %v3674_v13 }
  0xf5   : > { %3359 = vmatprep.subr.bf16.mxu0 %v3686_v7 }
  0xf8   : > { %3360 = vmatpush3.bf16.msra.mxu0 %v3675_v14 }
  0xfb   : > { %3362 = vmatmul.mubr.bf16.vlgmr.msra.gmra.mrb[24].mxu0 %v469_v16 }
 0x10e   : > { %v3062_v17 = vpop.f32.mrb[0].mxu0 }
 0x10f   : > { %v3084_v18 = vpop.f32.mrb[0].mxu1  ;;  %v3063_v19 = vpop.f32.mrb[1].mxu0 }
 0x110   : > { %v3085_v20 = vpop.f32.mrb[1].mxu1  ;;  %v3064_v21 = vadd.f32 %v3063_v19, %v3062_v17  ;;  %v3065_v23 = vpop.f32.mrb[2].mxu0 }
 0x111   : > { %v3086_v22 = vadd.f32 %v3085_v20, %v3084_v18  ;;  %v3087_v24 = vpop.f32.mrb[2].mxu1  ;;  %v3066_v25 = vpop.f32.mrb[3].mxu0 }
 0x112   : > { %v3088_v26 = vpop.f32.mrb[3].mxu1  ;;  %v296_v24 = vld [vmem:[#allocation2] sm:$0x3] }
 0x113   : > { %v2145_v27 = vadd.f32 %v3086_v22, %v3064_v21 }
 0x12e   : > { %v3106_v28 = vpop.f32.mrb[4].mxu0 }
 0x12f   : > { %v3128_v29 = vpop.f32.mrb[4].mxu1  ;;  %v3107_v30 = vpop.f32.mrb[5].mxu0 }
 0x130   : > { %v3129_v31 = vpop.f32.mrb[5].mxu1  ;;  %v3108_v32 = vadd.f32 %v3107_v30, %v3106_v28  ;;  %v3109_v33 = vpop.f32.mrb[6].mxu0 }
 0x131   : > { %v3130_v34 = vadd.f32 %v3129_v31, %v3128_v29  ;;  %v3131_v35 = vpop.f32.mrb[6].mxu1  ;;  %v3110_v36 = vpop.f32.mrb[7].mxu0  ;;  %v2606_v31 = vld [vmem:[%s4066_s3] sm:$0xff] (!%p3039_p6)  ;;  %v2608_v33 = vld [vmem:[%s4066_s3 + $0x10] sm:$0xff] (!%p3039_p6) }
 0x132   : > { %v3132_v37 = vpop.f32.mrb[7].mxu1  ;;  %v2185_v38 = vadd.f32 %v3108_v32, %v2145_v27  ;;  %v2607_v32 = vld [vmem:[%s4066_s3 + $0x8] sm:$0xff] (!%p3039_p6)  ;;  %v2609_v36 = vld [vmem:[%s4066_s3 + $0x18] sm:$0xff] (!%p3039_p6) }
 0x133   : > { %v3420_v35 = vpack.c.bf16 (!%p3039_p6), %v2607_v32, %v2606_v31  ;;  %v3690_v37 = vmov (!%p3039_p6), 0.0  }
 0x134   : > { %v2225_v39 = vadd.f32 %v3130_v34, %v2185_v38  ;;  %v3688_v34 = vmov (!%p3039_p6), 0.0|0.0   ;;  %3397 = vmatprep.mubr.msk.f32.mxu0 (!%p3039_p6), %vm3689_vm1, %v3690_v37  ;;  %3416 = vmatprep.mubr.msk.f32.mxu1 (!%p3039_p6), %vm3689_vm1, %v3690_v37  ;;  %v3423_v38 = vpack.c.bf16 (!%p3039_p6), %v2609_v36, %v2608_v33 }
 0x135   : > { %3419 = vmatprep.subr.bf16.mxu0 (!%p3039_p6), %v3688_v34  ;;  %3443 = vmatprep.subr.bf16.mxu1 (!%p3039_p6), %v3688_v34 }
 0x136   : > { %3421 = vmatpush3.bf16.msra.mxu0 (!%p3039_p6), %v3420_v35 }
 0x137   : > { %3422 = vmatprep.subr.bf16.mxu0 (!%p3039_p6), %v3688_v34 }
 0x13a   : > { %3424 = vmatpush3.bf16.msra.mxu0 (!%p3039_p6), %v3423_v38 }
 0x13b   : > { %3425 = vmatprep.subr.bf16.mxu0 (!%p3039_p6), %v3688_v34 }
 0x14e   : > { %v3150_v40 = vpop.f32.mrb[8].mxu0 }
 0x14f   : > { %v3172_v41 = vpop.f32.mrb[8].mxu1  ;;  %v3151_v42 = vpop.f32.mrb[9].mxu0 }
 0x150   : > { %v3173_v44 = vpop.f32.mrb[9].mxu1  ;;  %v3152_v45 = vadd.f32 %v3151_v42, %v3150_v40  ;;  %v3153_v46 = vpop.f32.mrb[10].mxu0  ;;  %v2611_v40 = vld [vmem:[%s4066_s3 + $0x28] sm:$0xff] (!%p3039_p6) }
 0x151   : > { %v3174_v47 = vadd.f32 %v3173_v44, %v3172_v41  ;;  %v3175_v48 = vpop.f32.mrb[10].mxu1  ;;  %v3154_v49 = vpop.f32.mrb[11].mxu0  ;;  %v2700_v41 = vld [vmem:[%s4068_s5] sm:$0xff] (!%p3039_p6)  ;;  %v2701_v42 = vld [vmem:[%s4068_s5 + $0x8] sm:$0xff] (!%p3039_p6)  ;;  %v2702_v44 = vld [vmem:[%s4068_s5 + $0x10] sm:$0xff] (!%p3039_p6) }
 0x152   : > { %v3176_v50 = vpop.f32.mrb[11].mxu1  ;;  %v2265_v51 = vadd.f32 %v3152_v45, %v2225_v39  ;;  %v2610_v39 = vld [vmem:[%s4066_s3 + $0x20] sm:$0xff] (!%p3039_p6)  ;;  %v3444_v46 = vpack.c.bf16 (!%p3039_p6), %v2701_v42, %v2700_v41  ;;  %v2612_v48 = vld [vmem:[%s4066_s3 + $0x30] sm:$0xff] (!%p3039_p6)  ;;  %v2613_v49 = vld [vmem:[%s4066_s3 + $0x38] sm:$0xff] (!%p3039_p6) }
 0x153   : > { %v3426_v45 = vpack.c.bf16 (!%p3039_p6), %v2611_v40, %v2610_v39 }
 0x154   : > { %v2305_v52 = vadd.f32 %v3174_v47, %v2265_v51  ;;  %v2703_v47 = vld [vmem:[%s4068_s5 + $0x18] sm:$0xff] (!%p3039_p6)  ;;  %3445 = vmatpush3.bf16.msra.mxu1 (!%p3039_p6), %v3444_v46  ;;  %v2704_v51 = vld [vmem:[%s4068_s5 + $0x20] sm:$0xff] (!%p3039_p6) }
 0x155   : > { %v3447_v50 = vpack.c.bf16 (!%p3039_p6), %v2703_v47, %v2702_v44  ;;  %3446 = vmatprep.subr.bf16.mxu1 (!%p3039_p6), %v3688_v34  ;;  %3427 = vmatpush3.bf16.msra.mxu0 (!%p3039_p6), %v3426_v45 }
 0x156   : > { %3428 = vmatprep.subr.bf16.mxu0 (!%p3039_p6), %v3688_v34 }
 0x158   : > { %3448 = vmatpush3.bf16.msra.mxu1 (!%p3039_p6), %v3447_v50 }
 0x159   : > { %3449 = vmatprep.subr.bf16.mxu1 (!%p3039_p6), %v3688_v34 }
 0x16e   : > { %v3194_v53 = vpop.f32.mrb[12].mxu0 }
 0x16f   : > { %v3216_v54 = vpop.f32.mrb[12].mxu1  ;;  %v3195_v55 = vpop.f32.mrb[13].mxu0 }
 0x170   : > { %v3217_v56 = vpop.f32.mrb[13].mxu1  ;;  %v3196_v57 = vadd.f32 %v3195_v55, %v3194_v53  ;;  %v3197_v58 = vpop.f32.mrb[14].mxu0  ;;  %v3429_v53 = vpack.c.bf16 (!%p3039_p6), %v2613_v49, %v2612_v48  ;;  %v2615_v55 = vld [vmem:[%s4066_s3 + $0x48] sm:$0xff] (!%p3039_p6) }
 0x171   : > { %v3218_v59 = vadd.f32 %v3217_v56, %v3216_v54  ;;  %v3219_v60 = vpop.f32.mrb[14].mxu1  ;;  %v3198_v61 = vpop.f32.mrb[15].mxu0  ;;  %v2614_v54 = vld [vmem:[%s4066_s3 + $0x40] sm:$0xff] (!%p3039_p6)  ;;  %v2616_v58 = vld [vmem:[%s4066_s3 + $0x50] sm:$0xff] (!%p3039_p6) }
 0x172   : > { %v3220_v62 = vpop.f32.mrb[15].mxu1  ;;  %v2345_v63 = vadd.f32 %v3196_v57, %v2305_v52  ;;  %v2705_v52 = vld [vmem:[%s4068_s5 + $0x28] sm:$0xff] (!%p3039_p6)  ;;  %3430 = vmatpush3.bf16.msra.mxu0 (!%p3039_p6), %v3429_v53  ;;  %v3432_v57 = vpack.c.bf16 (!%p3039_p6), %v2615_v55, %v2614_v54  ;;  %v2618_v61 = vld [vmem:[%s4066_s3 + $0x60] sm:$0xff] (!%p3039_p6) }
 0x173   : > { %v3450_v56 = vpack.c.bf16 (!%p3039_p6), %v2705_v52, %v2704_v51  ;;  %3431 = vmatprep.subr.bf16.mxu0 (!%p3039_p6), %v3688_v34  ;;  %v2619_v62 = vld [vmem:[%s4066_s3 + $0x68] sm:$0xff] (!%p3039_p6) }
 0x174   : > { %v2385_v0 = vadd.f32 %v3218_v59, %v2345_v63  ;;  %v2617_v59 = vld [vmem:[%s4066_s3 + $0x58] sm:$0xff] (!%p3039_p6)  ;;  %v3438_v63 = vpack.c.bf16 (!%p3039_p6), %v2619_v62, %v2618_v61 }
 0x175   : > { %3451 = vmatpush3.bf16.msra.mxu1 (!%p3039_p6), %v3450_v56  ;;  %v3435_v60 = vpack.c.bf16 (!%p3039_p6), %v2617_v59, %v2616_v58 }
 0x176   : > { %3452 = vmatprep.subr.bf16.mxu1 (!%p3039_p6), %v3688_v34  ;;  %3433 = vmatpush3.bf16.msra.mxu0 (!%p3039_p6), %v3432_v57 }
 0x177   : > { %3434 = vmatprep.subr.bf16.mxu0 (!%p3039_p6), %v3688_v34 }
 0x17a   : > { %3436 = vmatpush3.bf16.msra.mxu0 (!%p3039_p6), %v3435_v60 }
 0x17b   : > { %3437 = vmatprep.subr.bf16.mxu0 (!%p3039_p6), %v3688_v34 }
 0x17e   : > { %3439 = vmatpush3.bf16.msra.mxu0 (!%p3039_p6), %v3438_v63 }
 0x17f   : > { %3440 = vmatprep.subr.bf16.mxu0 (!%p3039_p6), %v3688_v34 }
 0x18e   : > { %v3238_v1 = vpop.f32.mrb[16].mxu0 }
 0x18f   : > { %v3260_v2 = vpop.f32.mrb[16].mxu1  ;;  %v3239_v3 = vpop.f32.mrb[17].mxu0 }
 0x190   : > { %v3261_v4 = vpop.f32.mrb[17].mxu1  ;;  %v3240_v5 = vadd.f32 %v3239_v3, %v3238_v1  ;;  %v3241_v6 = vpop.f32.mrb[18].mxu0  ;;  %v3040_v1 = vld [vmem:[%s4065_s2] ss:$0 sm:$0xff] (!%p3039_p6)  ;;  %v2621_v3 = vld [vmem:[%s4066_s3 + $0x78] sm:$0xff] (!%p3039_p6) }
 0x191   : > { %v3262_v43 = vadd.f32 %v3261_v4, %v3260_v2  ;;  %v3263_v7 = vpop.f32.mrb[18].mxu1  ;;  %v3242_v8 = vpop.f32.mrb[19].mxu0  ;;  %v2620_v2 = vld [vmem:[%s4066_s3 + $0x70] sm:$0xff] (!%p3039_p6) }
 0x192   : > { %v3264_v9 = vpop.f32.mrb[19].mxu1  ;;  %v2425_v10 = vadd.f32 %v3240_v5, %v2385_v0  ;;  %v3441_v5 = vpack.c.bf16 (!%p3039_p6), %v2621_v3, %v2620_v2  ;;  %v2707_v7 = vld [vmem:[%s4068_s5 + $0x38] sm:$0xff] (!%p3039_p6) }
 0x193   : > { %v3041_v9 = vld [vmem:[%s4067_s4] ss:$0 sm:$0xff] (!%p3039_p6) }
 0x194   : > { %v2465_v11 = vadd.f32 %v3262_v43, %v2425_v10  ;;  %3442 = vmatpush3.bf16.msra.mxu0 (!%p3039_p6), %v3441_v5  ;;  %v2706_v43 = vld [vmem:[%s4068_s5 + $0x30] sm:$0xff] (!%p3039_p6) }
 0x195   : > { %v3453_v8 = vpack.c.bf16 (!%p3039_p6), %v2707_v7, %v2706_v43 }
 0x197   : > { %3454 = vmatpush3.bf16.msra.mxu1 (!%p3039_p6), %v3453_v8 }
 0x1ae   : > { %v3282_v12 = vpop.f32.mrb[20].mxu0 }
 0x1af   : > { %v3304_v13 = vpop.f32.mrb[20].mxu1  ;;  %v3283_v14 = vpop.f32.mrb[21].mxu0 }
 0x1b0   : > { %v3305_v15 = vpop.f32.mrb[21].mxu1  ;;  %v3284_v16 = vadd.f32 %v3283_v14, %v3282_v12  ;;  %v3285_v17 = vpop.f32.mrb[22].mxu0  ;;  %v3042_v14 = vld [vmem:[#allocation3] ss:$0 sm:$0xff] (!%p3039_p6) }
 0x1b1   : > { %v3306_v18 = vadd.f32 %v3305_v15, %v3304_v13  ;;  %v3307_v19 = vpop.f32.mrb[22].mxu1  ;;  %v3286_v20 = vpop.f32.mrb[23].mxu0 }
 0x1b2   : > { %v3308_v21 = vpop.f32.mrb[23].mxu1  ;;  %v2505_v22 = vadd.f32 %v3284_v16, %v2465_v11 }
 0x1b4   : > { %v2545_v23 = vadd.f32 %v3306_v18, %v2505_v22 }
 0x1cd   : > { %2595 = sbr.rel (%p3039_p6) target bundleno = 910 (0x38e), region = 56 }
 0x1ce   : > { %v2584_v25 = vpop.f32.mrb[24].mxu0 }
 0x1cf   : > { %v2585_v26 = vadd.f32 %v2584_v25, %v2545_v23  ;;  %v3363_v27 = vpop.f32.mrb[25].mxu0 }
 0x1d0   : > { %v2587_v28 = vpop.f32.mrb[26].mxu0 }
 0x1d1   : > { %v2590_v29 = vadd.f32 %v2585_v26, %v296_v24  ;;  %v3364_v30 = vpop.f32.mrb[27].mxu0 }
 0x1d3   : > { %2591 = vst [vmem:[#allocation2] sm:$0x3] %v2590_v29 }
 0x1da   : > { %v2596_v0 = vld [vmem:[#allocation2] sm:$0x3] }
 0x1db   : > { %v2604_v4 = vadd.f32 %v3040_v1, %v2596_v0 }
 0x1dd   : > { %v2605_v6 = vmax.f32 %v2604_v4, 0.0 }
 0x1df   : > { %3398 = vmatmul.mubr.f32.vlgmr.msra.gmra.mrb[0].mxu0 %v2605_v6 }
 0x2b2   : > { %v2695_v10 = vpop.f32.mrb[0].mxu0 }
 0x2b3   : > { %v2696_v11 = vadd.f32 %v3041_v9, %v2695_v10  ;;  %v3399_v12 = vpop.f32.mrb[1].mxu0 }
 0x2b5   : > { %v2699_v13 = vmax.f32 %v2696_v11, 0.0 }
 0x2b7   : > { %3417 = vmatmul.mubr.msk.f32.vlgmr.msra.gmra.mrb[0].mxu1 %vm2715_vm2, %v2699_v13 }
 0x38a   : > { %v2785_v15 = vpop.f32.mrb[0].mxu1 }
 0x38b   : > { %v2786_v16 = vadd.f32 %v3042_v14, %v2785_v15  ;;  %v3418_v17 = vpop.f32.mrb[1].mxu1 }
 0x38d   : > { %2790 = vst.msk [vmem:[%s4070_s7] sm:$0x3] %vm2789_vm3, %v2786_v16 }
 0x38e PF: > { %s19_s26 = sadd.s32 1, %s3682_s26  }
 0x38f   : > { %p16_p7 = scmp.ge.s32.totalorder %s19_s26, 6  }
 0x391   :  { %18 = sbr.rel (!%p16_p7) target bundleno = 3 (0x3), region = 85 }

// kernel: cov2d_forward.2
= control target key start
LH: loop header
LB: loop body
LE: loop exit
PB: predicated region body
PF: predicated region fallthrough
CT: control target
= control target key end

     0   :  { %s11373_s0 = inlined_call_operand.vmem [shape: f32[2,4,288,1], index: 0, kind: input, shape index: {}]   ;;  %s11374_s1 = inlined_call_operand.hbm [shape: f32[9,32], index: 1, kind: input, shape index: {}]   ;;  %s11375_s2 = inlined_call_operand.hbm [shape: f32[1,32], index: 2, kind: input, shape index: {}]   ;;  %s11376_s3 = inlined_call_operand.hbm [shape: f32[1,32], index: 3, kind: input, shape index: {}]   ;;  %s11377_s4 = inlined_call_operand.hbm [shape: f32[9,32,64], index: 4, kind: input, shape index: {}]   ;;  %s11378_s5 = inlined_call_operand.hbm [shape: f32[1,64], index: 5, kind: input, shape index: {}]   ;;  %s11379_s6 = inlined_call_operand.hbm [shape: f32[1,64], index: 6, kind: input, shape index: {}]   ;;  %s11380_s7 = inlined_call_operand.hbm [shape: f32[50,212], index: 7, kind: input, shape index: {}]   ;;  %s11381_s8 = inlined_call_operand.hbm [shape: f32[50,212], index: 8, kind: input, shape index: {}]   ;;  %s11382_s9 = inlined_call_operand.vmem [shape: f32[236,1], index: 9, kind: input, shape index: {}]   ;;  %s11383_s10 = inlined_call_operand.vmem [shape: f32[2,4,50,64], index: 10, kind: output, shape index: {}]  }
   0x1   :  { %11517 = sst [smem:[#allocation57_spill]] %s11374_s1 }
   0x2   :  { %11518 = sst [smem:[#allocation58_spill]] %s11375_s2 }
   0x3   :  { %11519 = sst [smem:[#allocation59_spill]] %s11377_s4 }
   0x4   :  { %11520 = sst [smem:[#allocation60_spill]] %s11379_s6 }
   0x5   :  { %15 = vsyncpa [#allocation4], 0 }
   0x6   :  { %16 = vsyncpa [#allocation6], 0 }
   0x7   :  { %17 = vsyncpa [#allocation9], 0 }
   0x8   :  { %18 = vsyncpa [#allocation12], 0 }
   0x9   :  { %19 = vsyncpa [#allocation15], 0  ;;  %s8276_s13 = smov 0   ;;  %s8278_s14 = smov 0  }
   0xa   :  { %s8280_s15 = smov 0   ;;  %s8282_s16 = smov 0  }
   0xb   :  { %s8284_s17 = smov 0  }
   0xc LB: > { %11521 = sst [smem:[#allocation21_spill]] %s8204_s17  ;;  %s8206_s18 = smov [#allocation5]   ;;  %s8204_s17 = sphi %s8284_s17, %s25_s17   ;;  %s8200_s16 = sphi %s8282_s16, %s11835_s16   ;;  %s8196_s15 = sphi %s8280_s15, %s11834_s15   ;;  %s8192_s14 = sphi %s8278_s14, %s11833_s14   ;;  %s8188_s13 = sphi %s8276_s13, %s11832_s13  }
   0xd   : > { %s313_s19 = sshll.u32 %s8206_s18, 4  ;;  %s6244_s20 = sadd.s32 4294967295, %s8204_s17   ;;  %s314_s19 = int_to_ptr.vmem [resolvable:$true] %s313_s19 }
   0xe   : > { %p6246_p0 = scmp.ge.s32.totalorder %s8204_s17, 1  ;;  %p287_p1 = scmp.lt.s32.totalorder %s8204_s17, 9 }
   0xf   : > { %p8304_p2 = scmp.eq.s32.totalorder %s6244_s20, 0  ;;  %s8207_s23 = smov [#allocation8]  }
  0x10   : > { %p8308_p3 = pnand %p6246_p0, %p287_p1  ;;  %s334_s24 = sshll.u32 %s8207_s23, 4  ;;  %s8314_s24 = int_to_ptr.vmem [resolvable:$true] %s334_s24 }
  0x11   : > { %s11522_s21 = scalar_select %p8304_p2, 1, 0 }
  0x12   : > { %s11523_s22 = scalar_select %p8308_p3, 1, 0 }
  0x13   : > { %p7809_p4 = pneg %p8308_p3  ;;  %s8208_s26 = smov [#allocation11]  }
  0x14   : > { %s359_s27 = sshll.u32 %s8208_s26, 4  ;;  %s11525_s2 = sld [smem:[#allocation58_spill]]  ;;  %s8322_s27 = int_to_ptr.vmem [resolvable:$true] %s359_s27 }
  0x15   : > { %p8318_p5 = pnand %p8304_p2, %p7809_p4 }
  0x17   : > { %p8332_p7 = pneg %p8318_p5 }
  0x1a   : > { %s7922_s30 = scalar_lea.hbm %s11525_s2, 16 }
  0x1b   : > { %p7923_p6 = scmp.ne.s32.totalorder %s11525_s2, %s7922_s30  ;;  %p7929_p10 = scmp.lt.u32.totalorder %s7922_s30, %s11525_s2 }
  0x1d   : > { %p7925_p8 = pnand %p8332_p7, %p7923_p6 }
  0x1f   : > { %p7926_p9 = pneg %p7925_p8 }
  0x21   : > { %p7931_p11 = pnand %p7929_p10, %p7926_p9 }
  0x23   : > { %7934 = shalt.err (!%p7931_p11)
}
  0x24   : > { %s7935_s26 = scalar_lea.vmem %s314_s19, 16  ;;  %s7942_s28 = scalar_lea.vmem %s314_s19, 32 }
  0x25   : > { %p7936_p12 = scmp.ne.s32.totalorder %s314_s19, %s7935_s26  ;;  %p7943_p1 = scmp.lt.s32.totalorder %s314_s19, %s314_s19 }
  0x26   : > { %p7944_p4 = scmp.lt.s32.totalorder %s7942_s28, %s7935_s26 }
  0x27   : > { %p7938_p13 = pnand %p7936_p12, %p8332_p7 }
  0x28   : > { %p7945_p2 = por %p7944_p4, %p7943_p1 }
  0x29   : > { %p7939_p0 = pneg %p7938_p13 }
  0x2b   : > { %p7946_p3 = pnand %p7945_p2, %p7939_p0 }
  0x2d   : > { %7949 = shalt.err (!%p7946_p3)
}
  0x2e   : > { %7815 = dma.hbm_to_vmem [thread:$0]  (!%p8318_p5), %s11525_s2, 16, %s314_s19, [#allocation6]  }
  0x2f   : > { %s11527_s4 = sld [smem:[#allocation59_spill]] }
  0x35   : > { %s7950_s20 = scalar_lea.hbm %s11527_s4, 4608 }
  0x36   : > { %p7951_p6 = scmp.ne.s32.totalorder %s11527_s4, %s7950_s20  ;;  %p7957_p2 = scmp.lt.u32.totalorder %s7950_s20, %s11527_s4 }
  0x38   : > { %p7953_p8 = pnand %p7951_p6, %p8332_p7 }
  0x3a   : > { %p7954_p9 = pneg %p7953_p8 }
  0x3c   : > { %p7959_p3 = pnand %p7957_p2, %p7954_p9 }
  0x3e   : > { %7962 = shalt.err (!%p7959_p3)
}
  0x3f   : > { %s7963_s19 = scalar_lea.vmem %s8314_s24, 4608  ;;  %p7971_p13 = scmp.lt.s32.totalorder %s8314_s24, %s8314_s24 }
  0x40   : > { %p7964_p10 = scmp.ne.s32.totalorder %s8314_s24, %s7963_s19  ;;  %p7972_p0 = scmp.lt.s32.totalorder %s7963_s19, %s7963_s19 }
  0x42   : > { %p7966_p11 = pnand %p7964_p10, %p8332_p7  ;;  %p7973_p1 = por %p7972_p0, %p7971_p13 }
  0x44   : > { %p7967_p12 = pneg %p7966_p11 }
  0x46   : > { %p7974_p4 = pnand %p7973_p1, %p7967_p12 }
  0x48   : > { %7977 = shalt.err (!%p7974_p4)
}
  0x49   : > { %s11388_s17 = smov 128   ;;  %s8210_s29 = smov 8  }
  0x4a   : > { %7821 = dma.hbm_to_vmem [thread:$0]  (!%p8318_p5), %s11527_s4, 4608, %s8314_s24, [#allocation9], %s11388_s17, %s11388_s17, %s8210_s29  }
  0x4b   : > { %s11528_s6 = sld [smem:[#allocation60_spill]] }
  0x51   : > { %s7978_s23 = scalar_lea.hbm %s11528_s6, 16 }
  0x52   : > { %p7979_p6 = scmp.ne.s32.totalorder %s11528_s6, %s7978_s23  ;;  %p7985_p2 = scmp.lt.u32.totalorder %s7978_s23, %s11528_s6 }
  0x54   : > { %p7981_p8 = pnand %p7979_p6, %p8332_p7 }
  0x56   : > { %p7982_p9 = pneg %p7981_p8 }
  0x58   : > { %p7987_p3 = pnand %p7985_p2, %p7982_p9 }
  0x5a   : > { %7990 = shalt.err (!%p7987_p3)
}
  0x5b   : > { %s7991_s24 = scalar_lea.vmem %s8322_s27, 16  ;;  %s7998_s11 = scalar_lea.vmem %s8322_s27, 32 }
  0x5c   : > { %p7992_p10 = scmp.ne.s32.totalorder %s8322_s27, %s7991_s24  ;;  %p7999_p13 = scmp.lt.s32.totalorder %s8322_s27, %s8322_s27 }
  0x5d   : > { %p8000_p0 = scmp.lt.s32.totalorder %s7998_s11, %s7991_s24 }
  0x5e   : > { %p7994_p11 = pnand %p7992_p10, %p8332_p7 }
  0x5f   : > { %p8001_p1 = por %p8000_p0, %p7999_p13 }
  0x60   : > { %p7995_p12 = pneg %p7994_p11 }
  0x62   : > { %p8002_p4 = pnand %p8001_p1, %p7995_p12 }
  0x64   : > { %8005 = shalt.err (!%p8002_p4)
}
  0x65   : > { %7827 = dma.hbm_to_vmem [thread:$0]  (!%p8318_p5), %s11528_s6, 16, %s8322_s27, [#allocation12]  }
  0x66   : > { %s34_s12 = sadd.s32 1, %s8196_s15  ;;  %s37_s20 = sadd.s32 1, %s8200_s16 }
  0x67   : > { %p35_p6 = scmp.ge.s32.totalorder %s34_s12, 4  ;;  %s8211_s23 = smov [#allocation3]  }
  0x68   : > { %s299_s26 = sshll.u32 %s8211_s23, 4  ;;  %s8212_s28 = smov [#allocation7]   ;;  %s300_s26 = int_to_ptr.vmem [resolvable:$true] %s299_s26 }
  0x69   : > { %s11837_s12 = smov (%p35_p6, %s34_s12), 0  ;;  %s11839_s20 = smov (!%p35_p6, %s37_s20), %s8200_s16 }
  0x6a   : > { %s324_s19 = sshll.u32 %s8212_s28, 4  ;;  %s11529_s1 = sld [smem:[#allocation57_spill]]  ;;  %s8403_s19 = int_to_ptr.vmem [resolvable:$true] %s324_s19 }
  0x70   : > { %s8006_s2 = scalar_lea.hbm %s11529_s1, 256 }
  0x71   : > { %p8007_p9 = scmp.ne.s32.totalorder %s11529_s1, %s8006_s2  ;;  %p8013_p10 = scmp.lt.u32.totalorder %s8006_s2, %s11529_s1 }
  0x73   : > { %p8009_p2 = pnand %p8007_p9, %p8332_p7 }
  0x75   : > { %p8010_p3 = pneg %p8009_p2 }
  0x77   : > { %p8015_p11 = pnand %p8013_p10, %p8010_p3 }
  0x79   : > { %8018 = shalt.err (!%p8015_p11)
}
  0x7a   : > { %s8019_s28 = scalar_lea.vmem %s300_s26, 256  ;;  %p8027_p1 = scmp.lt.s32.totalorder %s300_s26, %s300_s26 }
  0x7b   : > { %p8020_p12 = scmp.ne.s32.totalorder %s300_s26, %s8019_s28  ;;  %p8028_p4 = scmp.lt.s32.totalorder %s8019_s28, %s8019_s28 }
  0x7d   : > { %p8022_p13 = pnand %p8020_p12, %p8332_p7  ;;  %p8029_p6 = por %p8028_p4, %p8027_p1 }
  0x7f   : > { %p8023_p0 = pneg %p8022_p13 }
  0x81   : > { %p8030_p8 = pnand %p8029_p6, %p8023_p0 }
  0x83   : > { %8033 = shalt.err (!%p8030_p8)
}
  0x84   : > { %s11530_s24 = smov 128   ;;  %p11531_p9 = scmp.ge.s32.totalorder %s11839_s20, 2 }
  0x85   : > { %7812 = dma.hbm_to_vmem [thread:$0]  (!%p8318_p5), %s11529_s1, 256, %s300_s26, [#allocation4], %s11530_s24, %s11530_s24, %s8210_s29  }
  0x86   : > { %s11841_s20 = smov (%p11531_p9, %s11839_s20), 0  ;;  %s8034_s27 = scalar_lea.hbm %s11376_s3, 16 }
  0x87   : > { %p8035_p8 = scmp.ne.s32.totalorder %s11376_s3, %s8034_s27  ;;  %p8041_p10 = scmp.lt.u32.totalorder %s8034_s27, %s11376_s3 }
  0x89   : > { %p8037_p2 = pnand %p8035_p8, %p8332_p7 }
  0x8b   : > { %p8038_p3 = pneg %p8037_p2 }
  0x8d   : > { %p8043_p11 = pnand %p8041_p10, %p8038_p3 }
  0x8f   : > { %8046 = shalt.err (!%p8043_p11)
}
  0x90   : > { %s8047_s29 = scalar_lea.vmem %s8403_s19, 16  ;;  %s8054_s26 = scalar_lea.vmem %s8403_s19, 32 }
  0x91   : > { %p8048_p12 = scmp.ne.s32.totalorder %s8403_s19, %s8047_s29  ;;  %p8055_p1 = scmp.lt.s32.totalorder %s8403_s19, %s8403_s19 }
  0x92   : > { %p8056_p4 = scmp.lt.s32.totalorder %s8054_s26, %s8047_s29 }
  0x93   : > { %p8050_p13 = pnand %p8048_p12, %p8332_p7 }
  0x94   : > { %p8057_p6 = por %p8056_p4, %p8055_p1 }
  0x95   : > { %p8051_p0 = pneg %p8050_p13 }
  0x97   : > { %p8058_p9 = pnand %p8057_p6, %p8051_p0 }
  0x99   : > { %8061 = shalt.err (!%p8058_p9)
}
  0x9a   : > { %7818 = dma.hbm_to_vmem [thread:$0]  (!%p8318_p5), %s11376_s3, 16, %s8403_s19, [#allocation6]  }
  0x9b   : > { %s8213_s24 = smov [#allocation10]   ;;  %s8214_s11 = smov [#allocation13]  }
  0x9c   : > { %s348_s17 = sshll.u32 %s8213_s24, 4  ;;  %s369_s2 = sshll.u32 %s8214_s11, 4  ;;  %s349_s17 = int_to_ptr.vmem [resolvable:$true] %s348_s17  ;;  %s8453_s2 = int_to_ptr.vmem [resolvable:$true] %s369_s2 }
  0x9d   : > { %s8062_s23 = scalar_lea.hbm %s11378_s5, 16 }
  0x9e   : > { %p8063_p8 = scmp.ne.s32.totalorder %s11378_s5, %s8062_s23  ;;  %p8069_p10 = scmp.lt.u32.totalorder %s8062_s23, %s11378_s5 }
  0xa0   : > { %p8065_p2 = pnand %p8063_p8, %p8332_p7 }
  0xa2   : > { %p8066_p3 = pneg %p8065_p2 }
  0xa4   : > { %p8071_p11 = pnand %p8069_p10, %p8066_p3 }
  0xa6   : > { %8074 = shalt.err (!%p8071_p11)
}
  0xa7   : > { %s8075_s4 = scalar_lea.vmem %s349_s17, 16  ;;  %s8082_s6 = scalar_lea.vmem %s349_s17, 32 }
  0xa8   : > { %p8076_p12 = scmp.ne.s32.totalorder %s349_s17, %s8075_s4  ;;  %p8083_p1 = scmp.lt.s32.totalorder %s349_s17, %s349_s17 }
  0xa9   : > { %p8084_p4 = scmp.lt.s32.totalorder %s8082_s6, %s8075_s4 }
  0xaa   : > { %p8078_p13 = pnand %p8076_p12, %p8332_p7 }
  0xab   : > { %p8085_p6 = por %p8084_p4, %p8083_p1 }
  0xac   : > { %p8079_p0 = pneg %p8078_p13 }
  0xae   : > { %p8086_p9 = pnand %p8085_p6, %p8079_p0 }
  0xb0   : > { %8089 = shalt.err (!%p8086_p9)
}
  0xb1   : > { %7824 = dma.hbm_to_vmem [thread:$0]  (!%p8318_p5), %s11378_s5, 16, %s349_s17, [#allocation9]  }
  0xb2   : > { %s8090_s23 = scalar_lea.hbm %s11380_s7, 1792 }
  0xb3   : > { %p8091_p8 = scmp.ne.s32.totalorder %s11380_s7, %s8090_s23  ;;  %p8097_p10 = scmp.lt.u32.totalorder %s8090_s23, %s11380_s7 }
  0xb5   : > { %p8093_p2 = pnand %p8091_p8, %p8332_p7 }
  0xb7   : > { %p8094_p3 = pneg %p8093_p2 }
  0xb9   : > { %p8099_p11 = pnand %p8097_p10, %p8094_p3 }
  0xbb   : > { %8102 = shalt.err (!%p8099_p11)
}
  0xbc   : > { %s8103_s17 = scalar_lea.vmem %s8453_s2, 1792  ;;  %p8111_p1 = scmp.lt.s32.totalorder %s8453_s2, %s8453_s2 }
  0xbd   : > { %p8104_p12 = scmp.ne.s32.totalorder %s8453_s2, %s8103_s17  ;;  %p8112_p4 = scmp.lt.s32.totalorder %s8103_s17, %s8103_s17 }
  0xbf   : > { %p8106_p13 = pnand %p8104_p12, %p8332_p7  ;;  %p8113_p6 = por %p8112_p4, %p8111_p1 }
  0xc1   : > { %p8107_p0 = pneg %p8106_p13 }
  0xc3   : > { %p8114_p9 = pnand %p8113_p6, %p8107_p0 }
  0xc5   : > { %8117 = shalt.err (!%p8114_p9)
}
  0xc6   : > { %s8215_s4 = smov 256   ;;  %s8216_s6 = smov 16  }
  0xc7   : > { %7830 = dma.hbm_to_vmem [thread:$0]  (!%p8318_p5), %s11380_s7, 1792, %s8453_s2, [#allocation12], %s8215_s4, %s8215_s4, %s8216_s6  }
  0xc8   : > { %s8217_s30 = smov [#allocation14]   ;;  %s8118_s29 = scalar_lea.hbm %s11381_s8, 1792 }
  0xc9   : > { %s382_s27 = sshll.u32 %s8217_s30, 4  ;;  %p8119_p8 = scmp.ne.s32.totalorder %s11381_s8, %s8118_s29  ;;  %s383_s27 = int_to_ptr.vmem [resolvable:$true] %s382_s27 }
  0xca   : > { %p8125_p10 = scmp.lt.u32.totalorder %s8118_s29, %s11381_s8 }
  0xcb   : > { %p8121_p2 = pnand %p8119_p8, %p8332_p7 }
  0xcd   : > { %p8122_p3 = pneg %p8121_p2 }
  0xcf   : > { %p8127_p11 = pnand %p8125_p10, %p8122_p3 }
  0xd1   : > { %8130 = shalt.err (!%p8127_p11)
}
  0xd2   : > { %s8131_s2 = scalar_lea.vmem %s383_s27, 1792  ;;  %p8139_p1 = scmp.lt.s32.totalorder %s383_s27, %s383_s27 }
  0xd3   : > { %p8132_p12 = scmp.ne.s32.totalorder %s383_s27, %s8131_s2  ;;  %p8140_p4 = scmp.lt.s32.totalorder %s8131_s2, %s8131_s2 }
  0xd5   : > { %p8134_p13 = pnand %p8132_p12, %p8332_p7  ;;  %p8141_p6 = por %p8140_p4, %p8139_p1 }
  0xd7   : > { %p8135_p0 = pneg %p8134_p13 }
  0xd9   : > { %p8142_p9 = pnand %p8141_p6, %p8135_p0 }
  0xdb   : > { %8145 = shalt.err (!%p8142_p9)
}
  0xdc   : > { %7833 = dma.hbm_to_vmem [thread:$0]  (!%p8318_p5), %s11381_s8, 1792, %s383_s27, [#allocation15], %s8215_s4, %s8215_s4, %s8216_s6  }
  0xdd   : > { %p11532_p8 = scmp.ne.s32.totalorder %s11523_s22, 0 }
  0xdf   : > { %413 = sbr.rel (%p11532_p8) target bundleno = 1439 (0x59f), region = 60 }
  0xe6   : > { %p11533_p2 = scmp.ne.s32.totalorder %s11522_s21, 0 }
  0xe8   : > { %8167 = dma.done.wait (%p11533_p2), [#allocation4], 256  }
  0xe9   : > { %8169 = vsyncadd (%p11533_p2), [#allocation4], 4294967040 }
  0xea   : > { %8171 = dma.done.wait (%p11533_p2), [#allocation6], 32  }
  0xeb   : > { %8173 = vsyncadd (%p11533_p2), [#allocation6], 4294967264 }
  0xec   : > { %8175 = dma.done.wait (%p11533_p2), [#allocation9], 4624  }
  0xed   : > { %8177 = vsyncadd (%p11533_p2), [#allocation9], 4294962672 }
  0xee   : > { %8179 = dma.done.wait (%p11533_p2), [#allocation12], 1808  }
  0xef   : > { %8181 = vsyncadd (%p11533_p2), [#allocation12], 4294965488 }
  0xf0   : > { %8183 = dma.done.wait (%p11533_p2), [#allocation15], 1792  }
  0xf1   : > { %8185 = vsyncadd (%p11533_p2), [#allocation15], 4294965504  ;;  %p487_p5 = scmp.lt.s32.totalorder %s8192_s14, 1  ;;  %p489_p7 = scmp.lt.s32.totalorder %s8188_s13, 3  ;;  %v8218_v0 = vmov 0   ;;  %v2138_v13 = vld [vmem:[%s11382_s9 + $0x8] sm:$0xff] }
  0xf2   : > { %7906 = vset.pattern.permute.xlu1 %v8218_v0  ;;  %7905 = vset.pattern.permute.xlu0 %v8218_v0  ;;  %v2137_v14 = vld [vmem:[%s11382_s9] sm:$0xff]  ;;  %v2140_v17 = vld [vmem:[%s11382_s9 + $0x18] sm:$0xff]  ;;  %v2139_v18 = vld [vmem:[%s11382_s9 + $0x10] sm:$0xff]  ;;  %vm505_vm0 = vcmask 261120   ;;  %v11389_v32 = vmov 0.0   ;;  %vm509_vm1 = vcmask 253952  }
  0xf3   : > { %s11843_s14 = smov (!%p487_p5, %s8192_s14), 1  ;;  %s11845_s13 = smov (!%p489_p7, %s8188_s13), 3  ;;  %v2443_v25 = vld [vmem:[#allocation8 + $0x20] sm:$0xff]  ;;  %v2444_v26 = vld [vmem:[#allocation8 + $0x28] sm:$0xff]  ;;  %v2142_v28 = vld [vmem:[%s11382_s9 + $0x28] sm:$0xff]  ;;  %506 = vst.msk [vmem:[#allocation2] sm:$0xff] %vm505_vm0, %v11389_v32 }
  0xf4   : > { %s7774_s1 = smul.u32 144, %s11843_s14  ;;  %v7351_v27 = vpack.c.bf16 %v2444_v26, %v2443_v25  ;;  %v2141_v29 = vld [vmem:[%s11382_s9 + $0x20] sm:$0xff]  ;;  %507 = vst.msk [vmem:[#allocation2 + $0x8] sm:$0xff] %vm505_vm0, %v11389_v32  ;;  %508 = vst.msk [vmem:[#allocation2 + $0x10] sm:$0xff] %vm505_vm0, %v11389_v32  ;;  %v2144_v33 = vld [vmem:[%s11382_s9 + $0x38] sm:$0xff]  ;;  %vm832_vm2 = vcmask 1046528  }
  0xf5   : > { %s7773_s22 = smul.u32 36, %s11845_s13  ;;  %511 = vst.msk [vmem:[#allocation2 + $0x105] sm:$0xff] %vm505_vm0, %v11389_v32  ;;  %512 = vst.msk [vmem:[#allocation2 + $0x10d] sm:$0xff] %vm505_vm0, %v11389_v32  ;;  %v2143_v34 = vld [vmem:[%s11382_s9 + $0x30] sm:$0xff]  ;;  %v2445_v35 = vld [vmem:[#allocation8 + $0x30] sm:$0xff]  ;;  %vm1017_vm3 = vcmask 1045504  }
  0xf6   : > { %7352 = vmatprep.subr.bf16.mxu1 %v7351_v27  ;;  %513 = vst.msk [vmem:[#allocation2 + $0x115] sm:$0xff] %vm505_vm0, %v11389_v32  ;;  %v2446_v36 = vld [vmem:[#allocation8 + $0x38] sm:$0xff]  ;;  %v3458_v38 = vld [vmem:[#allocation8 + $0x60] sm:$0xff]  ;;  %v3459_v39 = vld [vmem:[#allocation8 + $0x68] sm:$0xff]  ;;  %vm2376_vm4 = vcmask 257024   ;;  %vm514_vm5 = vcmask 256000  }
  0xf7   : > { %s493_s25 = sadd.s32 %s7774_s1, %s7773_s22  ;;  %7354 = vmatpush3.bf16.msra.mxu1 %v7351_v27  ;;  %v7355_v37 = vpack.c.bf16 %v2446_v36, %v2445_v35  ;;  %v8609_v40 = vpack.c.bf16 %v3459_v39, %v3458_v38  ;;  %510 = vst.msk [vmem:[#allocation2 + $0x18] sm:$0x1] %vm509_vm1, %v11389_v32  ;;  %v3460_v43 = vld [vmem:[#allocation8 + $0x70] sm:$0xff]  ;;  %v3461_v44 = vld [vmem:[#allocation8 + $0x78] sm:$0xff]  ;;  %v3828_v45 = vld [vmem:[#allocation8 + $0x80] sm:$0xff]  ;;  %vm5792_vm6 = vcmask 687104  }
  0xf8   : > { %s6265_s21 = sshll.u32 %s493_s25, 3  ;;  %v8616_v48 = vpack.c.bf16 %v3461_v44, %v3460_v43  ;;  %v3829_v49 = vld [vmem:[#allocation8 + $0x88] sm:$0xff]  ;;  %v2146_v50 = vld [vmem:[%s11382_s9 + $0x48] sm:$0xff]  ;;  %v2147_v57 = vld [vmem:[%s11382_s9 + $0x50] sm:$0xff]  ;;  %vm5814_vm7 = vcmask 1043456   ;;  %s7775_s2 = smul.u32 7, %s11845_s13 }
  0xf9   : > { %s8549_s6 = scalar_lea.vmem %s11373_s0, %s6265_s21  ;;  %11534 = vst [vmem:[#allocation22_spill] sm:$0xff] %v8609_v40  ;;  %7356 = vmatprep.subr.bf16.mxu1 %v7355_v37  ;;  %7376 = vmatprep.subr.bf16.mxu0 %v8609_v40  ;;  %v2145_v51 = vld [vmem:[%s11382_s9 + $0x40] sm:$0xff]  ;;  %v8626_v52 = vpack.c.bf16 %v3829_v49, %v3828_v45  ;;  %v2148_v56 = vld [vmem:[%s11382_s9 + $0x58] sm:$0xff]  ;;  %v2150_v60 = vld [vmem:[%s11382_s9 + $0x68] sm:$0xff]  ;;  %s7776_s24 = smul.u32 28, %s11843_s14  ;;  %vm6060_vm8 = vcmask 523264  }
  0xfa   : > { %v518_v1 = vld [vmem:[%s8549_s6 + $0x10] sm:$0xff]  ;;  %v516_v2 = vld [vmem:[%s8549_s6] sm:$0xff]  ;;  %v519_v3 = vld [vmem:[%s8549_s6 + $0x18] sm:$0xff]  ;;  %7378 = vmatpush3.bf16.msra.mxu0 %v8609_v40  ;;  %11535 = vst [vmem:[#allocation23_spill] sm:$0xff] %v8616_v48  ;;  %vm6067_vm9 = vcmask 517120  }
  0xfb   : > { %565 = vperm.xlu1 %7906, %v518_v1   ;;  %555 = vperm.xlu0 %7905, %v516_v2   ;;  %v517_v4 = vld [vmem:[%s8549_s6 + $0x8] sm:$0xff]  ;;  %v520_v6 = vld [vmem:[%s8549_s6 + $0x20] sm:$0xff]  ;;  %v523_v7 = vld [vmem:[%s8549_s6 + $0x38] sm:$0xff]  ;;  %s502_s11 = sadd.s32 %s7776_s24, %s7775_s2 }
  0xfc   : > { %v521_v5 = vld [vmem:[%s8549_s6 + $0x28] sm:$0xff]  ;;  %v522_v8 = vld [vmem:[%s8549_s6 + $0x30] sm:$0xff]  ;;  %v524_v10 = vld [vmem:[%s8549_s6 + $0x40] sm:$0xff]  ;;  %7358 = vmatpush3.bf16.msra.mxu1 %v7355_v37  ;;  %7380 = vmatprep.subr.bf16.mxu0 %v8616_v48  ;;  %s6266_s1 = sshll.u32 %s502_s11, 3 }
  0xfd   : > { %v525_v9 = vld [vmem:[%s8549_s6 + $0x48] sm:$0xff]  ;;  %v527_v11 = vld [vmem:[%s8549_s6 + $0x58] sm:$0xff]  ;;  %v526_v12 = vld [vmem:[%s8549_s6 + $0x50] sm:$0xff]  ;;  %s11343_s21 = scalar_lea.vmem %s11383_s10, %s6266_s1 }
  0xfe   : > { %v529_v15 = vld [vmem:[%s8549_s6 + $0x68] sm:$0xff]  ;;  %v528_v16 = vld [vmem:[%s8549_s6 + $0x60] sm:$0xff]  ;;  %v531_v19 = vld [vmem:[%s8549_s6 + $0x78] sm:$0xff]  ;;  %7382 = vmatpush3.bf16.msra.mxu0 %v8616_v48 }
  0xff   : > { %570 = vperm.xlu1 %7906, %v519_v3   ;;  %560 = vperm.xlu0 %7905, %v517_v4   ;;  %v530_v20 = vld [vmem:[%s8549_s6 + $0x70] sm:$0xff]  ;;  %v533_v21 = vld [vmem:[%s8549_s6 + $0x88] sm:$0xff]  ;;  %v532_v22 = vld [vmem:[%s8549_s6 + $0x80] sm:$0xff] }
 0x100   : > { %v535_v23 = vld [vmem:[%s8549_s6 + $0x98] sm:$0xff]  ;;  %v534_v24 = vld [vmem:[%s8549_s6 + $0x90] sm:$0xff]  ;;  %v537_v30 = vld [vmem:[%s8549_s6 + $0xa8] sm:$0xff]  ;;  %7384 = vmatprep.subr.bf16.mxu0 %v8626_v52 }
 0x101   : > { %v536_v31 = vld [vmem:[%s8549_s6 + $0xa0] sm:$0xff]  ;;  %v539_v41 = vld [vmem:[%s8549_s6 + $0xb8] sm:$0xff]  ;;  %v538_v42 = vld [vmem:[%s8549_s6 + $0xb0] sm:$0xff] }
 0x102   : > { %v2412_v46 = vld [vmem:[#allocation2 + $0x1] sm:$0xff]  ;;  %v2413_v47 = vld [vmem:[#allocation2 + $0x9] sm:$0xff]  ;;  %v2414_v53 = vld [vmem:[#allocation2 + $0x11] sm:$0xff] }
 0x103   : > { %580 = vperm.xlu1 %7906, %v521_v5   ;;  %575 = vperm.xlu0 %7905, %v520_v6   ;;  %v541_v54 = vld [vmem:[%s8549_s6 + $0xc8] sm:$0xff]  ;;  %v540_v55 = vld [vmem:[%s8549_s6 + $0xc0] sm:$0xff]  ;;  %v543_v58 = vld [vmem:[%s8549_s6 + $0xd8] sm:$0xff] }
 0x104   : > { %6882 = vmatprep.mubr.msk.f32.mxu1 %vm505_vm0, %v2412_v46  ;;  %v542_v59 = vld [vmem:[%s8549_s6 + $0xd0] sm:$0xff]  ;;  %v2149_v61 = vld [vmem:[%s11382_s9 + $0x60] sm:$0xff]  ;;  %v545_v62 = vld [vmem:[%s8549_s6 + $0xe8] sm:$0xff] }
 0x105   : > { %6883 = vmatmul.mubr.msk.f32.vlgmr.msra.gmra.mrb[0].mxu1 %vm505_vm0, %v2413_v47  ;;  %v544_v63 = vld [vmem:[%s8549_s6 + $0xe0] sm:$0xff]  ;;  %v2152_v0 = vld [vmem:[%s11382_s9 + $0x78] sm:$0xff]  ;;  %v2151_v1 = vld [vmem:[%s11382_s9 + $0x70] sm:$0xff] }
 0x106   : > { %6885 = vmatprep.mubr.msk.f32.mxu1 %vm505_vm0, %v2414_v53  ;;  %v547_v2 = vld [vmem:[%s8549_s6 + $0xf8] sm:$0xff]  ;;  %v546_v3 = vld [vmem:[%s8549_s6 + $0xf0] sm:$0xff]  ;;  %v2154_v4 = vld [vmem:[%s11382_s9 + $0x88] sm:$0xff] }
 0x107   : > { %590 = vperm.xlu1 %7906, %v523_v7   ;;  %585 = vperm.xlu0 %7905, %v522_v8   ;;  %v2153_v5 = vld [vmem:[%s11382_s9 + $0x80] sm:$0xff]  ;;  %v2155_v6 = vld [vmem:[%s11382_s9 + $0x90] sm:$0xff]  ;;  %v2156_v8 = vld [vmem:[%s11382_s9 + $0x98] sm:$0xff] }
 0x108   : > { %v548_v7 = vld [vmem:[%s8549_s6 + $0x100] sm:$0xff] }
 0x109   : > { %v8708_v26 = vld [vmem:[#allocation3] ss:$0 sm:$0xff]  ;;  %v8716_v35 = vld [vmem:[#allocation3 + $0x5] ss:$0 sm:$0xff]  ;;  %v8722_v44 = vld [vmem:[#allocation3 + $0x3] ss:$0 sm:$0xff] }
 0x10b   : > { %600 = vperm.xlu1 %7906, %v525_v9   ;;  %595 = vperm.xlu0 %7905, %v524_v10   ;;  %v549_v9 = vld [vmem:[%s8549_s6 + $0x108] sm:$0xff]  ;;  %v2157_v10 = vld [vmem:[%s11382_s9 + $0xa0] sm:$0xff] }
 0x10f   : > { %610 = vperm.xlu1 %7906, %v527_v11   ;;  %605 = vperm.xlu0 %7905, %v526_v12   ;;  %v550_v11 = vld [vmem:[%s8549_s6 + $0x110] sm:$0xff]  ;;  %v2158_v12 = vld [vmem:[%s11382_s9 + $0xa8] sm:$0xff] }
 0x113   : > { %2174 = vperm.xlu1 %7906, %v2138_v13   ;;  %2169 = vperm.xlu0 %7905, %v2137_v14   ;;  %v551_v13 = vld [vmem:[%s8549_s6 + $0x118] sm:$0xff] }
 0x114   : > { %v2160_v14 = vld [vmem:[%s11382_s9 + $0xb8] sm:$0xff] }
 0x117   : > { %620 = vperm.xlu1 %7906, %v529_v15   ;;  %615 = vperm.xlu0 %7905, %v528_v16   ;;  %v2159_v15 = vld [vmem:[%s11382_s9 + $0xb0] sm:$0xff]  ;;  %v2162_v16 = vld [vmem:[%s11382_s9 + $0xc8] sm:$0xff] }
 0x11b   : > { %2184 = vperm.xlu1 %7906, %v2140_v17   ;;  %2179 = vperm.xlu0 %7905, %v2139_v18   ;;  %v2161_v17 = vld [vmem:[%s11382_s9 + $0xc0] sm:$0xff]  ;;  %v2164_v18 = vld [vmem:[%s11382_s9 + $0xd8] sm:$0xff] }
 0x11f   : > { %630 = vperm.xlu1 %7906, %v531_v19   ;;  %625 = vperm.xlu0 %7905, %v530_v20   ;;  %v2163_v19 = vld [vmem:[%s11382_s9 + $0xd0] sm:$0xff]  ;;  %v8698_v20 = vld [vmem:[#allocation3 + $0x1] ss:$0 sm:$0xff] }
 0x123   : > { %640 = vperm.xlu1 %7906, %v533_v21   ;;  %635 = vperm.xlu0 %7905, %v532_v22   ;;  %v8700_v21 = vld [vmem:[#allocation3 + $0x2] ss:$0 sm:$0xff]  ;;  %v2166_v22 = vld [vmem:[%s11382_s9 + $0xe8] sm:$0xf] }
 0x127   : > { %650 = vperm.xlu1 %7906, %v535_v23   ;;  %645 = vperm.xlu0 %7905, %v534_v24   ;;  %v2165_v23 = vld [vmem:[%s11382_s9 + $0xe0] sm:$0xff] }
 0x12b   : > { %2194 = vperm.xlu1 %7906, %v2142_v28   ;;  %2189 = vperm.xlu0 %7905, %v2141_v29   ;;  %v3830_v29 = vld [vmem:[#allocation8 + $0x90] sm:$0xff] }
 0x12f   : > { %660 = vperm.xlu1 %7906, %v537_v30   ;;  %655 = vperm.xlu0 %7905, %v536_v31   ;;  %v3831_v30 = vld [vmem:[#allocation8 + $0x98] sm:$0xff] }
 0x133   : > { %2204 = vperm.xlu1 %7906, %v2144_v33   ;;  %2199 = vperm.xlu0 %7905, %v2143_v34   ;;  %v8714_v34 = vld [vmem:[#allocation3 + $0x4] ss:$0 sm:$0xff] }
 0x137   : > { %670 = vperm.xlu1 %7906, %v539_v41   ;;  %665 = vperm.xlu0 %7905, %v538_v42   ;;  %v8720_v41 = vpack.c.bf16 %v3831_v30, %v3830_v29 }
 0x13b   : > { %2214 = vperm.xlu1 %7906, %v2146_v50   ;;  %2209 = vperm.xlu0 %7905, %v2145_v51  }
 0x13f   : > { %680 = vperm.xlu1 %7906, %v541_v54   ;;  %675 = vperm.xlu0 %7905, %v540_v55  }
 0x143   : > { %2224 = vperm.xlu1 %7906, %v2148_v56   ;;  %2219 = vperm.xlu0 %7905, %v2147_v57  }
 0x147   : > { %690 = vperm.xlu1 %7906, %v543_v58   ;;  %685 = vperm.xlu0 %7905, %v542_v59  }
 0x14b   : > { %2234 = vperm.xlu1 %7906, %v2150_v60   ;;  %2229 = vperm.xlu0 %7905, %v2149_v61  }
 0x14f   : > { %700 = vperm.xlu1 %7906, %v545_v62   ;;  %695 = vperm.xlu0 %7905, %v544_v63  }
 0x153   : > { %2244 = vperm.xlu1 %7906, %v2152_v0   ;;  %2239 = vperm.xlu0 %7905, %v2151_v1  }
 0x157   : > { %1145 = vperm.xlu1 %7906, %v547_v2   ;;  %1140 = vperm.xlu0 %7905, %v546_v3  }
 0x15b   : > { %2254 = vperm.xlu1 %7906, %v2154_v4   ;;  %2249 = vperm.xlu0 %7905, %v2153_v5  }
 0x15f   : > { %2259 = vperm.xlu1 %7906, %v2155_v6   ;;  %1150 = vperm.xlu0 %7905, %v548_v7  }
 0x163   : > { %2264 = vperm.xlu1 %7906, %v2156_v8   ;;  %1588 = vperm.xlu0 %7905, %v549_v9  }
 0x167   : > { %2269 = vperm.xlu1 %7906, %v2157_v10   ;;  %1593 = vperm.xlu0 %7905, %v550_v11  }
 0x16b   : > { %2274 = vperm.xlu1 %7906, %v2158_v12   ;;  %1598 = vperm.xlu0 %7905, %v551_v13  }
 0x16f   : > { %2284 = vperm.xlu1 %7906, %v2160_v14   ;;  %2279 = vperm.xlu0 %7905, %v2159_v15  }
 0x173   : > { %2294 = vperm.xlu1 %7906, %v2162_v16   ;;  %2289 = vperm.xlu0 %7905, %v2161_v17  }
 0x177   : > { %2304 = vperm.xlu1 %7906, %v2164_v18   ;;  %2299 = vperm.xlu0 %7905, %v2163_v19  }
 0x17a   : > { %v566_v24 = vpop.permute.xlu1 %565  ;;  %v556_v25 = vpop.permute.xlu0 %555 }
 0x17b   : > { %v774_v27 = vmul.f32 %v8698_v20, %v566_v24  ;;  %v959_v28 = vmul.f32 %v8700_v21, %v566_v24  ;;  %2314 = vperm.xlu1 %7906, %v2166_v22   ;;  %v772_v31 = vmul.f32 %v8698_v20, %v556_v25  ;;  %2309 = vperm.xlu0 %7905, %v2165_v23  }
 0x17c   : > { %v957_v33 = vmul.f32 %v8700_v21, %v556_v25  ;;  %v709_v36 = vmul.f32 %v8708_v26, %v566_v24  ;;  %v707_v37 = vmul.f32 %v8708_v26, %v556_v25 }
 0x17d   : > { %v836_v42 = vrot.slane %v774_v27, 1  ;;  %v1021_v43 = vrot.slane %v959_v28, 2  ;;  %v833_v47 = vrot.slane %v772_v31, 1 }
 0x17e   : > { %v571_v38 = vpop.permute.xlu1 %570  ;;  %v561_v39 = vpop.permute.xlu0 %560  ;;  %v1018_v53 = vrot.slane %v957_v33, 2 }
 0x17f   : > { %v775_v45 = vmul.f32 %v8698_v20, %v571_v38  ;;  %v8726_v46 = vmul.f32 %v8700_v21, %v571_v38  ;;  %v8729_v49 = vmul.f32 %v8714_v34, %v571_v38  ;;  %v8732_v50 = vmul.f32 %v8716_v35, %v571_v38 }
 0x180   : > { %v773_v51 = vmul.f32 %v8698_v20, %v561_v39  ;;  %v958_v56 = vmul.f32 %v8700_v21, %v561_v39  ;;  %v710_v57 = vmul.f32 %v8708_v26, %v571_v38  ;;  %v1157_v58 = vmul.f32 %v8722_v44, %v571_v38 }
 0x181   : > { %v838_v54 = vrot.slane %v775_v45, 1  ;;  %v1023_v55 = vrot.slane %v8726_v46, 2  ;;  %v708_v59 = vmul.f32 %v8708_v26, %v561_v39  ;;  %v1282_v0 = vrot.slane %v8729_v49, 1 }
 0x182   : > { %v834_v60 = vrot.slane %v773_v51, 1  ;;  %v581_v61 = vpop.permute.xlu1 %580  ;;  %v576_v62 = vpop.permute.xlu0 %575  ;;  %v1019_v2 = vrot.slane %v958_v56, 2  ;;  %v11545_v49 = vrot.slane %v8732_v50, 2 }
 0x183   : > { %v839_v63 = vsel %vm832_vm2, %v836_v42, %v838_v54  ;;  %v8746_v6 = vmul.f32 %v8698_v20, %v581_v61  ;;  %v1024_v9 = vsel %vm1017_vm3, %v1021_v43, %v1023_v55  ;;  %v8750_v10 = vmul.f32 %v8708_v26, %v581_v61 }
 0x184   : > { %v835_v3 = vsel %vm832_vm2, %v833_v47, %v834_v60  ;;  %v837_v4 = vsel %vm832_vm2, %v834_v60, %v836_v42  ;;  %v924_v5 = vadd.f32 %v839_v63, %v709_v36  ;;  %v1020_v11 = vsel %vm1017_vm3, %v1018_v53, %v1019_v2 }
 0x185   : > { %v922_v7 = vadd.f32 %v835_v3, %v707_v37  ;;  %v923_v8 = vadd.f32 %v837_v4, %v708_v59  ;;  %v1022_v12 = vsel %vm1017_vm3, %v1019_v2, %v1021_v43  ;;  %v8755_v14 = vmul.f32 %v8700_v21, %v581_v61 }
 0x186   : > { %v1109_v13 = vadd.f32 %v1024_v9, %v924_v5  ;;  %v8757_v15 = vpop.permute.xlu1 %590  ;;  %v8759_v16 = vpop.permute.xlu0 %585  ;;  %v11392_v18 = vrot.slane %v8746_v6, 1  ;;  %v1159_v19 = vmul.f32 %v8722_v44, %v581_v61  ;;  %v8764_v22 = vmul.f32 %v8714_v34, %v581_v61 }
 0x187   : > { %11536 = vst [vmem:[#allocation24_spill] sm:$0xff] %v8759_v16  ;;  %v1107_v17 = vadd.f32 %v1020_v11, %v922_v7  ;;  %v1108_v23 = vadd.f32 %v1022_v12, %v923_v8  ;;  %v11391_v24 = vrot.slane %v8755_v14, 2  ;;  %v8768_v25 = vmul.f32 %v8716_v35, %v581_v61  ;;  %v8814_v7 = vld [vmem:[#allocation3 + $0x6] ss:$0 sm:$0xff]  ;;  %v8827_v11 = vld [vmem:[#allocation3 + $0x7] ss:$0 sm:$0xff] }
 0x188   : > { %v776_v27 = vmul.f32 %v8698_v20, %v576_v62  ;;  %v8773_v29 = vadd.f32 %v1159_v19, %v1109_v13  ;;  %v711_v30 = vmul.f32 %v8708_v26, %v576_v62  ;;  %v961_v31 = vmul.f32 %v8700_v21, %v576_v62  ;;  %v8829_v12 = vld [vmem:[#allocation3 + $0x8] ss:$0 sm:$0xff] }
 0x189   : > { %v8771_v28 = vadd.f32 %v1157_v58, %v1107_v17  ;;  %v11393_v33 = vrot.slane %v8764_v22, 1  ;;  %v1223_v37 = vmul.f32 %v8714_v34, %v576_v62  ;;  %v8780_v38 = vmul.f32 %v8716_v35, %v576_v62 }
 0x18a   : > { %v840_v36 = vrot.slane %v776_v27, 1  ;;  %v8782_v39 = vpop.permute.xlu1 %600  ;;  %v8784_v42 = vpop.permute.xlu0 %595  ;;  %v1025_v43 = vrot.slane %v961_v31, 2  ;;  %v1158_v45 = vmul.f32 %v8722_v44, %v576_v62  ;;  %v8789_v46 = vmul.f32 %v8698_v20, %v8757_v15 }
 0x18b   : > { %v8793_v47 = vmul.f32 %v8698_v20, %v8759_v16  ;;  %v11394_v51 = vrot.slane %v8768_v25, 2  ;;  %v8802_v58 = vmul.f32 %v8700_v21, %v8757_v15  ;;  %v1283_v62 = vrot.slane %v1223_v37, 1 }
 0x18c   : > { %11537 = vst [vmem:[#allocation25_spill] sm:$0xff] %v8789_v46  ;;  %v841_v53 = vsel %vm832_vm2, %v838_v54, %v840_v36  ;;  %v843_v56 = vsel %vm832_vm2, %v840_v36, %v11392_v18  ;;  %v1188_v61 = vadd.f32 %v1158_v45, %v1108_v23  ;;  %v1026_v63 = vsel %vm1017_vm3, %v1023_v55, %v1025_v43 }
 0x18d   : > { %v925_v59 = vadd.f32 %v841_v53, %v710_v57  ;;  %v926_v60 = vadd.f32 %v843_v56, %v711_v30  ;;  %v1028_v2 = vsel %vm1017_vm3, %v1025_v43, %v11391_v24  ;;  %v1467_v54 = vrot.slane %v8780_v38, 2 }
 0x18e   : > { %v8810_v4 = vpop.permute.xlu1 %610  ;;  %v8812_v5 = vpop.permute.xlu0 %605  ;;  %v8821_v55 = vmul.f32 %v8700_v21, %v8759_v16  ;;  %v8825_v9 = vmul.f32 %v8698_v20, %v8782_v39  ;;  %v8835_v17 = vmul.f32 %v8700_v21, %v8782_v39  ;;  %v8839_v19 = vmul.f32 %v8698_v20, %v8784_v42 }
 0x18f   : > { %v8816_v57 = vadd.f32 %v1026_v63, %v925_v59  ;;  %v8831_v13 = vadd.f32 %v1028_v2, %v926_v60  ;;  %v8843_v23 = vmul.f32 %v8698_v20, %v8810_v4  ;;  %v8848_v30 = vmul.f32 %v8700_v21, %v8784_v42 }
 0x190   : > { %11538 = vst [vmem:[#allocation26_spill] sm:$0xff] %v8825_v9  ;;  %11539 = vst [vmem:[#allocation27_spill] sm:$0xff] %v8835_v17  ;;  %v8852_v31 = vmul.f32 %v8700_v21, %v8810_v4  ;;  %v8856_v36 = vmul.f32 %v8698_v20, %v8812_v5  ;;  %v8860_v37 = vmul.f32 %v8700_v21, %v8812_v5 }
 0x191   : > { %11540 = vst [vmem:[#allocation28_spill] sm:$0xff] %v8843_v23  ;;  %11541 = vst [vmem:[#allocation29_spill] sm:$0xff] %v8848_v30  ;;  %v1606_v38 = vmul.f32 %v8814_v7, %v8757_v15  ;;  %v1671_v43 = vmul.f32 %v8827_v11, %v8757_v15  ;;  %v1855_v45 = vmul.f32 %v8829_v12, %v8757_v15 }
 0x192   : > { %11542 = vst [vmem:[#allocation30_spill] sm:$0xff] %v8852_v31  ;;  %11543 = vst [vmem:[#allocation31_spill] sm:$0xff] %v8856_v36  ;;  %v8868_v53 = vpop.permute.xlu1 %2174  ;;  %v8870_v56 = vpop.permute.xlu0 %2169  ;;  %v1286_v63 = vsel %vm832_vm2, %v1283_v62, %v11393_v33  ;;  %v8879_v2 = vmul.f32 %v8827_v11, %v8784_v42  ;;  %v1470_v3 = vsel %vm1017_vm3, %v1467_v54, %v11394_v51 }
 0x193   : > { %11544 = vst [vmem:[#allocation32_spill] sm:$0xff] %v8860_v37  ;;  %v1372_v27 = vadd.f32 %v1286_v63, %v1188_v61  ;;  %v8887_v59 = vmul.f32 %v8829_v12, %v8784_v42  ;;  %v1731_v60 = vrot.slane %v1671_v43, 1  ;;  %v1915_v24 = vrot.slane %v1855_v45, 2 }
 0x194   : > { %v11395_v18 = vrot.slane %v8879_v2, 1  ;;  %v1284_v8 = vsel %vm832_vm2, %v1282_v0, %v1283_v62  ;;  %v1670_v63 = vmul.f32 %v8827_v11, %v8759_v16  ;;  %v1468_v0 = vsel %vm1017_vm3, %v11545_v49, %v1467_v54 }
 0x195   : > { %v1556_v33 = vadd.f32 %v1470_v3, %v1372_v27  ;;  %v11398_v32 = vrot.slane %v8887_v59, 2  ;;  %v1371_v61 = vadd.f32 %v1284_v8, %v8771_v28  ;;  %v1854_v62 = vmul.f32 %v8829_v12, %v8759_v16 }
 0x196   : > { %v8897_v51 = vpop.permute.xlu1 %620  ;;  %v8899_v1 = vpop.permute.xlu0 %615  ;;  %v1734_v43 = vsel %vm832_vm2, %v1731_v60, %v11395_v18  ;;  %v1605_v27 = vmul.f32 %v8814_v7, %v8759_v16  ;;  %v1730_v45 = vrot.slane %v1670_v63, 1  ;;  %v8972_v31 = vmul.f32 %v8827_v11, %v8812_v5 }
 0x197   : > { %v8911_v28 = vmul.f32 %v8698_v20, %v8897_v51  ;;  %v1636_v3 = vadd.f32 %v1606_v38, %v1556_v33  ;;  %v1555_v8 = vadd.f32 %v1468_v0, %v1371_v61  ;;  %v1918_v18 = vsel %vm1017_vm3, %v1915_v24, %v11398_v32 }
 0x198   : > { %v1914_v50 = vrot.slane %v1854_v62, 2  ;;  %v8920_v54 = vmul.f32 %v8700_v21, %v8897_v51  ;;  %v8924_v49 = vmul.f32 %v8698_v20, %v8899_v1  ;;  %v8929_v61 = vmul.f32 %v8714_v34, %v8757_v15  ;;  %v8935_v62 = vld [vmem:[#allocation5] ss:$0 sm:$0xff] }
 0x199   : > { %11546 = vst [vmem:[#allocation33_spill] sm:$0xff] %v8911_v28  ;;  %v1820_v48 = vadd.f32 %v1734_v43, %v1636_v3  ;;  %v1635_v33 = vadd.f32 %v1605_v27, %v1555_v8  ;;  %v1732_v32 = vsel %vm832_vm2, %v1730_v45, %v1731_v60  ;;  %v8941_v43 = vmul.f32 %v8700_v21, %v8899_v1 }
 0x19a   : > { %11547 = vst [vmem:[#allocation34_spill] sm:$0xff] %v8920_v54  ;;  %11548 = vst [vmem:[#allocation35_spill] sm:$0xff] %v8924_v49  ;;  %v8931_v63 = vpop.permute.xlu1 %2184  ;;  %v8933_v0 = vpop.permute.xlu0 %2179  ;;  %v1916_v40 = vsel %vm1017_vm3, %v1914_v50, %v1915_v24  ;;  %v8945_v3 = vmul.f32 %v8716_v35, %v8757_v15  ;;  %v1608_v28 = vmul.f32 %v8814_v7, %v8782_v39  ;;  %v8950_v54 = vld [vmem:[#allocation7] ss:$0 sm:$0xff]  ;;  %v11550_v36 = vrot.slane %v8929_v61, 1 }
 0x19b   : > { %11549 = vst [vmem:[#allocation36_spill] sm:$0xff] %v8941_v43  ;;  %v2004_v8 = vadd.f32 %v1918_v18, %v1820_v48  ;;  %v1819_v27 = vadd.f32 %v1732_v32, %v1635_v33  ;;  %v1673_v24 = vmul.f32 %v8827_v11, %v8782_v39  ;;  %v1160_v45 = vmul.f32 %v8722_v44, %v8759_v16 }
 0x19c   : > { %v1225_v50 = vmul.f32 %v8714_v34, %v8759_v16  ;;  %v1857_v18 = vmul.f32 %v8829_v12, %v8782_v39  ;;  %v1409_v33 = vmul.f32 %v8716_v35, %v8759_v16  ;;  %v8978_v37 = vmul.f32 %v8829_v12, %v8812_v5 }
 0x19d   : > { %v2041_v32 = vmul.f32 %v8935_v62, %v2004_v8  ;;  %v2003_v48 = vadd.f32 %v1916_v40, %v1819_v27  ;;  %v1190_v23 = vadd.f32 %v1160_v45, %v8816_v57  ;;  %v1735_v9 = vrot.slane %v1673_v24, 1 }
 0x19e   : > { %v8964_v38 = vpop.permute.xlu1 %630  ;;  %v8966_v60 = vpop.permute.xlu0 %625  ;;  %v1287_v49 = vrot.slane %v1225_v50, 1  ;;  %v1471_v27 = vrot.slane %v1409_v33, 2  ;;  %v11551_v45 = vrot.slane %v8764_v22, 1  ;;  %v11552_v24 = vrot.slane %v8945_v3, 2 }
 0x19f   : > { %v2078_v40 = vadd.f32 %v8950_v54, %v2041_v32  ;;  %v2040_v8 = vmul.f32 %v8935_v62, %v2003_v48  ;;  %v1919_v48 = vrot.slane %v1857_v18, 2  ;;  %v1607_v22 = vmul.f32 %v8814_v7, %v8784_v42 }
 0x1a0   : > { %v1290_v43 = vsel %vm832_vm2, %v1287_v49, %v11550_v36  ;;  %v1288_v50 = vsel %vm832_vm2, %v11551_v45, %v1287_v49  ;;  %v1474_v46 = vsel %vm1017_vm3, %v1471_v27, %v11552_v24  ;;  %v11555_v36 = vrot.slane %v8879_v2, 1 }
 0x1a1   : > { %v2108_v17 = vmax.f32 %v2078_v40, 0.0  ;;  %v2077_v32 = vadd.f32 %v8950_v54, %v2040_v8  ;;  %v1374_v33 = vadd.f32 %v1290_v43, %v1190_v23  ;;  %v1373_v57 = vadd.f32 %v1288_v50, %v8773_v29 }
 0x1a2   : > { %v8988_v16 = vpop.permute.xlu1 %640  ;;  %v8990_v30 = vpop.permute.xlu0 %635  ;;  %v11553_v23 = vrot.slane %v8768_v25, 2  ;;  %v11554_v8 = vrot.slane %v8972_v31, 1  ;;  %v1736_v29 = vsel %vm832_vm2, %v11555_v36, %v1735_v9  ;;  %v9011_v50 = vmul.f32 %v8698_v20, %v8964_v38 }
 0x1a3   : > { %v2318_v49 = vmul.f32 %v8868_v53, %v2108_v17  ;;  %v2107_v40 = vmax.f32 %v2077_v32, 0.0  ;;  %v1558_v18 = vadd.f32 %v1474_v46, %v1374_v33  ;;  %v11557_v17 = vrot.slane %v8978_v37, 2 }
 0x1a4   : > { %v1472_v43 = vsel %vm1017_vm3, %v11553_v23, %v1471_v27  ;;  %v1738_v45 = vsel %vm832_vm2, %v1735_v9, %v11554_v8  ;;  %11556 = vst [vmem:[#allocation37_spill] sm:$0xff] %v9011_v50  ;;  %v9020_v27 = vmul.f32 %v8698_v20, %v8966_v60  ;;  %v9029_v33 = vmul.f32 %v8700_v21, %v8964_v38 }
 0x1a5   : > { %v1557_v24 = vadd.f32 %v1472_v43, %v1373_v57  ;;  %2348 = vst.msk [vmem:[#allocation2 + $0x21] sm:$0xff] %vm505_vm0, %v2318_v49  ;;  %v2317_v46 = vmul.f32 %v8870_v56, %v2107_v40  ;;  %v1638_v25 = vadd.f32 %v1608_v28, %v1558_v18  ;;  %v1922_v53 = vsel %vm1017_vm3, %v1919_v48, %v11557_v17 }
 0x1a6   : > { %11558 = vst [vmem:[#allocation38_spill] sm:$0xff] %v9020_v27  ;;  %v9022_v2 = vpop.permute.xlu1 %650  ;;  %v11560_v57 = vrot.slane %v8887_v59, 2  ;;  %11561 = vst [vmem:[#allocation40_spill] sm:$0xff] %v9029_v33  ;;  %v9033_v56 = vmul.f32 %v8698_v20, %v8988_v16  ;;  %v9043_v59 = vmul.f32 %v8698_v20, %v8990_v30  ;;  %v9050_v18 = vmul.f32 %v8700_v21, %v8988_v16 }
 0x1a7   : > { %11559 = vst [vmem:[#allocation39_spill] sm:$0xff] %v9022_v2  ;;  %v1637_v9 = vadd.f32 %v1607_v22, %v1557_v24  ;;  %2347 = vst.msk [vmem:[#allocation2 + $0x19] sm:$0xff] %vm505_vm0, %v2317_v46  ;;  %v1822_v28 = vadd.f32 %v1738_v45, %v1638_v25  ;;  %v9039_v22 = vmul.f32 %v8700_v21, %v8966_v60 }
 0x1a8   : > { %v1920_v32 = vsel %vm1017_vm3, %v11560_v57, %v1919_v48  ;;  %11562 = vst [vmem:[#allocation41_spill] sm:$0xff] %v9033_v56  ;;  %11564 = vst [vmem:[#allocation43_spill] sm:$0xff] %v9043_v59  ;;  %v9045_v48 = vpop.permute.xlu0 %645  ;;  %v9054_v23 = vmul.f32 %v8698_v20, %v9022_v2  ;;  %v9060_v24 = vmul.f32 %v8700_v21, %v8990_v30 }
 0x1a9   : > { %11563 = vst [vmem:[#allocation42_spill] sm:$0xff] %v9039_v22  ;;  %v1821_v49 = vadd.f32 %v1736_v29, %v1637_v9  ;;  %11565 = vst [vmem:[#allocation44_spill] sm:$0xff] %v9050_v18  ;;  %v2006_v43 = vadd.f32 %v1922_v53, %v1822_v28  ;;  %v9064_v46 = vmul.f32 %v8700_v21, %v9022_v2  ;;  %v11593_v2 = vrot.slane %v8793_v47, 1 }
 0x1aa   : > { %11566 = vst [vmem:[#allocation45_spill] sm:$0xff] %v9054_v23  ;;  %11567 = vst [vmem:[#allocation46_spill] sm:$0xff] %v9060_v24  ;;  %v9068_v25 = vmul.f32 %v8698_v20, %v9045_v48  ;;  %v9072_v17 = vmul.f32 %v8714_v34, %v8782_v39  ;;  %v9078_v57 = vmul.f32 %v8700_v21, %v9045_v48  ;;  %v9094_v40 = vpop.permute.xlu1 %2194  ;;  %v11571_v23 = vrot.slane %v8793_v47, 1  ;;  %v11596_v47 = vld [vmem:[#allocation27_spill] sm:$0xff] }
 0x1ab   : > { %v2005_v29 = vadd.f32 %v1920_v32, %v1821_v49  ;;  %11568 = vst [vmem:[#allocation47_spill] sm:$0xff] %v9064_v46  ;;  %v2043_v53 = vmul.f32 %v8935_v62, %v2006_v43  ;;  %v9082_v32 = vmul.f32 %v8716_v35, %v8782_v39  ;;  %v1675_v8 = vmul.f32 %v8827_v11, %v8810_v4 }
 0x1ac   : > { %11569 = vst [vmem:[#allocation48_spill] sm:$0xff] %v9068_v25  ;;  %11570 = vst [vmem:[#allocation49_spill] sm:$0xff] %v9078_v57  ;;  %v1859_v43 = vmul.f32 %v8829_v12, %v8810_v4  ;;  %v9091_v36 = vld [vmem:[#allocation2 + $0x21] sm:$0xff]  ;;  %v11432_v46 = vrot.slane %v8821_v55, 2  ;;  %v9106_v24 = vpop.permute.xlu0 %2189 }
 0x1ad   : > { %v2042_v28 = vmul.f32 %v8935_v62, %v2005_v29  ;;  %v2080_v9 = vadd.f32 %v8950_v54, %v2043_v53  ;;  %v11572_v29 = vrot.slane %v8746_v6, 1  ;;  %v1739_v50 = vrot.slane %v1675_v8, 1 }
 0x1ae   : > { %v9103_v57 = vld [vmem:[#allocation2 + $0x19] sm:$0xff]  ;;  %v1923_v59 = vrot.slane %v1859_v43, 2  ;;  %v11573_v6 = vrot.slane %v8755_v14, 2  ;;  %v1162_v8 = vmul.f32 %v8722_v44, %v8784_v42  ;;  %v9127_v14 = vmul.f32 %v8827_v11, %v8899_v1 }
 0x1af   : > { %v845_v49 = vsel %vm832_vm2, %v11572_v29, %v11571_v23  ;;  %v2079_v56 = vadd.f32 %v8950_v54, %v2042_v28  ;;  %v3427_v18 = vld [vmem:[#allocation2 + $0x18] sm:$0xff]  ;;  %v3428_v53 = vld [vmem:[#allocation2 + $0x20] sm:$0xff]  ;;  %v2110_v33 = vmax.f32 %v2080_v9, 0.0  ;;  %6886 = vmatmul.mubr.msk.f32.gmra.mrb[2].mxu1 %vm505_vm0, %v9103_v57  ;;  %v1161_v29 = vmul.f32 %v8722_v44, %v8757_v15 }
 0x1b0   : > { %v927_v45 = vadd.f32 %v845_v49, %v8750_v10  ;;  %7041 = vmatprep.mubr.msk.f32.mxu0 %vm505_vm0, %v3427_v18  ;;  %v1030_v23 = vsel %vm1017_vm3, %v11573_v6, %v11432_v46  ;;  %v1227_v10 = vmul.f32 %v8714_v34, %v8784_v42  ;;  %6888 = vmatprep.mubr.msk.f32.mxu1 %vm505_vm0, %v9091_v36  ;;  %v11575_v46 = vrot.slane %v8929_v61, 1 }
 0x1b1   : > { %v2109_v28 = vmax.f32 %v2079_v56, 0.0  ;;  %7042 = vmatmul.mubr.msk.f32.vlgmr.msra.gmra.mrb[0].mxu0 %vm505_vm0, %v3428_v53  ;;  %v1411_v18 = vmul.f32 %v8716_v35, %v8784_v42  ;;  %v2320_v49 = vmul.f32 %v8931_v63, %v2110_v33  ;;  %v9133_v56 = vmul.f32 %v8829_v12, %v8899_v1  ;;  %v9158_v33 = vpop.permute.xlu0 %655 }
 0x1b2   : > { %v1112_v9 = vadd.f32 %v1030_v23, %v927_v45  ;;  %7386 = vmatpush3.bf16.msra.mxu0 %v8626_v52  ;;  %v1291_v43 = vrot.slane %v1227_v10, 1  ;;  %v11433_v23 = vrot.slane %v9127_v14, 1  ;;  %v11574_v52 = vrot.slane %v9072_v17, 1  ;;  %11578 = vst [vmem:[#allocation51_spill] sm:$0xff] %v9158_v33 }
 0x1b3   : > { %v2319_v45 = vmul.f32 %v8933_v0, %v2109_v28  ;;  %7388 = vmatprep.subr.bf16.mxu0 %v8720_v41  ;;  %v1475_v6 = vrot.slane %v1411_v18, 2  ;;  %2350 = vst.msk [vmem:[#allocation2 + $0x31] sm:$0xff] %vm505_vm0, %v2320_v49  ;;  %v1191_v10 = vadd.f32 %v1161_v29, %v8831_v13  ;;  %v9149_v28 = vpop.permute.xlu1 %660  ;;  %v11577_v49 = vrot.slane %v9082_v32, 2 }
 0x1b4   : > { %v1192_v53 = vadd.f32 %v1162_v8, %v1112_v9  ;;  %v1294_v63 = vsel %vm832_vm2, %v1291_v43, %v11574_v52  ;;  %v1292_v0 = vsel %vm832_vm2, %v11575_v46, %v1291_v43  ;;  %11576 = vst [vmem:[#allocation50_spill] sm:$0xff] %v9149_v28  ;;  %v1610_v9 = vmul.f32 %v8814_v7, %v8810_v4 }
 0x1b5   : > { %2349 = vst.msk [vmem:[#allocation2 + $0x29] sm:$0xff] %vm505_vm0, %v2319_v45  ;;  %v1478_v52 = vsel %vm1017_vm3, %v1475_v6, %v11577_v49  ;;  %v1742_v13 = vsel %vm832_vm2, %v1739_v50, %v11433_v23  ;;  %v11579_v61 = vrot.slane %v9133_v56, 2  ;;  %v1375_v43 = vadd.f32 %v1292_v0, %v1191_v10 }
 0x1b6   : > { %v1376_v18 = vadd.f32 %v1294_v63, %v1192_v53  ;;  %v11580_v29 = vrot.slane %v8945_v3, 2  ;;  %7390 = vmatpush3.bf16.msra.mxu0 %v8720_v41  ;;  %v1609_v63 = vmul.f32 %v8814_v7, %v8812_v5  ;;  %v11581_v49 = vrot.slane %v8972_v31, 1 }
 0x1b7   : > { %v1926_v46 = vsel %vm1017_vm3, %v1923_v59, %v11579_v61  ;;  %v9177_v23 = vmul.f32 %v8698_v20, %v9149_v28  ;;  %v11583_v10 = vrot.slane %v8978_v37, 2  ;;  %v9184_v41 = vmul.f32 %v8700_v21, %v9149_v28 }
 0x1b8   : > { %v1476_v45 = vsel %vm1017_vm3, %v11580_v29, %v1475_v6  ;;  %v1560_v53 = vadd.f32 %v1478_v52, %v1376_v18  ;;  %v1740_v8 = vsel %vm832_vm2, %v11581_v49, %v1739_v50  ;;  %v9188_v6 = vmul.f32 %v8698_v20, %v9158_v33 }
 0x1b9   : > { %11582 = vst [vmem:[#allocation52_spill] sm:$0xff] %v9177_v23  ;;  %v1559_v61 = vadd.f32 %v1476_v45, %v1375_v43  ;;  %v1924_v3 = vsel %vm1017_vm3, %v11583_v10, %v1923_v59  ;;  %11584 = vst [vmem:[#allocation53_spill] sm:$0xff] %v9184_v41  ;;  %v9192_v50 = vmul.f32 %v8700_v21, %v9158_v33  ;;  %v1031_v52 = vrot.slane %v8802_v58, 2  ;;  %v11588_v23 = vld [vmem:[#allocation25_spill] sm:$0xff] }
 0x1ba   : > { %11585 = vst [vmem:[#allocation54_spill] sm:$0xff] %v9188_v6  ;;  %v1640_v31 = vadd.f32 %v1610_v9, %v1560_v53  ;;  %v714_v0 = vmul.f32 %v8708_v26, %v8757_v15  ;;  %v9198_v37 = vmul.f32 %v8714_v34, %v8810_v4  ;;  %v9204_v43 = vmul.f32 %v8716_v35, %v8810_v4  ;;  %v2418_v9 = vld [vmem:[#allocation2 + $0x31] sm:$0xff] }
 0x1bb   : > { %11586 = vst [vmem:[#allocation55_spill] sm:$0xff] %v9192_v50  ;;  %v1639_v59 = vadd.f32 %v1609_v63, %v1559_v61  ;;  %v9209_v15 = vmul.f32 %v8814_v7, %v8897_v51  ;;  %v9213_v53 = vmul.f32 %v8827_v11, %v8897_v51  ;;  %v11587_v18 = vrot.slane %v8839_v19, 1  ;;  %v11590_v45 = vld [vmem:[#allocation29_spill] sm:$0xff] }
 0x1bc   : > { %v1824_v29 = vadd.f32 %v1742_v13, %v1640_v31  ;;  %v3429_v63 = vld [vmem:[#allocation2 + $0x28] sm:$0xff]  ;;  %v3430_v61 = vld [vmem:[#allocation2 + $0x30] sm:$0xff]  ;;  %v11589_v13 = vrot.slane %v11588_v23, 1  ;;  %v11440_v41 = vrot.slane %v11590_v45, 2  ;;  %v11592_v27 = vrot.slane %v11588_v23, 1 }
 0x1bd   : > { %v2417_v49 = vld [vmem:[#allocation2 + $0x29] sm:$0xff]  ;;  %v1823_v58 = vadd.f32 %v1740_v8, %v1639_v59  ;;  %7044 = vmatprep.mubr.msk.f32.mxu0 %vm505_vm0, %v3429_v63  ;;  %v1861_v8 = vmul.f32 %v8829_v12, %v8897_v51 }
 0x1be   : > { %v849_v31 = vsel %vm832_vm2, %v11589_v13, %v11587_v18  ;;  %6889 = vmatmul.mubr.msk.f32.gmra.mrb[4].mxu1 %vm505_vm0, %v2417_v49  ;;  %v2008_v6 = vadd.f32 %v1926_v46, %v1824_v29  ;;  %7045 = vmatmul.mubr.msk.f32.gmra.mrb[2].mxu0 %vm505_vm0, %v3430_v61  ;;  %v1743_v18 = vrot.slane %v9213_v53, 1  ;;  %v9230_v13 = vpop.permute.xlu1 %2204  ;;  %v1034_v63 = vsel %vm1017_vm3, %v1031_v52, %v11440_v41  ;;  %v9244_v61 = vpop.permute.xlu0 %2199 }
 0x1bf   : > { %v929_v59 = vadd.f32 %v849_v31, %v714_v0  ;;  %6891 = vmatprep.mubr.msk.f32.mxu1 %vm505_vm0, %v2418_v9  ;;  %v2007_v10 = vadd.f32 %v1924_v3, %v1823_v58  ;;  %v1164_v46 = vmul.f32 %v8722_v44, %v8812_v5  ;;  %7094 = vmatprep.mubr.msk.f32.mxu0 %vm505_vm0, %v9103_v57  ;;  %v11591_v57 = vld [vmem:[#allocation24_spill] sm:$0xff] }
 0x1c0   : > { %v2045_v29 = vmul.f32 %v8935_v62, %v2008_v6  ;;  %v1229_v3 = vmul.f32 %v8714_v34, %v8812_v5  ;;  %v1413_v53 = vmul.f32 %v8716_v35, %v8812_v5  ;;  %v9249_v31 = vmul.f32 %v8827_v11, %v8966_v60 }
 0x1c1   : > { %v1114_v0 = vadd.f32 %v1034_v63, %v929_v59  ;;  %v2044_v58 = vmul.f32 %v8935_v62, %v2007_v10  ;;  %v9253_v6 = vmul.f32 %v8829_v12, %v8966_v60  ;;  %v713_v59 = vmul.f32 %v8708_v26, %v11591_v57 }
 0x1c2   : > { %v2082_v63 = vadd.f32 %v8950_v54, %v2045_v29  ;;  %v1295_v50 = vrot.slane %v1229_v3, 1  ;;  %v1479_v25 = vrot.slane %v1413_v53, 2  ;;  %7095 = vmatmul.mubr.msk.f32.vlgmr.msra.gmra.mrb[0].mxu0 %vm505_vm0, %v9091_v36  ;;  %v847_v57 = vsel %vm832_vm2, %v11593_v2, %v11592_v27  ;;  %v9275_v23 = vpop.permute.xlu1 %670 }
 0x1c3   : > { %v1194_v41 = vadd.f32 %v1164_v46, %v1114_v0  ;;  %v2081_v28 = vadd.f32 %v8950_v54, %v2044_v58  ;;  %7097 = vmatprep.mubr.msk.f32.mxu0 %vm505_vm0, %v2417_v49  ;;  %v1927_v46 = vrot.slane %v1861_v8, 2  ;;  %v11594_v29 = vrot.slane %v9198_v37, 1 }
 0x1c4   : > { %v2112_v22 = vmax.f32 %v2082_v63, 0.0  ;;  %v928_v3 = vadd.f32 %v847_v57, %v713_v59  ;;  %v11595_v58 = vrot.slane %v9204_v43, 2  ;;  %v11453_v10 = vrot.slane %v11596_v47, 2  ;;  %v9288_v63 = vpop.permute.xlu0 %665 }
 0x1c5   : > { %v1298_v0 = vsel %vm832_vm2, %v1295_v50, %v11594_v29  ;;  %v2111_v36 = vmax.f32 %v2081_v28, 0.0  ;;  %v11597_v2 = vrot.slane %v9249_v31, 1  ;;  %v11598_v8 = vrot.slane %v9253_v6, 2 }
 0x1c6   : > { %v1378_v53 = vadd.f32 %v1298_v0, %v1194_v41  ;;  %v1482_v33 = vsel %vm1017_vm3, %v1479_v25, %v11595_v58  ;;  %v2322_v27 = vmul.f32 %v9094_v40, %v2112_v22  ;;  %v11599_v28 = vrot.slane %v8821_v55, 2  ;;  %7098 = vmatmul.mubr.msk.f32.gmra.mrb[2].mxu0 %vm505_vm0, %v2418_v9 }
 0x1c7   : > { %v1746_v49 = vsel %vm832_vm2, %v1743_v18, %v11597_v2  ;;  %v1930_v59 = vsel %vm1017_vm3, %v1927_v46, %v11598_v8  ;;  %v2321_v57 = vmul.f32 %v9106_v24, %v2111_v36  ;;  %v1163_v40 = vmul.f32 %v8722_v44, %v8782_v39 }
 0x1c8   : > { %v1032_v41 = vsel %vm1017_vm3, %v11599_v28, %v1031_v52  ;;  %v1562_v29 = vadd.f32 %v1482_v33, %v1378_v53  ;;  %2352 = vst.msk [vmem:[#allocation2 + $0x41] sm:$0xff] %vm505_vm0, %v2322_v27  ;;  %v11600_v0 = vrot.slane %v9072_v17, 1  ;;  %v11601_v55 = vrot.slane %v9082_v32, 2 }
 0x1c9   : > { %v1113_v22 = vadd.f32 %v1032_v41, %v928_v3  ;;  %v1611_v24 = vmul.f32 %v8814_v7, %v8899_v1  ;;  %v9305_v33 = vmul.f32 %v8698_v20, %v9275_v23  ;;  %2351 = vst.msk [vmem:[#allocation2 + $0x39] sm:$0xff] %vm505_vm0, %v2321_v57  ;;  %v11603_v17 = vrot.slane %v9127_v14, 1 }
 0x1ca   : > { %v1296_v58 = vsel %vm832_vm2, %v11600_v0, %v1295_v50  ;;  %v1480_v52 = vsel %vm1017_vm3, %v11601_v55, %v1479_v25  ;;  %v1642_v9 = vadd.f32 %v9209_v15, %v1562_v29  ;;  %v9314_v32 = vmul.f32 %v8698_v20, %v9288_v63  ;;  %v11610_v0 = vld [vmem:[#allocation26_spill] sm:$0xff] }
 0x1cb   : > { %11602 = vst [vmem:[#allocation25_spill] sm:$0xff] %v9305_v33  ;;  %v1193_v3 = vadd.f32 %v1163_v40, %v1113_v22  ;;  %v1744_v50 = vsel %vm832_vm2, %v11603_v17, %v1743_v18  ;;  %v11605_v25 = vrot.slane %v9133_v56, 2  ;;  %v9322_v27 = vmul.f32 %v8700_v21, %v9275_v23  ;;  %v11608_v22 = vld [vmem:[#allocation31_spill] sm:$0xff]  ;;  %v11612_v17 = vld [vmem:[#allocation32_spill] sm:$0xff] }
 0x1cc   : > { %11604 = vst [vmem:[#allocation29_spill] sm:$0xff] %v9314_v32  ;;  %v9326_v15 = vmul.f32 %v8714_v34, %v8897_v51  ;;  %v1826_v14 = vadd.f32 %v1746_v49, %v1642_v9  ;;  %v9330_v2 = vmul.f32 %v8700_v21, %v9288_v63  ;;  %v9334_v56 = vmul.f32 %v8716_v35, %v8897_v51 }
 0x1cd   : > { %v1928_v36 = vsel %vm1017_vm3, %v11605_v25, %v1927_v46  ;;  %11606 = vst [vmem:[#allocation24_spill] sm:$0xff] %v9322_v27  ;;  %v1377_v18 = vadd.f32 %v1296_v58, %v1193_v3  ;;  %v716_v8 = vmul.f32 %v8708_v26, %v8782_v39  ;;  %v1614_v41 = vmul.f32 %v8814_v7, %v8964_v38 }
 0x1ce   : > { %11607 = vst [vmem:[#allocation27_spill] sm:$0xff] %v9330_v2  ;;  %v2010_v49 = vadd.f32 %v1930_v59, %v1826_v14  ;;  %v1679_v29 = vmul.f32 %v8827_v11, %v8964_v38  ;;  %v11609_v40 = vrot.slane %v11608_v22, 1  ;;  %v11611_v58 = vrot.slane %v11610_v0, 1 }
 0x1cf   : > { %v1561_v57 = vadd.f32 %v1480_v52, %v1377_v18  ;;  %v1863_v39 = vmul.f32 %v8829_v12, %v8964_v38  ;;  %v11452_v25 = vrot.slane %v11612_v17, 2  ;;  %v2420_v14 = vld [vmem:[#allocation2 + $0x41] sm:$0xff]  ;;  %v1166_v18 = vmul.f32 %v8722_v44, %v8899_v1 }
 0x1d0   : > { %v853_v55 = vsel %vm832_vm2, %v11611_v58, %v11609_v40  ;;  %v2047_v59 = vmul.f32 %v8935_v62, %v2010_v49  ;;  %v1231_v53 = vmul.f32 %v8714_v34, %v8899_v1  ;;  %v2419_v46 = vld [vmem:[#allocation2 + $0x39] sm:$0xff]  ;;  %v9358_v40 = vpop.permute.xlu1 %2214  ;;  %v1415_v49 = vmul.f32 %v8716_v35, %v8899_v1 }
 0x1d1   : > { %v931_v3 = vadd.f32 %v853_v55, %v716_v8  ;;  %v1641_v52 = vadd.f32 %v1611_v24, %v1561_v57  ;;  %v1038_v8 = vsel %vm1017_vm3, %v11453_v10, %v11452_v25  ;;  %v9369_v24 = vmul.f32 %v8827_v11, %v8990_v30  ;;  %6892 = vmatmul.mubr.msk.f32.gmra.mrb[6].mxu1 %vm505_vm0, %v2419_v46  ;;  %v9378_v10 = vpop.permute.xlu0 %2209 }
 0x1d2   : > { %v9373_v57 = vmul.f32 %v8829_v12, %v8990_v30  ;;  %v2084_v58 = vadd.f32 %v8950_v54, %v2047_v59  ;;  %7100 = vmatprep.mubr.msk.f32.mxu0 %vm505_vm0, %v2419_v46  ;;  %v1299_v25 = vrot.slane %v1231_v53, 1  ;;  %6894 = vmatprep.mubr.msk.f32.mxu1 %vm505_vm0, %v2420_v14  ;;  %v1483_v28 = vrot.slane %v1415_v49, 2 }
 0x1d3   : > { %v1825_v55 = vadd.f32 %v1744_v50, %v1641_v52  ;;  %v1116_v9 = vadd.f32 %v1038_v8, %v931_v3  ;;  %7101 = vmatmul.mubr.msk.f32.gmra.mrb[4].mxu0 %vm505_vm0, %v2420_v14  ;;  %v715_v50 = vmul.f32 %v8708_v26, %v8784_v42  ;;  %v11613_v46 = vrot.slane %v9326_v15, 1 }
 0x1d4   : > { %v2114_v59 = vmax.f32 %v2084_v58, 0.0  ;;  %v1747_v3 = vrot.slane %v1679_v29, 1  ;;  %v1931_v8 = vrot.slane %v1863_v39, 2  ;;  %v11614_v32 = vrot.slane %v9334_v56, 2 }
 0x1d5   : > { %v2009_v52 = vadd.f32 %v1928_v36, %v1825_v55  ;;  %v1196_v2 = vadd.f32 %v1166_v18, %v1116_v9  ;;  %v1302_v53 = vsel %vm832_vm2, %v1299_v25, %v11613_v46  ;;  %v11615_v49 = vrot.slane %v11610_v0, 1  ;;  %v9412_v55 = vpop.permute.xlu1 %680 }
 0x1d6   : > { %v1486_v14 = vsel %vm1017_vm3, %v1483_v28, %v11614_v32  ;;  %v11616_v27 = vrot.slane %v8839_v19, 1  ;;  %v2324_v42 = vmul.f32 %v9230_v13, %v2114_v59  ;;  %v11617_v58 = vrot.slane %v9369_v24, 1 }
 0x1d7   : > { %v2046_v36 = vmul.f32 %v8935_v62, %v2009_v52  ;;  %v1380_v9 = vadd.f32 %v1302_v53, %v1196_v2  ;;  %v11618_v39 = vrot.slane %v9373_v57, 2  ;;  %v11619_v0 = vrot.slane %v11596_v47, 2  ;;  %v9419_v47 = vpop.permute.xlu0 %675 }
 0x1d8   : > { %v851_v33 = vsel %vm832_vm2, %v11616_v27, %v11615_v49  ;;  %v1750_v29 = vsel %vm832_vm2, %v1747_v3, %v11617_v58  ;;  %v11620_v19 = vrot.slane %v11590_v45, 2  ;;  %v1165_v13 = vmul.f32 %v8722_v44, %v8810_v4  ;;  %2354 = vst.msk [vmem:[#allocation2 + $0x51] sm:$0xff] %vm505_vm0, %v2324_v42  ;;  %v11629_v58 = vld [vmem:[#allocation30_spill] sm:$0xff] }
 0x1d9   : > { %v930_v18 = vadd.f32 %v851_v33, %v715_v50  ;;  %v1934_v32 = vsel %vm1017_vm3, %v1931_v8, %v11618_v39  ;;  %v2083_v33 = vadd.f32 %v8950_v54, %v2046_v36  ;;  %v1564_v2 = vadd.f32 %v1486_v14, %v1380_v9 }
 0x1da   : > { %v1036_v27 = vsel %vm1017_vm3, %v11620_v19, %v11619_v0  ;;  %v11621_v59 = vrot.slane %v9198_v37, 1  ;;  %v11622_v45 = vrot.slane %v9204_v43, 2  ;;  %v1613_v53 = vmul.f32 %v8814_v7, %v8966_v60 }
 0x1db   : > { %v1115_v50 = vadd.f32 %v1036_v27, %v930_v18  ;;  %v11623_v49 = vrot.slane %v9249_v31, 1  ;;  %v11624_v14 = vrot.slane %v9253_v6, 2  ;;  %v2113_v37 = vmax.f32 %v2083_v33, 0.0  ;;  %v11630_v27 = vld [vmem:[#allocation35_spill] sm:$0xff]  ;;  %v11632_v33 = vld [vmem:[#allocation28_spill] sm:$0xff] }
 0x1dc   : > { %v1300_v52 = vsel %vm832_vm2, %v11621_v59, %v1299_v25  ;;  %v1484_v46 = vsel %vm1017_vm3, %v11622_v45, %v1483_v28  ;;  %v1644_v9 = vadd.f32 %v1614_v41, %v1564_v2  ;;  %v9434_v18 = vmul.f32 %v8698_v20, %v9412_v55 }
 0x1dd   : > { %v1748_v42 = vsel %vm832_vm2, %v11623_v49, %v1747_v3  ;;  %v1932_v36 = vsel %vm1017_vm3, %v11624_v14, %v1931_v8  ;;  %v1195_v25 = vadd.f32 %v1165_v13, %v1115_v50  ;;  %v9438_v43 = vmul.f32 %v8700_v21, %v9412_v55 }
 0x1de   : > { %11625 = vst [vmem:[#allocation31_spill] sm:$0xff] %v9434_v18  ;;  %v9442_v31 = vmul.f32 %v8698_v20, %v9419_v47  ;;  %v9446_v6 = vmul.f32 %v8700_v21, %v9419_v47  ;;  %v718_v28 = vmul.f32 %v8708_v26, %v8810_v4  ;;  %v2323_v41 = vmul.f32 %v9244_v61, %v2113_v37  ;;  %v11634_v37 = vld [vmem:[#allocation36_spill] sm:$0xff] }
 0x1df   : > { %11626 = vst [vmem:[#allocation26_spill] sm:$0xff] %v9438_v43  ;;  %v1828_v3 = vadd.f32 %v1750_v29, %v1644_v9  ;;  %v1379_v8 = vadd.f32 %v1300_v52, %v1195_v25  ;;  %v1039_v39 = vrot.slane %v11629_v58, 2  ;;  %v9454_v0 = vmul.f32 %v8714_v34, %v8964_v38  ;;  %v9613_v43 = vld [vmem:[#allocation3 + $0x3] ss:$0 sm:$0xff] }
 0x1e0   : > { %11627 = vst [vmem:[#allocation32_spill] sm:$0xff] %v9442_v31  ;;  %11628 = vst [vmem:[#allocation56_spill] sm:$0xff] %v9446_v6  ;;  %v9458_v20 = vmul.f32 %v8716_v35, %v8964_v38  ;;  %v9462_v21 = vmul.f32 %v8814_v7, %v8988_v16  ;;  %v9466_v4 = vmul.f32 %v8827_v11, %v8988_v16  ;;  %v11631_v13 = vrot.slane %v11630_v27, 1 }
 0x1e1   : > { %2353 = vst.msk [vmem:[#allocation2 + $0x49] sm:$0xff] %vm505_vm0, %v2323_v41  ;;  %v2012_v61 = vadd.f32 %v1934_v32, %v1828_v3  ;;  %v1563_v29 = vadd.f32 %v1484_v46, %v1379_v8  ;;  %v1865_v19 = vmul.f32 %v8829_v12, %v8988_v16  ;;  %v11633_v2 = vrot.slane %v11632_v33, 1 }
 0x1e2   : > { %v11462_v59 = vrot.slane %v9454_v0, 1  ;;  %v1751_v45 = vrot.slane %v9466_v4, 1  ;;  %v11459_v9 = vrot.slane %v11634_v37, 2  ;;  %v1168_v25 = vmul.f32 %v8722_v44, %v8966_v60 }
 0x1e3   : > { %v857_v50 = vsel %vm832_vm2, %v11633_v2, %v11631_v13  ;;  %v2049_v14 = vmul.f32 %v8935_v62, %v2012_v61  ;;  %v1643_v32 = vadd.f32 %v1613_v53, %v1563_v29  ;;  %v1935_v46 = vrot.slane %v1865_v19, 2  ;;  %v9499_v61 = vpop.permute.xlu0 %2219 }
 0x1e4   : > { %v933_v49 = vadd.f32 %v857_v50, %v718_v28  ;;  %v1233_v41 = vmul.f32 %v8714_v34, %v8966_v60  ;;  %v1417_v3 = vmul.f32 %v8716_v35, %v8966_v60  ;;  %v9489_v8 = vmul.f32 %v8827_v11, %v9045_v48  ;;  %v2422_v50 = vld [vmem:[#allocation2 + $0x51] sm:$0xff] }
 0x1e5   : > { %v2086_v28 = vadd.f32 %v8950_v54, %v2049_v14  ;;  %v1827_v58 = vadd.f32 %v1748_v42, %v1643_v32  ;;  %v1042_v53 = vsel %vm1017_vm3, %v1039_v39, %v11459_v9  ;;  %v9497_v4 = vmul.f32 %v8829_v12, %v9045_v48 }
 0x1e6   : > { %v1118_v34 = vadd.f32 %v1042_v53, %v933_v49  ;;  %v1303_v29 = vrot.slane %v1233_v41, 1  ;;  %v1487_v35 = vrot.slane %v1417_v3, 2  ;;  %v11461_v19 = vrot.slane %v9489_v8, 1 }
 0x1e7   : > { %v2116_v13 = vmax.f32 %v2086_v28, 0.0  ;;  %v2011_v2 = vadd.f32 %v1932_v36, %v1827_v58  ;;  %v11460_v42 = vrot.slane %v9497_v4, 2  ;;  %v717_v14 = vmul.f32 %v8708_v26, %v8812_v5 }
 0x1e8   : > { %v2421_v32 = vld [vmem:[#allocation2 + $0x49] sm:$0xff]  ;;  %v1198_v9 = vadd.f32 %v1168_v25, %v1118_v34  ;;  %v1306_v52 = vsel %vm832_vm2, %v1303_v29, %v11462_v59  ;;  %v11635_v49 = vrot.slane %v9458_v20, 2  ;;  %v1754_v36 = vsel %vm832_vm2, %v1751_v45, %v11461_v19 }
 0x1e9   : > { %v2326_v3 = vmul.f32 %v9358_v40, %v2116_v13  ;;  %v2048_v28 = vmul.f32 %v8935_v62, %v2011_v2  ;;  %6895 = vmatmul.mubr.msk.f32.gmra.mrb[8].mxu1 %vm505_vm0, %v2421_v32  ;;  %7103 = vmatprep.mubr.msk.f32.mxu0 %vm505_vm0, %v2421_v32  ;;  %v1938_v5 = vsel %vm1017_vm3, %v1935_v46, %v11460_v42  ;;  %v11636_v58 = vrot.slane %v11632_v33, 1  ;;  %v11639_v2 = vld [vmem:[#allocation34_spill] sm:$0xff] }
 0x1ea   : > { %v1490_v41 = vsel %vm1017_vm3, %v1487_v35, %v11635_v49  ;;  %6897 = vmatprep.mubr.msk.f32.mxu1 %vm505_vm0, %v2422_v50  ;;  %7104 = vmatmul.mubr.msk.f32.gmra.mrb[6].mxu0 %vm505_vm0, %v2422_v50  ;;  %v1382_v25 = vadd.f32 %v1306_v52, %v1198_v9  ;;  %v11637_v40 = vrot.slane %v11608_v22, 1  ;;  %v11638_v34 = vrot.slane %v11612_v17, 2  ;;  %v9537_v9 = vpop.permute.xlu0 %685  ;;  %v11640_v33 = vld [vmem:[#allocation42_spill] sm:$0xff]  ;;  %v9540_v50 = vpop.permute.xlu1 %2224 }
 0x1eb   : > { %2356 = vst.msk [vmem:[#allocation2 + $0x61] sm:$0xff] %vm505_vm0, %v2326_v3  ;;  %v2085_v49 = vadd.f32 %v8950_v54, %v2048_v28  ;;  %v1167_v52 = vmul.f32 %v8722_v44, %v8897_v51  ;;  %v11641_v17 = vrot.slane %v9326_v15, 1  ;;  %v11644_v42 = vrot.slane %v9373_v57, 2 }
 0x1ec   : > { %v855_v53 = vsel %vm832_vm2, %v11637_v40, %v11636_v58  ;;  %v1040_v13 = vsel %vm1017_vm3, %v11638_v34, %v1039_v39  ;;  %v1566_v58 = vadd.f32 %v1490_v41, %v1382_v25  ;;  %v11642_v40 = vrot.slane %v9334_v56, 2  ;;  %v9580_v25 = vld [vmem:[#allocation3 + $0x5] ss:$0 sm:$0xff] }
 0x1ed   : > { %v932_v26 = vadd.f32 %v855_v53, %v717_v14  ;;  %v1304_v39 = vsel %vm832_vm2, %v11641_v17, %v1303_v29  ;;  %v1615_v14 = vmul.f32 %v8814_v7, %v8990_v30  ;;  %v2115_v28 = vmax.f32 %v2085_v49, 0.0  ;;  %v9557_v29 = vld [vmem:[#allocation3 + $0x1] ss:$0 sm:$0xff] }
 0x1ee   : > { %v1488_v3 = vsel %vm1017_vm3, %v11642_v40, %v1487_v35  ;;  %v11643_v53 = vrot.slane %v9369_v24, 1  ;;  %v1936_v41 = vsel %vm1017_vm3, %v11644_v42, %v1935_v46  ;;  %v1646_v15 = vadd.f32 %v9462_v21, %v1566_v58  ;;  %11645 = vst [vmem:[#allocation30_spill] sm:$0xff] %v9557_v29  ;;  %v9563_v35 = vld [vmem:[#allocation3 + $0x2] ss:$0 sm:$0xff]  ;;  %v9569_v24 = vld [vmem:[#allocation3 + $0x4] ss:$0 sm:$0xff]  ;;  %v9604_v58 = vpop.permute.xlu1 %690 }
 0x1ef   : > { %v1117_v44 = vadd.f32 %v1040_v13, %v932_v26  ;;  %v9561_v56 = vmul.f32 %v9557_v29, %v9537_v9  ;;  %11647 = vst [vmem:[#allocation28_spill] sm:$0xff] %v9563_v35  ;;  %v9567_v26 = vmul.f32 %v9563_v35, %v9537_v9  ;;  %v9573_v57 = vmul.f32 %v9569_v24, %v8988_v16  ;;  %v9576_v46 = vld [vmem:[#allocation3] ss:$0 sm:$0xff] }
 0x1f0   : > { %v1752_v34 = vsel %vm832_vm2, %v11643_v53, %v1751_v45  ;;  %v2325_v21 = vmul.f32 %v9378_v10, %v2115_v28  ;;  %v720_v42 = vmul.f32 %v9576_v46, %v8897_v51  ;;  %v9584_v13 = vmul.f32 %v9580_v25, %v8988_v16  ;;  %v11649_v17 = vld [vmem:[#allocation39_spill] sm:$0xff]  ;;  %v11652_v53 = vld [vmem:[#allocation33_spill] sm:$0xff] }
 0x1f1   : > { %11646 = vst [vmem:[#allocation35_spill] sm:$0xff] %v9561_v56  ;;  %11648 = vst [vmem:[#allocation36_spill] sm:$0xff] %v9567_v26  ;;  %v1197_v45 = vadd.f32 %v1167_v52, %v1117_v44  ;;  %v1830_v49 = vadd.f32 %v1754_v36, %v1646_v15  ;;  %v1618_v40 = vmul.f32 %v8814_v7, %v11649_v17  ;;  %v11650_v44 = vld [vmem:[#allocation38_spill] sm:$0xff]  ;;  %v11653_v15 = vrot.slane %v11652_v53, 1 }
 0x1f2   : > { %v9591_v10 = vmul.f32 %v8827_v11, %v11649_v17  ;;  %2355 = vst.msk [vmem:[#allocation2 + $0x59] sm:$0xff] %vm505_vm0, %v2325_v21  ;;  %v9597_v28 = vmul.f32 %v8829_v12, %v11649_v17  ;;  %v11651_v36 = vrot.slane %v11650_v44, 1  ;;  %v11655_v21 = vrot.slane %v11639_v2, 2  ;;  %v2424_v6 = vld [vmem:[#allocation2 + $0x61] sm:$0xff] }
 0x1f3   : > { %v1381_v52 = vadd.f32 %v1304_v39, %v1197_v45  ;;  %v2014_v59 = vadd.f32 %v1938_v5, %v1830_v49  ;;  %v11654_v39 = vrot.slane %v11640_v33, 2  ;;  %v1235_v5 = vmul.f32 %v9569_v24, %v8990_v30 }
 0x1f4   : > { %v861_v19 = vsel %vm832_vm2, %v11653_v15, %v11651_v36  ;;  %v1755_v32 = vrot.slane %v9591_v10, 1  ;;  %v1939_v26 = vrot.slane %v9597_v28, 2  ;;  %v1170_v36 = vmul.f32 %v9613_v43, %v8990_v30  ;;  %v11656_v10 = vld [vmem:[#allocation51_spill] sm:$0xff] }
 0x1f5   : > { %v935_v22 = vadd.f32 %v861_v19, %v720_v42  ;;  %v1046_v45 = vsel %vm1017_vm3, %v11655_v21, %v11654_v39  ;;  %v1565_v51 = vadd.f32 %v1488_v3, %v1381_v52  ;;  %v2051_v49 = vmul.f32 %v8935_v62, %v2014_v59 }
 0x1f6   : > { %v1419_v42 = vmul.f32 %v9580_v25, %v8990_v30  ;;  %v9624_v15 = vmul.f32 %v8827_v11, %v11656_v10  ;;  %v1307_v52 = vrot.slane %v1235_v5, 1  ;;  %v9628_v28 = vmul.f32 %v8829_v12, %v11656_v10 }
 0x1f7   : > { %v1120_v19 = vadd.f32 %v1046_v45, %v935_v22  ;;  %v1645_v3 = vadd.f32 %v1615_v14, %v1565_v51  ;;  %v719_v39 = vmul.f32 %v9576_v46, %v8899_v1  ;;  %v2088_v21 = vadd.f32 %v8950_v54, %v2051_v49 }
 0x1f8   : > { %v1491_v22 = vrot.slane %v1419_v42, 2  ;;  %v11469_v45 = vrot.slane %v9624_v15, 1  ;;  %v11657_v11 = vrot.slane %v9573_v57, 1  ;;  %v11468_v51 = vrot.slane %v9628_v28, 2 }
 0x1f9   : > { %v1200_v59 = vadd.f32 %v1170_v36, %v1120_v19  ;;  %v1829_v18 = vadd.f32 %v1752_v34, %v1645_v3  ;;  %v11658_v12 = vrot.slane %v11652_v53, 1  ;;  %v11659_v5 = vrot.slane %v11630_v27, 1  ;;  %v2423_v49 = vld [vmem:[#allocation2 + $0x59] sm:$0xff]  ;;  %v9643_v36 = vpop.permute.xlu1 %2234 }
 0x1fa   : > { %v1310_v14 = vsel %vm832_vm2, %v1307_v52, %v11657_v11  ;;  %v2118_v35 = vmax.f32 %v2088_v21, 0.0  ;;  %v11660_v34 = vrot.slane %v9584_v13, 2  ;;  %v1758_v3 = vsel %vm832_vm2, %v1755_v32, %v11469_v45  ;;  %6898 = vmatmul.mubr.msk.f32.gmra.mrb[10].mxu1 %vm505_vm0, %v2423_v49  ;;  %7106 = vmatprep.mubr.msk.f32.mxu0 %vm505_vm0, %v2423_v49  ;;  %v4199_v49 = vld [vmem:[#allocation8 + $0xa8] sm:$0xff] }
 0x1fb   : > { %v859_v1 = vsel %vm832_vm2, %v11659_v5, %v11658_v12  ;;  %v1384_v19 = vadd.f32 %v1310_v14, %v1200_v59  ;;  %v2013_v53 = vadd.f32 %v1936_v41, %v1829_v18  ;;  %v1942_v27 = vsel %vm1017_vm3, %v1939_v26, %v11468_v51  ;;  %6900 = vmatprep.mubr.msk.f32.mxu1 %vm505_vm0, %v2424_v6  ;;  %v4198_v5 = vld [vmem:[#allocation8 + $0xa0] sm:$0xff] }
 0x1fc   : > { %v1494_v42 = vsel %vm1017_vm3, %v1491_v22, %v11660_v34  ;;  %v934_v21 = vadd.f32 %v859_v1, %v719_v39  ;;  %v2328_v59 = vmul.f32 %v9540_v50, %v2118_v35  ;;  %7107 = vmatmul.mubr.msk.f32.gmra.mrb[8].mxu0 %vm505_vm0, %v2424_v6  ;;  %v11661_v12 = vrot.slane %v11639_v2, 2  ;;  %v11663_v34 = vld [vmem:[#allocation40_spill] sm:$0xff]  ;;  %v11664_v35 = vld [vmem:[#allocation46_spill] sm:$0xff] }
 0x1fd   : > { %v1568_v14 = vadd.f32 %v1494_v42, %v1384_v19  ;;  %v11662_v18 = vrot.slane %v11634_v37, 2  ;;  %v11471_v11 = vrot.slane %v11663_v34, 2  ;;  %v2050_v51 = vmul.f32 %v8935_v62, %v2013_v53 }
 0x1fe   : > { %v1169_v50 = vmul.f32 %v9613_v43, %v8964_v38  ;;  %v11470_v1 = vrot.slane %v11664_v35, 2  ;;  %2358 = vst.msk [vmem:[#allocation2 + $0x71] sm:$0xff] %vm505_vm0, %v2328_v59  ;;  %v11665_v2 = vrot.slane %v9454_v0, 1  ;;  %v11666_v19 = vrot.slane %v9458_v20, 2 }
 0x1ff   : > { %v1044_v41 = vsel %vm1017_vm3, %v11662_v18, %v11661_v12  ;;  %v1648_v6 = vadd.f32 %v1618_v40, %v1568_v14  ;;  %v1617_v53 = vmul.f32 %v8814_v7, %v9045_v48  ;;  %v2087_v12 = vadd.f32 %v8950_v54, %v2050_v51  ;;  %v9688_v14 = vpop.permute.xlu1 %700 }
 0x200   : > { %v1119_v39 = vadd.f32 %v1044_v41, %v934_v21  ;;  %v1308_v37 = vsel %vm832_vm2, %v11665_v2, %v1307_v52  ;;  %v1492_v42 = vsel %vm1017_vm3, %v11666_v19, %v1491_v22  ;;  %v9679_v21 = vpop.permute.xlu0 %2229  ;;  %v11667_v41 = vrot.slane %v9489_v8, 1  ;;  %11669 = vst [vmem:[#allocation34_spill] sm:$0xff] %v9688_v14 }
 0x201   : > { %v7391_v59 = vpack.c.bf16 %v4199_v49, %v4198_v5  ;;  %v1832_v0 = vadd.f32 %v1758_v3, %v1648_v6  ;;  %v11668_v52 = vrot.slane %v9497_v4, 2  ;;  %v9692_v7 = vmul.f32 %v9569_v24, %v11649_v17  ;;  %v9700_v3 = vld [vmem:[#allocation3 + $0x7] ss:$0 sm:$0xff]  ;;  %v11670_v4 = vld [vmem:[#allocation50_spill] sm:$0xff] }
 0x202   : > { %v1199_v18 = vadd.f32 %v1169_v50, %v1119_v39  ;;  %v1756_v40 = vsel %vm832_vm2, %v11667_v41, %v1755_v32  ;;  %v9696_v22 = vmul.f32 %v9580_v25, %v11649_v17  ;;  %v2117_v51 = vmax.f32 %v2087_v12, 0.0  ;;  %v9708_v50 = vld [vmem:[#allocation3 + $0x6] ss:$0 sm:$0xff] }
 0x203   : > { %v1940_v20 = vsel %vm1017_vm3, %v11668_v52, %v1939_v26  ;;  %7392 = vmatprep.subr.bf16.mxu0 %v7391_v59  ;;  %v722_v32 = vmul.f32 %v9576_v46, %v8964_v38  ;;  %v9704_v26 = vmul.f32 %v9700_v3, %v11670_v4  ;;  %v2016_v5 = vadd.f32 %v1942_v27, %v1832_v0  ;;  %v11671_v12 = vld [vmem:[#allocation43_spill] sm:$0xff] }
 0x204   : > { %v1383_v8 = vadd.f32 %v1308_v37, %v1199_v18  ;;  %7394 = vmatpush3.bf16.msra.mxu0 %v7391_v59  ;;  %v1620_v6 = vmul.f32 %v9708_v50, %v11670_v4  ;;  %v2327_v2 = vmul.f32 %v9499_v61, %v2117_v51  ;;  %v9713_v37 = vld [vmem:[#allocation3 + $0x8] ss:$0 sm:$0xff]  ;;  %v11672_v27 = vrot.slane %v11671_v12, 1  ;;  %v11673_v18 = vld [vmem:[#allocation37_spill] sm:$0xff]  ;;  %v9723_v52 = vpop.permute.xlu0 %695 }
 0x205   : > { %v1869_v19 = vmul.f32 %v9713_v37, %v11670_v4  ;;  %v11674_v41 = vrot.slane %v11673_v18, 1  ;;  %v2053_v0 = vmul.f32 %v8935_v62, %v2016_v5  ;;  %11675 = vst [vmem:[#allocation42_spill] sm:$0xff] %v9723_v52  ;;  %v1759_v45 = vrot.slane %v9704_v26, 1  ;;  %v9739_v26 = vpop.permute.xlu1 %2244 }
 0x206   : > { %v1567_v38 = vadd.f32 %v1492_v42, %v1383_v8  ;;  %v1050_v61 = vsel %vm1017_vm3, %v11471_v11, %v11470_v1  ;;  %2357 = vst.msk [vmem:[#allocation2 + $0x69] sm:$0xff] %vm505_vm0, %v2327_v2  ;;  %v1172_v51 = vmul.f32 %v9613_v43, %v9045_v48  ;;  %v1237_v8 = vmul.f32 %v9569_v24, %v9045_v48 }
 0x207   : > { %v865_v59 = vsel %vm832_vm2, %v11674_v41, %v11672_v27  ;;  %v1421_v5 = vmul.f32 %v9580_v25, %v9045_v48  ;;  %v9743_v41 = vmul.f32 %v9700_v3, %v9288_v63  ;;  %v721_v52 = vmul.f32 %v9576_v46, %v8966_v60 }
 0x208   : > { %v937_v39 = vadd.f32 %v865_v59, %v722_v32  ;;  %v1647_v42 = vadd.f32 %v1617_v53, %v1567_v38  ;;  %v2090_v32 = vadd.f32 %v8950_v54, %v2053_v0  ;;  %v9747_v53 = vmul.f32 %v9713_v37, %v9288_v63 }
 0x209   : > { %v1943_v38 = vrot.slane %v1869_v19, 2  ;;  %v1311_v59 = vrot.slane %v1237_v8, 1  ;;  %v1495_v1 = vrot.slane %v1421_v5, 2  ;;  %v11479_v31 = vrot.slane %v9743_v41, 1 }
 0x20a   : > { %v1122_v27 = vadd.f32 %v1050_v61, %v937_v39  ;;  %v1831_v2 = vadd.f32 %v1756_v40, %v1647_v42  ;;  %v2120_v11 = vmax.f32 %v2090_v32, 0.0  ;;  %v11478_v0 = vrot.slane %v9747_v53, 2  ;;  %v9768_v32 = vpop.permute.xlu0 %2239 }
 0x20b   : > { %v11676_v39 = vrot.slane %v9692_v7, 1  ;;  %v11677_v29 = vrot.slane %v11673_v18, 1  ;;  %v11678_v40 = vrot.slane %v11650_v44, 1  ;;  %v11679_v8 = vrot.slane %v9696_v22, 2  ;;  %v2426_v18 = vld [vmem:[#allocation2 + $0x71] sm:$0xff] }
 0x20c   : > { %v1202_v49 = vadd.f32 %v1172_v51, %v1122_v27  ;;  %v2015_v14 = vadd.f32 %v1940_v20, %v1831_v2  ;;  %v2330_v42 = vmul.f32 %v9643_v36, %v2120_v11  ;;  %v1762_v5 = vsel %vm832_vm2, %v1759_v45, %v11479_v31 }
 0x20d   : > { %v1314_v61 = vsel %vm832_vm2, %v1311_v59, %v11676_v39  ;;  %v863_v19 = vsel %vm832_vm2, %v11678_v40, %v11677_v29  ;;  %v1498_v20 = vsel %vm1017_vm3, %v1495_v1, %v11679_v8  ;;  %v1946_v29 = vsel %vm1017_vm3, %v1943_v38, %v11478_v0  ;;  %v2425_v27 = vld [vmem:[#allocation2 + $0x69] sm:$0xff] }
 0x20e   : > { %v1386_v51 = vadd.f32 %v1314_v61, %v1202_v49  ;;  %v2052_v60 = vmul.f32 %v8935_v62, %v2015_v14  ;;  %v936_v44 = vadd.f32 %v863_v19, %v721_v52  ;;  %v11680_v36 = vrot.slane %v11663_v34, 2  ;;  %2360 = vst.msk [vmem:[#allocation2 + $0x81] sm:$0xff] %vm505_vm0, %v2330_v42  ;;  %v1146_v34 = vpop.permute.xlu1 %1145  ;;  %6901 = vmatmul.mubr.msk.f32.gmra.mrb[12].mxu1 %vm505_vm0, %v2425_v27 }
 0x20f   : > { %v11681_v11 = vrot.slane %v11640_v33, 2  ;;  %v1171_v39 = vmul.f32 %v9613_v43, %v8988_v16  ;;  %v11682_v62 = vrot.slane %v9573_v57, 1  ;;  %v11683_v61 = vrot.slane %v9584_v13, 2  ;;  %7109 = vmatprep.mubr.msk.f32.mxu0 %vm505_vm0, %v2425_v27  ;;  %6903 = vmatprep.mubr.msk.f32.mxu1 %vm505_vm0, %v2426_v18  ;;  %v11690_v27 = vld [vmem:[#allocation49_spill] sm:$0xff] }
 0x210   : > { %v1570_v2 = vadd.f32 %v1498_v20, %v1386_v51  ;;  %v2089_v40 = vadd.f32 %v8950_v54, %v2052_v60  ;;  %v1619_v42 = vmul.f32 %v9708_v50, %v11656_v10  ;;  %7110 = vmatmul.mubr.msk.f32.gmra.mrb[10].mxu0 %vm505_vm0, %v2426_v18  ;;  %v11684_v13 = vrot.slane %v9624_v15, 1  ;;  %v11686_v51 = vld [vmem:[#allocation44_spill] sm:$0xff] }
 0x211   : > { %v1048_v49 = vsel %vm1017_vm3, %v11681_v11, %v11680_v36  ;;  %v1312_v14 = vsel %vm832_vm2, %v11682_v62, %v1311_v59  ;;  %v1496_v52 = vsel %vm1017_vm3, %v11683_v61, %v1495_v1  ;;  %v11685_v59 = vrot.slane %v9628_v28, 2 }
 0x212   : > { %v1121_v19 = vadd.f32 %v1048_v49, %v936_v44  ;;  %v1650_v57 = vadd.f32 %v1620_v6, %v1570_v2  ;;  %v1760_v1 = vsel %vm832_vm2, %v11684_v13, %v1759_v45  ;;  %v2119_v20 = vmax.f32 %v2089_v40, 0.0  ;;  %v1141_v45 = vpop.permute.xlu0 %1140 }
 0x213   : > { %v1944_v54 = vsel %vm1017_vm3, %v11685_v59, %v1943_v38  ;;  %v9804_v44 = vmul.f32 %v9569_v24, %v1146_v34  ;;  %v9807_v36 = vmul.f32 %v9580_v25, %v1146_v34  ;;  %v9810_v6 = vmul.f32 %v9613_v43, %v1146_v34 }
 0x214   : > { %v1201_v60 = vadd.f32 %v1171_v39, %v1121_v19  ;;  %v1834_v18 = vadd.f32 %v1762_v5, %v1650_v57  ;;  %v9813_v15 = vmul.f32 %v9700_v3, %v1146_v34  ;;  %v9816_v28 = vmul.f32 %v9713_v37, %v1146_v34  ;;  %v11695_v19 = vld [vmem:[#allocation48_spill] sm:$0xff]  ;;  %v11697_v5 = vld [vmem:[#allocation41_spill] sm:$0xff] }
 0x215   : > { %v2329_v38 = vmul.f32 %v9679_v21, %v2119_v20  ;;  %v9820_v49 = vmul.f32 %v9708_v50, %v1146_v34  ;;  %v9829_v21 = vmul.f32 %v9569_v24, %v1141_v45  ;;  %v9834_v34 = vld [vmem:[#allocation5] ss:$0 sm:$0xff]  ;;  %v9838_v57 = vmul.f32 %v9613_v43, %v1141_v45 }
 0x216   : > { %11687 = vst [vmem:[#allocation39_spill] sm:$0xff] %v9813_v15  ;;  %11688 = vst [vmem:[#allocation38_spill] sm:$0xff] %v9816_v28  ;;  %v1385_v11 = vadd.f32 %v1312_v14, %v1201_v60  ;;  %v2018_v39 = vadd.f32 %v1946_v29, %v1834_v18  ;;  %v9832_v14 = vmul.f32 %v9580_v25, %v1141_v45  ;;  %v11698_v0 = vrot.slane %v11697_v5, 1 }
 0x217   : > { %11689 = vst [vmem:[#allocation33_spill] sm:$0xff] %v9820_v49  ;;  %2359 = vst.msk [vmem:[#allocation2 + $0x79] sm:$0xff] %vm505_vm0, %v2329_v38  ;;  %v9841_v13 = vmul.f32 %v9708_v50, %v1141_v45  ;;  %v9847_v20 = vmul.f32 %v9713_v37, %v1141_v45  ;;  %v724_v60 = vmul.f32 %v9576_v46, %v8988_v16  ;;  %v9855_v38 = vld [vmem:[#allocation7] ss:$0 sm:$0xff]  ;;  %v11700_v49 = vrot.slane %v11686_v51, 2 }
 0x218   : > { %v1569_v40 = vadd.f32 %v1496_v52, %v1385_v11  ;;  %11691 = vst [vmem:[#allocation51_spill] sm:$0xff] %v9829_v21  ;;  %11692 = vst [vmem:[#allocation40_spill] sm:$0xff] %v9832_v14  ;;  %v2055_v29 = vmul.f32 %v9834_v34, %v2018_v39  ;;  %v9844_v52 = vmul.f32 %v9700_v3, %v1141_v45  ;;  %v11696_v39 = vrot.slane %v11695_v19, 1 }
 0x219   : > { %11693 = vst [vmem:[#allocation46_spill] sm:$0xff] %v9841_v13  ;;  %v9853_v18 = vmul.f32 %v9569_v24, %v11670_v4  ;;  %v1687_v61 = vmul.f32 %v9700_v3, %v9275_v23  ;;  %v1871_v62 = vmul.f32 %v9713_v37, %v9275_v23  ;;  %v11699_v13 = vrot.slane %v11690_v27, 2 }
 0x21a   : > { %11694 = vst [vmem:[#allocation50_spill] sm:$0xff] %v9844_v52  ;;  %v1649_v59 = vadd.f32 %v1619_v42, %v1569_v40  ;;  %v2092_v11 = vadd.f32 %v9855_v38, %v2055_v29  ;;  %v9862_v42 = vmul.f32 %v9580_v25, %v11670_v4  ;;  %v1622_v29 = vmul.f32 %v9708_v50, %v9275_v23  ;;  %v2428_v40 = vld [vmem:[#allocation2 + $0x81] sm:$0xff] }
 0x21b   : > { %v1763_v16 = vrot.slane %v1687_v61, 1  ;;  %v1054_v28 = vsel %vm1017_vm3, %v11700_v49, %v11699_v13  ;;  %v1174_v15 = vmul.f32 %v9613_v43, %v11656_v10  ;;  %v1423_v61 = vmul.f32 %v9580_v25, %v11656_v10 }
 0x21c   : > { %v1833_v45 = vadd.f32 %v1760_v1, %v1649_v59  ;;  %v2122_v33 = vmax.f32 %v2092_v11, 0.0  ;;  %v869_v1 = vsel %vm832_vm2, %v11698_v0, %v11696_v39  ;;  %v1239_v0 = vmul.f32 %v9569_v24, %v11656_v10 }
 0x21d   : > { %v939_v8 = vadd.f32 %v869_v1, %v724_v60  ;;  %v1688_v13 = vmul.f32 %v9700_v3, %v9419_v47  ;;  %v1872_v60 = vmul.f32 %v9713_v37, %v9419_v47  ;;  %v11701_v39 = vrot.slane %v11697_v5, 1  ;;  %v11706_v5 = vld [vmem:[#allocation47_spill] sm:$0xff] }
 0x21e   : > { %v2017_v59 = vadd.f32 %v1944_v54, %v1833_v45  ;;  %v2332_v11 = vmul.f32 %v9739_v26, %v2122_v33  ;;  %v2427_v2 = vld [vmem:[#allocation2 + $0x79] sm:$0xff]  ;;  %v1947_v26 = vrot.slane %v1871_v62, 2  ;;  %v1315_v49 = vrot.slane %v1239_v0, 1 }
 0x21f   : > { %6904 = vmatmul.mubr.msk.f32.gmra.mrb[14].mxu1 %vm505_vm0, %v2427_v2  ;;  %7112 = vmatprep.mubr.msk.f32.mxu0 %vm505_vm0, %v2427_v2  ;;  %v1124_v33 = vadd.f32 %v1054_v28, %v939_v8  ;;  %v723_v2 = vmul.f32 %v9576_v46, %v8990_v30  ;;  %v1499_v62 = vrot.slane %v1423_v61, 2  ;;  %v11702_v45 = vrot.slane %v11671_v12, 1 }
 0x220   : > { %v2054_v54 = vmul.f32 %v9834_v34, %v2017_v59  ;;  %2362 = vst.msk [vmem:[#allocation2 + $0x91] sm:$0xff] %vm505_vm0, %v2332_v11  ;;  %6906 = vmatprep.mubr.msk.f32.mxu1 %vm505_vm0, %v2428_v40  ;;  %7113 = vmatmul.mubr.msk.f32.gmra.mrb[12].mxu0 %vm505_vm0, %v2428_v40  ;;  %v11703_v1 = vrot.slane %v9853_v18, 1  ;;  %v1765_v11 = vrot.slane %v1688_v13, 1  ;;  %v1949_v0 = vrot.slane %v1872_v60, 2  ;;  %v9923_v60 = vpop.permute.xlu0 %2249 }
 0x221   : > { %v1204_v28 = vadd.f32 %v1174_v15, %v1124_v33  ;;  %v867_v40 = vsel %vm832_vm2, %v11702_v45, %v11701_v39  ;;  %v11704_v30 = vrot.slane %v11686_v51, 2  ;;  %v11705_v15 = vrot.slane %v11664_v35, 2 }
 0x222   : > { %v2091_v8 = vadd.f32 %v9855_v38, %v2054_v54  ;;  %v1318_v59 = vsel %vm832_vm2, %v1315_v49, %v11703_v1  ;;  %v938_v31 = vadd.f32 %v867_v40, %v723_v2  ;;  %v1055_v33 = vrot.slane %v11706_v5, 2 }
 0x223   : > { %v1388_v52 = vadd.f32 %v1318_v59, %v1204_v28  ;;  %v1052_v54 = vsel %vm1017_vm3, %v11705_v15, %v11704_v30  ;;  %v11707_v12 = vrot.slane %v9862_v42, 2  ;;  %v1766_v39 = vsel %vm832_vm2, %v1763_v16, %v1765_v11 }
 0x224   : > { %v2121_v56 = vmax.f32 %v2091_v8, 0.0  ;;  %v1123_v45 = vadd.f32 %v1052_v54, %v938_v31  ;;  %v1173_v13 = vmul.f32 %v9613_v43, %v11649_v17  ;;  %v1950_v35 = vsel %vm1017_vm3, %v1947_v26, %v1949_v0 }
 0x225   : > { %v1502_v61 = vsel %vm1017_vm3, %v1499_v62, %v11707_v12  ;;  %v11708_v8 = vrot.slane %v9692_v7, 1  ;;  %v11709_v1 = vrot.slane %v9696_v22, 2  ;;  %v1621_v31 = vmul.f32 %v9708_v50, %v9288_v63 }
 0x226   : > { %v2331_v51 = vmul.f32 %v9768_v32, %v2121_v56  ;;  %v1572_v2 = vadd.f32 %v1502_v61, %v1388_v52  ;;  %v1203_v40 = vadd.f32 %v1173_v13, %v1123_v45  ;;  %v11710_v30 = vrot.slane %v9743_v41, 1 }
 0x227   : > { %v1316_v28 = vsel %vm832_vm2, %v11708_v8, %v1315_v49  ;;  %v1500_v59 = vsel %vm1017_vm3, %v11709_v1, %v1499_v62  ;;  %v11711_v32 = vrot.slane %v9747_v53, 2  ;;  %v9944_v52 = vmul.f32 %v9700_v3, %v9412_v55 }
 0x228   : > { %v1764_v15 = vsel %vm832_vm2, %v11710_v30, %v1763_v16  ;;  %2361 = vst.msk [vmem:[#allocation2 + $0x89] sm:$0xff] %vm505_vm0, %v2331_v51  ;;  %v1652_v56 = vadd.f32 %v1622_v29, %v1572_v2  ;;  %v9948_v22 = vmul.f32 %v9713_v37, %v9412_v55  ;;  %v1387_v49 = vadd.f32 %v1316_v28, %v1203_v40  ;;  %v11712_v29 = vld [vmem:[#allocation45_spill] sm:$0xff] }
 0x229   : > { %v1948_v7 = vsel %vm1017_vm3, %v11711_v32, %v1947_v26  ;;  %v1175_v41 = vmul.f32 %v9613_v43, %v11670_v4  ;;  %v725_v16 = vmul.f32 %v9576_v46, %v9045_v48  ;;  %v11713_v62 = vrot.slane %v11712_v29, 1 }
 0x22a   : > { %v11714_v53 = vrot.slane %v11695_v19, 1  ;;  %v1836_v54 = vadd.f32 %v1766_v39, %v1652_v56  ;;  %v1767_v12 = vrot.slane %v9944_v52, 1  ;;  %v1951_v61 = vrot.slane %v9948_v22, 2  ;;  %v1151_v39 = vpop.permute.xlu0 %1150 }
 0x22b   : > { %v9963_v45 = vmul.f32 %v9569_v24, %v9288_v63  ;;  %v1571_v13 = vadd.f32 %v1500_v59, %v1387_v49  ;;  %v11715_v48 = vrot.slane %v11690_v27, 2  ;;  %v9972_v19 = vmul.f32 %v9580_v25, %v9288_v63 }
 0x22c   : > { %v871_v26 = vsel %vm832_vm2, %v11714_v53, %v11713_v62  ;;  %v2020_v8 = vadd.f32 %v1950_v35, %v1836_v54  ;;  %v1623_v40 = vmul.f32 %v9708_v50, %v9419_v47  ;;  %v1768_v1 = vsel %vm832_vm2, %v1765_v11, %v1767_v12  ;;  %v2430_v11 = vld [vmem:[#allocation2 + $0x91] sm:$0xff] }
 0x22d   : > { %v940_v51 = vadd.f32 %v871_v26, %v725_v16  ;;  %v1056_v2 = vsel %vm1017_vm3, %v11715_v48, %v1055_v33  ;;  %v1319_v28 = vrot.slane %v9963_v45, 1  ;;  %v1651_v59 = vadd.f32 %v1621_v31, %v1571_v13 }
 0x22e   : > { %v1503_v27 = vrot.slane %v9972_v19, 2  ;;  %v1952_v56 = vsel %vm1017_vm3, %v1949_v0, %v1951_v61  ;;  %v2057_v32 = vmul.f32 %v9834_v34, %v2020_v8  ;;  %v11716_v35 = vrot.slane %v9853_v18, 1 }
 0x22f   : > { %v1125_v30 = vadd.f32 %v1056_v2, %v940_v51  ;;  %v9989_v16 = vmul.f32 %v9569_v24, %v1151_v39  ;;  %v9992_v62 = vmul.f32 %v9580_v25, %v1151_v39  ;;  %v1835_v31 = vadd.f32 %v1764_v15, %v1651_v59  ;;  %v2429_v53 = vld [vmem:[#allocation2 + $0x89] sm:$0xff] }
 0x230   : > { %v1320_v49 = vsel %vm832_vm2, %v11716_v35, %v1319_v28  ;;  %v11717_v54 = vrot.slane %v9862_v42, 2  ;;  %v9998_v45 = vmul.f32 %v9613_v43, %v1151_v39  ;;  %v2094_v13 = vadd.f32 %v9855_v38, %v2057_v32  ;;  %6907 = vmatmul.mubr.msk.f32.gmra.mrb[16].mxu1 %vm505_vm0, %v2429_v53  ;;  %7115 = vmatprep.mubr.msk.f32.mxu0 %vm505_vm0, %v2429_v53  ;;  %v2255_v42 = vpop.permute.xlu1 %2254  ;;  %v11719_v32 = vld [vmem:[#allocation55_spill] sm:$0xff]  ;;  %v11725_v2 = vld [vmem:[#allocation28_spill] sm:$0xff] }
 0x231   : > { %v1205_v26 = vadd.f32 %v1175_v41, %v1125_v30  ;;  %v10005_v51 = vmul.f32 %v9708_v50, %v1151_v39  ;;  %v10008_v15 = vmul.f32 %v9700_v3, %v1151_v39  ;;  %v2019_v41 = vadd.f32 %v1948_v7, %v1835_v31  ;;  %6909 = vmatprep.mubr.msk.f32.mxu1 %vm505_vm0, %v2430_v11 }
 0x232   : > { %v1504_v0 = vsel %vm1017_vm3, %v11717_v54, %v1503_v27  ;;  %v10012_v19 = vmul.f32 %v9713_v37, %v1151_v39  ;;  %7116 = vmatmul.mubr.msk.f32.gmra.mrb[14].mxu0 %vm505_vm0, %v2430_v11  ;;  %v2124_v8 = vmax.f32 %v2094_v13, 0.0  ;;  %v10019_v30 = vmul.f32 %v9569_v24, %v9275_v23  ;;  %v11720_v54 = vld [vmem:[#allocation54_spill] sm:$0xff] }
 0x233   : > { %11718 = vst [vmem:[#allocation43_spill] sm:$0xff] %v10005_v51  ;;  %v1389_v48 = vadd.f32 %v1320_v49, %v1205_v26  ;;  %v11492_v35 = vrot.slane %v11719_v32, 2  ;;  %v2056_v7 = vmul.f32 %v9834_v34, %v2019_v41  ;;  %v726_v39 = vmul.f32 %v9576_v46, %v11649_v17  ;;  %v11724_v17 = vld [vmem:[#allocation42_spill] sm:$0xff] }
 0x234   : > { %v10027_v31 = vmul.f32 %v9580_v25, %v9275_v23  ;;  %v2334_v11 = vmul.f32 %v2255_v42, %v2124_v8  ;;  %v11488_v26 = vrot.slane %v10019_v30, 1  ;;  %v11721_v13 = vrot.slane %v11720_v54, 1 }
 0x235   : > { %v1573_v49 = vadd.f32 %v1504_v0, %v1389_v48  ;;  %v11722_v18 = vrot.slane %v11712_v29, 1  ;;  %v2093_v0 = vadd.f32 %v9855_v38, %v2056_v7  ;;  %v1058_v8 = vsel %vm1017_vm3, %v1055_v33, %v11492_v35 }
 0x236   : > { %2364 = vst.msk [vmem:[#allocation2 + $0xa1] sm:$0xff] %vm505_vm0, %v2334_v11  ;;  %v11489_v42 = vrot.slane %v10027_v31, 2  ;;  %v1176_v29 = vmul.f32 %v9613_v43, %v9288_v63  ;;  %v10059_v33 = vmul.f32 %v9713_v37, %v9537_v9  ;;  %v11723_v11 = vld [vmem:[#allocation30_spill] sm:$0xff] }
 0x237   : > { %v873_v59 = vsel %vm832_vm2, %v11722_v18, %v11721_v13  ;;  %v1653_v41 = vadd.f32 %v1623_v40, %v1573_v49  ;;  %v10049_v18 = vmul.f32 %v9700_v3, %v9537_v9  ;;  %v2123_v40 = vmax.f32 %v2093_v0, 0.0 }
 0x238   : > { %v941_v48 = vadd.f32 %v873_v59, %v726_v39  ;;  %v1624_v59 = vmul.f32 %v9708_v50, %v9412_v55  ;;  %v1322_v39 = vsel %vm832_vm2, %v1319_v28, %v11488_v26  ;;  %v10063_v13 = vmul.f32 %v11723_v11, %v9604_v58 }
 0x239   : > { %v1837_v7 = vadd.f32 %v1768_v1, %v1653_v41  ;;  %v11491_v5 = vrot.slane %v10049_v18, 1  ;;  %v2333_v1 = vmul.f32 %v9923_v60, %v2123_v40  ;;  %v1506_v28 = vsel %vm1017_vm3, %v1503_v27, %v11489_v42  ;;  %v1589_v27 = vpop.permute.xlu0 %1588  ;;  %v2260_v42 = vpop.permute.xlu1 %2259 }
 0x23a   : > { %v1126_v49 = vadd.f32 %v1058_v8, %v941_v48  ;;  %v10068_v48 = vmul.f32 %v11723_v11, %v11724_v17  ;;  %v11490_v8 = vrot.slane %v10059_v33, 2  ;;  %v11493_v53 = vrot.slane %v10063_v13, 1 }
 0x23b   : > { %v2021_v0 = vadd.f32 %v1952_v56, %v1837_v7  ;;  %v10077_v26 = vmul.f32 %v11725_v2, %v9604_v58  ;;  %2363 = vst.msk [vmem:[#allocation2 + $0x99] sm:$0xff] %vm505_vm0, %v2333_v1  ;;  %v10084_v40 = vmul.f32 %v11725_v2, %v11724_v17  ;;  %v1770_v7 = vsel %vm832_vm2, %v1767_v12, %v11491_v5 }
 0x23c   : > { %v1206_v41 = vadd.f32 %v1176_v29, %v1126_v49  ;;  %v11494_v29 = vrot.slane %v10068_v48, 1  ;;  %v1954_v49 = vsel %vm1017_vm3, %v1951_v61, %v11490_v8  ;;  %v11727_v61 = vrot.slane %v9804_v44, 1 }
 0x23d   : > { %11726 = vst [vmem:[#allocation37_spill] sm:$0xff] %v10077_v26  ;;  %v2058_v60 = vmul.f32 %v9834_v34, %v2021_v0  ;;  %v11497_v1 = vrot.slane %v10077_v26, 2  ;;  %v11498_v12 = vrot.slane %v10084_v40, 2  ;;  %v11728_v8 = vrot.slane %v9829_v21, 1  ;;  %v11732_v21 = vld [vmem:[#allocation53_spill] sm:$0xff] }
 0x23e   : > { %v1390_v56 = vadd.f32 %v1322_v39, %v1206_v41  ;;  %v734_v39 = vmul.f32 %v9576_v46, %v9604_v58  ;;  %v889_v52 = vsel %vm832_vm2, %v11493_v53, %v11494_v29  ;;  %v10112_v35 = vmul.f32 %v9700_v3, %v1589_v27 }
 0x23f   : > { %v2095_v0 = vadd.f32 %v9855_v38, %v2058_v60  ;;  %v1338_v5 = vsel %vm832_vm2, %v11728_v8, %v11727_v61  ;;  %v11731_v53 = vrot.slane %v9832_v14, 2  ;;  %v1632_v29 = vmul.f32 %v9708_v50, %v1589_v27  ;;  %v11739_v14 = vld [vmem:[#allocation34_spill] sm:$0xff] }
 0x240   : > { %v1574_v41 = vadd.f32 %v1506_v28, %v1390_v56  ;;  %v949_v22 = vadd.f32 %v889_v52, %v734_v39  ;;  %11729 = vst [vmem:[#allocation44_spill] sm:$0xff] %v10112_v35  ;;  %v10115_v28 = vmul.f32 %v9713_v37, %v1589_v27  ;;  %v1074_v39 = vsel %vm1017_vm3, %v11497_v1, %v11498_v12  ;;  %v2432_v12 = vld [vmem:[#allocation2 + $0xa1] sm:$0xff] }
 0x241   : > { %v2125_v60 = vmax.f32 %v2095_v0, 0.0  ;;  %v11730_v52 = vrot.slane %v9807_v36, 2  ;;  %v11499_v0 = vrot.slane %v11732_v21, 2  ;;  %v10132_v26 = vmul.f32 %v9700_v3, %v9604_v58 }
 0x242   : > { %v1654_v56 = vadd.f32 %v1624_v59, %v1574_v41  ;;  %v1134_v61 = vadd.f32 %v1074_v39, %v949_v22  ;;  %v10136_v1 = vmul.f32 %v9713_v37, %v9604_v58  ;;  %v2431_v27 = vld [vmem:[#allocation2 + $0x99] sm:$0xff]  ;;  %v727_v39 = vmul.f32 %v9576_v46, %v11656_v10 }
 0x243   : > { %v1522_v8 = vsel %vm1017_vm3, %v11731_v53, %v11730_v52  ;;  %v2335_v59 = vmul.f32 %v2260_v42, %v2125_v60  ;;  %v11733_v52 = vld [vmem:[#allocation52_spill] sm:$0xff]  ;;  %6910 = vmatmul.mubr.msk.f32.gmra.mrb[18].mxu1 %vm505_vm0, %v2431_v27  ;;  %7118 = vmatprep.mubr.msk.f32.mxu0 %vm505_vm0, %v2431_v27 }
 0x244   : > { %v1838_v41 = vadd.f32 %v1770_v7, %v1654_v56  ;;  %v1214_v53 = vadd.f32 %v9838_v57, %v1134_v61  ;;  %v11734_v42 = vrot.slane %v11733_v52, 1  ;;  %v11735_v7 = vrot.slane %v11720_v54, 1  ;;  %6912 = vmatprep.mubr.msk.f32.mxu1 %vm505_vm0, %v2432_v12  ;;  %7119 = vmatmul.mubr.msk.f32.gmra.mrb[16].mxu0 %vm505_vm0, %v2432_v12 }
 0x245   : > { %2365 = vst.msk [vmem:[#allocation2 + $0xa9] sm:$0xff] %vm505_vm0, %v2335_v59  ;;  %v1177_v57 = vmul.f32 %v9613_v43, %v9275_v23  ;;  %v11503_v61 = vrot.slane %v10132_v26, 1  ;;  %v11501_v10 = vrot.slane %v10136_v1, 2  ;;  %v10156_v54 = vmul.f32 %v9569_v24, %v9419_v47 }
 0x246   : > { %v875_v60 = vsel %vm832_vm2, %v11735_v7, %v11734_v42  ;;  %v2022_v56 = vadd.f32 %v1954_v49, %v1838_v41  ;;  %v1398_v22 = vadd.f32 %v1338_v5, %v1214_v53  ;;  %v10160_v49 = vmul.f32 %v9580_v25, %v9419_v47 }
 0x247   : > { %v942_v51 = vadd.f32 %v875_v60, %v727_v39  ;;  %v11736_v41 = vrot.slane %v11719_v32, 2  ;;  %v1625_v5 = vmul.f32 %v9708_v50, %v9537_v9  ;;  %v11737_v53 = vrot.slane %v10049_v18, 1 }
 0x248   : > { %v2059_v59 = vmul.f32 %v9834_v34, %v2022_v56  ;;  %v1582_v42 = vadd.f32 %v1522_v8, %v1398_v22  ;;  %v1323_v60 = vrot.slane %v10156_v54, 1  ;;  %v1507_v56 = vrot.slane %v10160_v49, 2  ;;  %v2265_v8 = vpop.permute.xlu1 %2264 }
 0x249   : > { %v1060_v27 = vsel %vm1017_vm3, %v11736_v41, %v11499_v0  ;;  %v1772_v39 = vsel %vm832_vm2, %v11737_v53, %v11503_v61  ;;  %v11738_v41 = vrot.slane %v10059_v33, 2  ;;  %v10187_v18 = vmul.f32 %v11723_v11, %v11739_v14 }
 0x24a   : > { %v1127_v7 = vadd.f32 %v1060_v27, %v942_v51  ;;  %v2096_v32 = vadd.f32 %v9855_v38, %v2059_v59  ;;  %v10191_v12 = vmul.f32 %v11725_v2, %v11739_v14  ;;  %v1594_v51 = vpop.permute.xlu0 %1593  ;;  %v10193_v22 = vadd.f32 %v1632_v29, %v1582_v42 }
 0x24b   : > { %v1956_v0 = vsel %vm1017_vm3, %v11738_v41, %v11501_v10  ;;  %v11740_v49 = vrot.slane %v10019_v30, 1  ;;  %v735_v33 = vmul.f32 %v9576_v46, %v11724_v17  ;;  %v11741_v11 = vrot.slane %v10027_v31, 2 }
 0x24c   : > { %v1207_v54 = vadd.f32 %v1177_v57, %v1127_v7  ;;  %v2126_v27 = vmax.f32 %v2096_v32, 0.0  ;;  %v890_v2 = vrot.slane %v10187_v18, 1  ;;  %v11502_v41 = vrot.slane %v10191_v12, 2 }
 0x24d   : > { %v1324_v59 = vsel %vm832_vm2, %v11740_v49, %v1323_v60  ;;  %v1508_v53 = vsel %vm1017_vm3, %v11741_v11, %v1507_v56  ;;  %v11742_v29 = vrot.slane %v9989_v16, 1  ;;  %v11743_v57 = vrot.slane %v9804_v44, 1  ;;  %v2433_v49 = vld [vmem:[#allocation2 + $0xa9] sm:$0xff] }
 0x24e   : > { %v1391_v10 = vadd.f32 %v1324_v59, %v1207_v54  ;;  %v11744_v42 = vrot.slane %v9992_v62, 2  ;;  %v11745_v7 = vrot.slane %v9807_v36, 2  ;;  %v10216_v31 = vmul.f32 %v9700_v3, %v1594_v51  ;;  %6913 = vmatmul.mubr.msk.f32.gmra.mrb[20].mxu1 %vm505_vm0, %v2433_v49  ;;  %7121 = vmatprep.mubr.msk.f32.mxu0 %vm505_vm0, %v2433_v49 }
 0x24f   : > { %v1340_v30 = vsel %vm832_vm2, %v11743_v57, %v11742_v29  ;;  %v2336_v18 = vmul.f32 %v2265_v8, %v2126_v27  ;;  %v11746_v11 = vrot.slane %v10068_v48, 1  ;;  %v1633_v59 = vmul.f32 %v9708_v50, %v1594_v51 }
 0x250   : > { %v1524_v32 = vsel %vm1017_vm3, %v11745_v7, %v11744_v42  ;;  %v10223_v44 = vmul.f32 %v9713_v37, %v1594_v51  ;;  %v1575_v29 = vadd.f32 %v1508_v53, %v1391_v10  ;;  %v11747_v57 = vrot.slane %v10084_v40, 2  ;;  %v11748_v7 = vld [vmem:[#allocation29_spill] sm:$0xff] }
 0x251   : > { %v891_v54 = vsel %vm832_vm2, %v11746_v11, %v890_v2  ;;  %v1785_v8 = vrot.slane %v10216_v31, 1  ;;  %2366 = vst.msk [vmem:[#allocation2 + $0xb1] sm:$0xff] %vm505_vm0, %v2336_v18  ;;  %v728_v51 = vmul.f32 %v9576_v46, %v11670_v4  ;;  %v10239_v10 = vmul.f32 %v9569_v24, %v9412_v55 }
 0x252   : > { %v950_v36 = vadd.f32 %v891_v54, %v735_v33  ;;  %v1076_v42 = vsel %vm1017_vm3, %v11747_v57, %v11502_v41  ;;  %v10243_v40 = vmul.f32 %v9580_v25, %v9412_v55  ;;  %v1655_v33 = vadd.f32 %v1625_v5, %v1575_v29  ;;  %v11751_v57 = vld [vmem:[#allocation27_spill] sm:$0xff] }
 0x253   : > { %v1626_v53 = vmul.f32 %v9708_v50, %v9604_v58  ;;  %v11749_v31 = vrot.slane %v11748_v7, 1  ;;  %v11750_v49 = vrot.slane %v11733_v52, 1  ;;  %v11504_v4 = vrot.slane %v10239_v10, 1  ;;  %v1599_v52 = vpop.permute.xlu0 %1598 }
 0x254   : > { %v1135_v27 = vadd.f32 %v1076_v42, %v950_v36  ;;  %v11506_v11 = vrot.slane %v10243_v40, 2  ;;  %v11505_v48 = vrot.slane %v11751_v57, 2  ;;  %v1839_v41 = vadd.f32 %v1772_v39, %v1655_v33 }
 0x255   : > { %v877_v18 = vsel %vm832_vm2, %v11750_v49, %v11749_v31  ;;  %v1178_v29 = vmul.f32 %v9613_v43, %v9419_v47  ;;  %v10260_v36 = vmul.f32 %v9700_v3, %v11724_v17  ;;  %v11752_v42 = vrot.slane %v10112_v35, 1 }
 0x256   : > { %v943_v54 = vadd.f32 %v877_v18, %v728_v51  ;;  %v1215_v5 = vadd.f32 %v9810_v6, %v1135_v27  ;;  %v11753_v51 = vrot.slane %v11732_v21, 2  ;;  %v1326_v6 = vsel %vm832_vm2, %v1323_v60, %v11504_v4  ;;  %v4200_v4 = vld [vmem:[#allocation8 + $0xb0] sm:$0xff] }
 0x257   : > { %v10265_v31 = vsel %vm832_vm2, %v11752_v42, %v1785_v8  ;;  %v10277_v33 = vmul.f32 %v9713_v37, %v11724_v17  ;;  %v2023_v27 = vadd.f32 %v1956_v0, %v1839_v41  ;;  %v11508_v42 = vrot.slane %v10260_v36, 1 }
 0x258   : > { %v1062_v39 = vsel %vm1017_vm3, %v11753_v51, %v11505_v48  ;;  %v1399_v49 = vadd.f32 %v1340_v30, %v1215_v5  ;;  %v1510_v61 = vsel %vm1017_vm3, %v1507_v56, %v11506_v11  ;;  %v736_v51 = vmul.f32 %v9576_v46, %v11739_v14  ;;  %v4201_v48 = vld [vmem:[#allocation8 + $0xb8] sm:$0xff] }
 0x259   : > { %v1128_v18 = vadd.f32 %v1062_v39, %v943_v54  ;;  %v10287_v60 = vmul.f32 %v9700_v3, %v1599_v52  ;;  %v2060_v0 = vmul.f32 %v9834_v34, %v2023_v27  ;;  %v1634_v54 = vmul.f32 %v9708_v50, %v1599_v52  ;;  %v2434_v5 = vld [vmem:[#allocation2 + $0xb1] sm:$0xff] }
 0x25a   : > { %v1583_v41 = vadd.f32 %v1524_v32, %v1399_v49  ;;  %v11754_v56 = vrot.slane %v10132_v26, 1  ;;  %v951_v11 = vadd.f32 %v890_v2, %v736_v51  ;;  %v10298_v35 = vmul.f32 %v9713_v37, %v1599_v52  ;;  %6915 = vmatprep.mubr.msk.f32.mxu1 %vm505_vm0, %v2434_v5  ;;  %7122 = vmatmul.mubr.msk.f32.gmra.mrb[18].mxu0 %vm505_vm0, %v2434_v5  ;;  %v2270_v2 = vpop.permute.xlu1 %2269 }
 0x25b   : > { %v1208_v30 = vadd.f32 %v1178_v29, %v1128_v18  ;;  %v1787_v21 = vrot.slane %v10287_v60, 1  ;;  %v2097_v32 = vadd.f32 %v9855_v38, %v2060_v0  ;;  %v11755_v27 = vrot.slane %v10277_v33, 2 }
 0x25c   : > { %v1774_v39 = vsel %vm832_vm2, %v11754_v56, %v11508_v42  ;;  %v11756_v49 = vrot.slane %v10136_v1, 2  ;;  %v7395_v18 = vpack.c.bf16 %v4201_v48, %v4200_v4  ;;  %v10308_v51 = vadd.f32 %v1633_v59, %v1583_v41 }
 0x25d   : > { %v1392_v29 = vadd.f32 %v1326_v6, %v1208_v30  ;;  %v11757_v52 = vrot.slane %v10191_v12, 2  ;;  %v10313_v56 = vsel %vm832_vm2, %v1785_v8, %v1787_v21  ;;  %v1971_v5 = vrot.slane %v10298_v35, 2  ;;  %v11758_v12 = vld [vmem:[#allocation24_spill] sm:$0xff] }
 0x25e   : > { %v1958_v26 = vsel %vm1017_vm3, %v11756_v49, %v11755_v27  ;;  %v2127_v0 = vmax.f32 %v2097_v32, 0.0  ;;  %7396 = vmatprep.subr.bf16.mxu0 %v7395_v18  ;;  %v730_v1 = vmul.f32 %v9576_v46, %v9275_v23  ;;  %v10320_v48 = vmul.f32 %v9569_v24, %v9604_v58  ;;  %v11760_v49 = vld [vmem:[#allocation32_spill] sm:$0xff] }
 0x25f   : > { %v1136_v60 = vadd.f32 %v11757_v52, %v951_v11  ;;  %v1576_v6 = vadd.f32 %v1510_v61, %v1392_v29  ;;  %7398 = vmatpush3.bf16.msra.mxu0 %v7395_v18  ;;  %v1063_v4 = vrot.slane %v11758_v12, 2  ;;  %v10326_v8 = vmul.f32 %v9580_v25, %v9604_v58  ;;  %v11762_v52 = vld [vmem:[#allocation25_spill] sm:$0xff] }
 0x260   : > { %v1693_v61 = vmul.f32 %v9700_v3, %v11739_v14  ;;  %v2337_v11 = vmul.f32 %v2270_v2, %v2127_v0  ;;  %v1628_v23 = vmul.f32 %v9708_v50, %v11739_v14  ;;  %v1877_v30 = vmul.f32 %v9713_v37, %v11739_v14 }
 0x261   : > { %v1216_v59 = vadd.f32 %v9998_v45, %v1136_v60  ;;  %v1656_v41 = vadd.f32 %v1626_v53, %v1576_v6  ;;  %v11759_v45 = vrot.slane %v9989_v16, 1  ;;  %v1329_v29 = vrot.slane %v10320_v48, 1  ;;  %v11764_v6 = vld [vmem:[#allocation56_spill] sm:$0xff] }
 0x262   : > { %v1513_v27 = vrot.slane %v10326_v8, 2  ;;  %v11761_v18 = vrot.slane %v11760_v49, 1  ;;  %v11763_v60 = vrot.slane %v11762_v52, 1  ;;  %2367 = vst.msk [vmem:[#allocation2 + $0xb9] sm:$0xff] %vm505_vm0, %v2337_v11  ;;  %v1775_v2 = vrot.slane %v1693_v61, 1 }
 0x263   : > { %v1400_v32 = vadd.f32 %v11759_v45, %v1216_v59  ;;  %v1840_v53 = vadd.f32 %v1774_v39, %v1656_v41  ;;  %v11509_v37 = vrot.slane %v11764_v6, 2  ;;  %v11765_v16 = vrot.slane %v9992_v62, 2 }
 0x264   : > { %v881_v3 = vsel %vm832_vm2, %v11763_v60, %v11761_v18  ;;  %v1180_v12 = vmul.f32 %v9613_v43, %v9537_v9  ;;  %v1245_v45 = vmul.f32 %v9569_v24, %v9537_v9  ;;  %v1429_v42 = vmul.f32 %v9580_v25, %v9537_v9 }
 0x265   : > { %v945_v0 = vadd.f32 %v881_v3, %v730_v1  ;;  %v1584_v59 = vadd.f32 %v11765_v16, %v1400_v32  ;;  %v2024_v18 = vadd.f32 %v1958_v26, %v1840_v53  ;;  %v1959_v60 = vrot.slane %v1877_v30, 2  ;;  %v11766_v1 = vld [vmem:[#allocation50_spill] sm:$0xff] }
 0x266   : > { %v1066_v39 = vsel %vm1017_vm3, %v1063_v4, %v11509_v37  ;;  %v11767_v61 = vrot.slane %v11766_v1, 1  ;;  %v1327_v32 = vrot.slane %v1245_v45, 1  ;;  %v1511_v3 = vrot.slane %v1429_v42, 2  ;;  %v2275_v45 = vpop.permute.xlu1 %2274 }
 0x267   : > { %v1664_v11 = vadd.f32 %v1634_v54, %v1584_v59  ;;  %v1130_v41 = vadd.f32 %v1066_v39, %v945_v0  ;;  %v2061_v16 = vmul.f32 %v9834_v34, %v2024_v18  ;;  %v11768_v24 = vrot.slane %v9847_v20, 2 }
 0x268   : > { %v1778_v62 = vsel %vm832_vm2, %v1775_v2, %v11767_v61  ;;  %v729_v26 = vmul.f32 %v9576_v46, %v9288_v63  ;;  %v11769_v30 = vrot.slane %v11762_v52, 1  ;;  %v11770_v53 = vrot.slane %v11748_v7, 1 }
 0x269   : > { %v1962_v25 = vsel %vm1017_vm3, %v1959_v60, %v11768_v24  ;;  %v1848_v61 = vadd.f32 %v1787_v21, %v1664_v11  ;;  %v1210_v54 = vadd.f32 %v1180_v12, %v1130_v41  ;;  %v1330_v42 = vsel %vm832_vm2, %v1327_v32, %v1329_v29  ;;  %v10392_v11 = vld [vmem:[#allocation2 + $0xb9] sm:$0xff] }
 0x26a   : > { %v879_v37 = vsel %vm832_vm2, %v11770_v53, %v11769_v30  ;;  %v11771_v0 = vrot.slane %v11751_v57, 2  ;;  %v2098_v18 = vadd.f32 %v9855_v38, %v2061_v16  ;;  %v1514_v63 = vsel %vm1017_vm3, %v1511_v3, %v1513_v27  ;;  %6916 = vmatmul.mubr.msk.f32.gmra.mrb[22].mxu1 %vm505_vm0, %v10392_v11  ;;  %7124 = vmatprep.mubr.msk.f32.mxu0 %vm505_vm0, %v10392_v11  ;;  %v7919_v30 = vld [vmem:[#allocation3 + $0x4] ss:$0 sm:$0xff]  ;;  %v7920_v53 = vld [vmem:[#allocation3 + $0x5] ss:$0 sm:$0xff] }
 0x26b   : > { %v944_v46 = vadd.f32 %v879_v37, %v729_v26  ;;  %v1179_v7 = vmul.f32 %v9613_v43, %v9412_v55  ;;  %v10384_v21 = vadd.f32 %v1971_v5, %v1848_v61  ;;  %v1394_v52 = vadd.f32 %v1330_v42, %v1210_v54  ;;  %v11776_v54 = vld [vmem:[#allocation35_spill] sm:$0xff] }
 0x26c   : > { %v1064_v59 = vsel %vm1017_vm3, %v11771_v0, %v1063_v4  ;;  %v11772_v57 = vrot.slane %v10239_v10, 1  ;;  %v11773_v12 = vrot.slane %v10243_v40, 2  ;;  %v2128_v41 = vmax.f32 %v2098_v18, 0.0  ;;  %v11778_v0 = vld [vmem:[#allocation31_spill] sm:$0xff]  ;;  %v11780_v18 = vld [vmem:[#allocation26_spill] sm:$0xff] }
 0x26d   : > { %v1129_v37 = vadd.f32 %v1064_v59, %v944_v46  ;;  %v1627_v43 = vmul.f32 %v9708_v50, %v11724_v17  ;;  %v11774_v16 = vrot.slane %v10260_v36, 1  ;;  %v1578_v10 = vadd.f32 %v1514_v63, %v1394_v52  ;;  %v11781_v46 = vld [vmem:[#allocation36_spill] sm:$0xff] }
 0x26e   : > { %v1328_v4 = vsel %vm832_vm2, %v11772_v57, %v1327_v32  ;;  %v1512_v39 = vsel %vm1017_vm3, %v11773_v12, %v1511_v3  ;;  %v11775_v40 = vrot.slane %v10277_v33, 2  ;;  %v7918_v3 = vld [vmem:[#allocation3] ss:$0 sm:$0xff]  ;;  %v10408_v50 = vmul.f32 %v7919_v30, %v11739_v14  ;;  %v7921_v12 = vld [vmem:[#allocation3 + $0x3] ss:$0 sm:$0xff] }
 0x26f   : > { %v1776_v24 = vsel %vm832_vm2, %v11774_v16, %v1775_v2  ;;  %v732_v26 = vmul.f32 %v7918_v3, %v9412_v55  ;;  %v2338_v36 = vmul.f32 %v2275_v45, %v2128_v41  ;;  %v1209_v2 = vadd.f32 %v1179_v7, %v1129_v37  ;;  %v2285_v45 = vpop.permute.xlu1 %2284 }
 0x270   : > { %v1960_v32 = vsel %vm1017_vm3, %v11775_v40, %v1959_v60  ;;  %v10411_v61 = vmul.f32 %v7920_v53, %v11739_v14  ;;  %v11777_v42 = vrot.slane %v11776_v54, 1  ;;  %v11779_v59 = vrot.slane %v11778_v0, 1 }
 0x271   : > { %v1658_v60 = vadd.f32 %v1628_v23, %v1578_v10  ;;  %v1067_v63 = vrot.slane %v11780_v18, 2  ;;  %v1069_v52 = vrot.slane %v11781_v46, 2  ;;  %2368 = vst.msk [vmem:[#allocation2 + $0xc1] sm:$0xff] %vm505_vm0, %v2338_v36  ;;  %v1393_v7 = vadd.f32 %v1328_v4, %v1209_v2  ;;  %v11783_v4 = vld [vmem:[#allocation39_spill] sm:$0xff] }
 0x272   : > { %v885_v33 = vsel %vm832_vm2, %v11779_v59, %v11777_v42  ;;  %v1333_v57 = vrot.slane %v10408_v50, 1  ;;  %v1182_v41 = vmul.f32 %v7921_v12, %v11724_v17  ;;  %v1247_v37 = vmul.f32 %v7919_v30, %v11724_v17 }
 0x273   : > { %v947_v55 = vadd.f32 %v885_v33, %v732_v26  ;;  %v1842_v16 = vadd.f32 %v1778_v62, %v1658_v60  ;;  %v1517_v40 = vrot.slane %v10411_v61, 2  ;;  %v1070_v23 = vsel %vm1017_vm3, %v1067_v63, %v1069_v52 }
 0x274   : > { %v1431_v10 = vmul.f32 %v7920_v53, %v11724_v17  ;;  %v1577_v26 = vadd.f32 %v1512_v39, %v1393_v7  ;;  %v1331_v59 = vrot.slane %v1247_v37, 1  ;;  %v11782_v36 = vrot.slane %v10008_v15, 1  ;;  %v2280_v39 = vpop.permute.xlu0 %2279  ;;  %v11788_v37 = vld [vmem:[#allocation38_spill] sm:$0xff] }
 0x275   : > { %v1132_v42 = vadd.f32 %v1070_v23, %v947_v55  ;;  %v11784_v2 = vrot.slane %v11783_v4, 1  ;;  %v2026_v18 = vadd.f32 %v1962_v25, %v1842_v16  ;;  %v731_v30 = vmul.f32 %v7918_v3, %v9419_v47 }
 0x276   : > { %v1515_v46 = vrot.slane %v1431_v10, 2  ;;  %v11785_v62 = vrot.slane %v11778_v0, 1  ;;  %v11786_v61 = vrot.slane %v11760_v49, 1  ;;  %v1657_v17 = vadd.f32 %v1627_v43, %v1577_v26  ;;  %v10451_v10 = vpop.permute.xlu1 %2294 }
 0x277   : > { %v1782_v33 = vsel %vm832_vm2, %v11784_v2, %v11782_v36  ;;  %v1212_v53 = vadd.f32 %v1182_v41, %v1132_v42  ;;  %v1334_v55 = vsel %vm832_vm2, %v1331_v59, %v1333_v57  ;;  %v11787_v7 = vrot.slane %v10012_v19, 2 }
 0x278   : > { %v883_v60 = vsel %vm832_vm2, %v11786_v61, %v11785_v62  ;;  %v11789_v25 = vrot.slane %v11788_v37, 2  ;;  %v2063_v47 = vmul.f32 %v9834_v34, %v2026_v18  ;;  %v11790_v49 = vrot.slane %v11764_v6, 2 }
 0x279   : > { %v946_v0 = vadd.f32 %v883_v60, %v731_v30  ;;  %v1181_v43 = vmul.f32 %v7921_v12, %v9604_v58  ;;  %v1841_v41 = vadd.f32 %v1776_v24, %v1657_v17  ;;  %v1396_v26 = vadd.f32 %v1334_v55, %v1212_v53  ;;  %v10466_v30 = vld [vmem:[#allocation2 + $0xc1] sm:$0xff]  ;;  %v10482_v17 = vpop.permute.xlu0 %2289 }
 0x27a   : > { %v1966_v16 = vsel %vm1017_vm3, %v11789_v25, %v11787_v7  ;;  %v1068_v23 = vsel %vm1017_vm3, %v11790_v49, %v1067_v63  ;;  %v1518_v42 = vsel %vm1017_vm3, %v1515_v46, %v1517_v40  ;;  %v1332_v36 = vsel %vm832_vm2, %v1329_v29, %v1331_v59  ;;  %6918 = vmatprep.mubr.msk.f32.mxu1 %vm505_vm0, %v10466_v30 }
 0x27b   : > { %v2100_v2 = vadd.f32 %v9855_v38, %v2063_v47  ;;  %v1131_v18 = vadd.f32 %v1068_v23, %v946_v0  ;;  %v1516_v6 = vsel %vm1017_vm3, %v1513_v27, %v1515_v46  ;;  %v11791_v63 = vrot.slane %v11783_v4, 1  ;;  %7125 = vmatmul.mubr.msk.f32.gmra.mrb[20].mxu0 %vm505_vm0, %v10466_v30  ;;  %v11795_v46 = vld [vmem:[#allocation33_spill] sm:$0xff] }
 0x27c   : > { %v11792_v58 = vrot.slane %v11766_v1, 1  ;;  %v2025_v62 = vadd.f32 %v1960_v32, %v1841_v41  ;;  %v1580_v61 = vadd.f32 %v1518_v42, %v1396_v26  ;;  %v1846_v48 = vadd.f32 %v10265_v31, %v10193_v22  ;;  %v11798_v0 = vld [vmem:[#allocation37_spill] sm:$0xff] }
 0x27d   : > { %v2130_v8 = vmax.f32 %v2100_v2, 0.0  ;;  %v1211_v29 = vadd.f32 %v1181_v43, %v1131_v18  ;;  %v11793_v27 = vrot.slane %v10223_v44, 2  ;;  %v11794_v1 = vrot.slane %v10115_v28, 2  ;;  %v2305_v43 = vpop.permute.xlu1 %2304  ;;  %v11802_v2 = vld [vmem:[#allocation51_spill] sm:$0xff] }
 0x27e   : > { %v1780_v24 = vsel %vm832_vm2, %v11792_v58, %v11791_v63  ;;  %v733_v32 = vmul.f32 %v7918_v3, %v9537_v9  ;;  %v2062_v4 = vmul.f32 %v9834_v34, %v2025_v62  ;;  %v1660_v60 = vadd.f32 %v11795_v46, %v1580_v61  ;;  %v11806_v62 = vld [vmem:[#allocation46_spill] sm:$0xff] }
 0x27f   : > { %v1970_v59 = vsel %vm1017_vm3, %v11794_v1, %v11793_v27  ;;  %v11796_v55 = vrot.slane %v10063_v13, 1  ;;  %v11797_v22 = vrot.slane %v11776_v54, 1  ;;  %v2340_v7 = vmul.f32 %v2285_v45, %v2130_v8  ;;  %v2409_v8 = vld [vmem:[#allocation8 + $0x8] sm:$0xff] }
 0x280   : > { %v2030_v53 = vadd.f32 %v1970_v59, %v1846_v48  ;;  %v1395_v25 = vadd.f32 %v1332_v36, %v1211_v29  ;;  %v11799_v49 = vrot.slane %v11798_v0, 2  ;;  %v2099_v3 = vadd.f32 %v9855_v38, %v2062_v4  ;;  %v2411_v29 = vld [vmem:[#allocation8 + $0x18] sm:$0xff]  ;;  %v2300_v59 = vpop.permute.xlu0 %2299 }
 0x281   : > { %v887_v31 = vsel %vm832_vm2, %v11797_v22, %v11796_v55  ;;  %v1844_v23 = vadd.f32 %v1782_v33, %v1660_v60  ;;  %v1183_v26 = vmul.f32 %v7921_v12, %v11739_v14  ;;  %2370 = vst.msk [vmem:[#allocation2 + $0xd1] sm:$0xff] %vm505_vm0, %v2340_v7  ;;  %v11800_v54 = vrot.slane %v11788_v37, 2  ;;  %v11804_v12 = vld [vmem:[#allocation40_spill] sm:$0xff]  ;;  %v2408_v37 = vld [vmem:[#allocation8] sm:$0xff]  ;;  %v2315_v55 = vpop.permute.xlu1 %2314 }
 0x282   : > { %v948_v47 = vadd.f32 %v887_v31, %v733_v32  ;;  %v1072_v9 = vsel %vm1017_vm3, %v1069_v52, %v11799_v49  ;;  %v2067_v41 = vmul.f32 %v9834_v34, %v2030_v53  ;;  %v1579_v13 = vadd.f32 %v1516_v6, %v1395_v25 }
 0x283   : > { %v11801_v45 = vrot.slane %v9847_v20, 2  ;;  %v11803_v52 = vrot.slane %v11802_v2, 1  ;;  %v2129_v18 = vmax.f32 %v2099_v3, 0.0  ;;  %v2028_v63 = vadd.f32 %v1966_v16, %v1844_v23  ;;  %v11811_v23 = vld [vmem:[#allocation43_spill] sm:$0xff] }
 0x284   : > { %v1133_v36 = vadd.f32 %v1072_v9, %v948_v47  ;;  %v2104_v14 = vadd.f32 %v9855_v38, %v2067_v41  ;;  %v11805_v58 = vrot.slane %v11804_v12, 2  ;;  %v1659_v20 = vadd.f32 %v11806_v62, %v1579_v13  ;;  %v3088_v13 = vld [vmem:[#allocation8 + $0x40] sm:$0xff] }
 0x285   : > { %v1964_v42 = vsel %vm1017_vm3, %v11801_v45, %v11800_v54  ;;  %v1336_v33 = vsel %vm832_vm2, %v1333_v57, %v11803_v52  ;;  %v2069_v48 = vmul.f32 %v9834_v34, %v10384_v21  ;;  %v1847_v50 = vadd.f32 %v10313_v56, %v10308_v51  ;;  %v2410_v57 = vld [vmem:[#allocation8 + $0x10] sm:$0xff]  ;;  %v4568_v51 = vld [vmem:[#allocation8 + $0xc0] sm:$0xff]  ;;  %v4569_v56 = vld [vmem:[#allocation8 + $0xc8] sm:$0xff]  ;;  %v2310_v45 = vpop.permute.xlu0 %2309 }
 0x286   : > { %v1520_v6 = vsel %vm1017_vm3, %v1517_v40, %v11805_v58  ;;  %v1213_v61 = vadd.f32 %v1183_v26, %v1133_v36  ;;  %v2339_v16 = vmul.f32 %v2280_v39, %v2129_v18  ;;  %v2065_v27 = vmul.f32 %v9834_v34, %v2028_v63  ;;  %v3089_v54 = vld [vmem:[#allocation8 + $0x48] sm:$0xff] }
 0x287   : > { %v2134_v1 = vmax.f32 %v2104_v14, 0.0  ;;  %v11807_v40 = vrot.slane %v10223_v44, 2  ;;  %v1843_v4 = vadd.f32 %v1780_v24, %v1659_v20  ;;  %v2106_v21 = vadd.f32 %v9855_v38, %v2069_v48  ;;  %v11808_v24 = vld [vmem:[#allocation44_spill] sm:$0xff] }
 0x288   : > { %v1397_v46 = vadd.f32 %v1336_v33, %v1213_v61  ;;  %2369 = vst.msk [vmem:[#allocation2 + $0xc9] sm:$0xff] %vm505_vm0, %v2339_v16  ;;  %v2102_v39 = vadd.f32 %v9855_v38, %v2065_v27  ;;  %v7359_v22 = vpack.c.bf16 %v2409_v8, %v2408_v37  ;;  %v7363_v31 = vpack.c.bf16 %v2411_v29, %v2410_v57  ;;  %v10546_v63 = vld [vmem:[#allocation2 + $0xd1] sm:$0xff]  ;;  %v2378_v61 = vld [vmem:[#allocation2] sm:$0xff]  ;;  %v2379_v16 = vld [vmem:[#allocation2 + $0x8] sm:$0xff] }
 0x289   : > { %v1972_v32 = vsel %vm1017_vm3, %v11807_v40, %v1971_v5  ;;  %v2344_v53 = vmul.f32 %v2305_v43, %v2134_v1  ;;  %v2027_v35 = vadd.f32 %v1964_v42, %v1843_v4  ;;  %v2136_v44 = vmax.f32 %v2106_v21, 0.0  ;;  %v3090_v57 = vld [vmem:[#allocation8 + $0x50] sm:$0xff]  ;;  %v3091_v29 = vld [vmem:[#allocation8 + $0x58] sm:$0xff]  ;;  %v10592_v4 = vld [vmem:[#allocation2 + $0x1a] sm:$0xff] }
 0x28a   : > { %v2031_v60 = vadd.f32 %v1972_v32, %v1847_v50  ;;  %v1581_v7 = vadd.f32 %v1520_v6, %v1397_v46  ;;  %v11809_v25 = vrot.slane %v11808_v24, 1  ;;  %v11810_v47 = vrot.slane %v10008_v15, 1  ;;  %7360 = vmatprep.subr.bf16.mxu1 %v7359_v22  ;;  %v2380_v1 = vld [vmem:[#allocation2 + $0x10] sm:$0xff]  ;;  %v4570_v40 = vld [vmem:[#allocation8 + $0xd0] sm:$0xff]  ;;  %v2381_v46 = vld [vmem:[#allocation2 + $0x18] sm:$0xff] }
 0x28b   : > { %v2132_v49 = vmax.f32 %v2102_v39, 0.0  ;;  %2374 = vst.msk [vmem:[#allocation2 + $0xf1] sm:$0xff] %vm505_vm0, %v2344_v53  ;;  %v10531_v9 = vpack.c.bf16 %v4569_v56, %v4568_v51  ;;  %v2064_v3 = vmul.f32 %v9834_v34, %v2027_v35  ;;  %v2346_v41 = vmul.f32 %v2315_v55, %v2136_v44  ;;  %7362 = vmatpush3.bf16.msra.mxu1 %v7359_v22  ;;  %v4571_v32 = vld [vmem:[#allocation8 + $0xd8] sm:$0xff]  ;;  %v2382_v21 = vld [vmem:[#allocation2 + $0x20] sm:$0xff]  ;;  %v4938_v56 = vld [vmem:[#allocation8 + $0xe0] sm:$0xff] }
 0x28c   : > { %v2068_v5 = vmul.f32 %v9834_v34, %v2031_v60  ;;  %v1784_v0 = vsel %vm832_vm2, %v11810_v47, %v11809_v25  ;;  %v1661_v43 = vadd.f32 %v11811_v23, %v1581_v7  ;;  %7364 = vmatprep.subr.bf16.mxu1 %v7363_v31  ;;  %v11812_v52 = vrot.slane %v10115_v28, 2  ;;  %v10598_v51 = vld [vmem:[#allocation2 + $0x22] sm:$0xff]  ;;  %v10603_v53 = vld [vmem:[#allocation2 + $0x2a] sm:$0xff]  ;;  %v10613_v35 = vld [vmem:[#allocation2 + $0x32] sm:$0xff] }
 0x28d   : > { %v2342_v15 = vmul.f32 %v10451_v10, %v2132_v49  ;;  %7400 = vmatprep.subr.bf16.mxu0 %v10531_v9  ;;  %v2101_v42 = vadd.f32 %v9855_v38, %v2064_v3  ;;  %2377 = vst.msk [vmem:[#allocation2 + $0x101] sm:$0xf] %vm2376_vm4, %v2346_v41  ;;  %v11813_v33 = vrot.slane %v10012_v19, 2  ;;  %v7367_v10 = vpack.c.bf16 %v3089_v54, %v3088_v13  ;;  %v4939_v39 = vld [vmem:[#allocation8 + $0xe8] sm:$0xff]  ;;  %v2383_v55 = vld [vmem:[#allocation2 + $0x28] sm:$0xff]  ;;  %v10645_v49 = vld [vmem:[#allocation2 + $0x50] sm:$0xff] }
 0x28e   : > { %v2105_v26 = vadd.f32 %v9855_v38, %v2068_v5  ;;  %v1845_v36 = vadd.f32 %v1784_v0, %v1661_v43  ;;  %v7403_v60 = vpack.c.bf16 %v4571_v32, %v4570_v40  ;;  %v10608_v22 = vpack.c.bf16 %v4939_v39, %v4938_v56  ;;  %v11819_v7 = vld [vmem:[#allocation22_spill] sm:$0xff]  ;;  %v10629_v24 = vld [vmem:[#allocation2 + $0x40] sm:$0xff]  ;;  %v10637_v47 = vld [vmem:[#allocation2 + $0x4a] sm:$0xff] }
 0x28f   : > { %2372 = vst.msk [vmem:[#allocation2 + $0xe1] sm:$0xff] %vm505_vm0, %v2342_v15  ;;  %v1968_v18 = vsel %vm1017_vm3, %v11813_v33, %v11812_v52  ;;  %v2131_v14 = vmax.f32 %v2101_v42, 0.0  ;;  %v10548_v58 = vld [vmem:[#allocation2 + $0xc9] sm:$0xff]  ;;  %7366 = vmatpush3.bf16.msra.mxu1 %v7363_v31  ;;  %v10620_v44 = vld [vmem:[#allocation2 + $0x3a] sm:$0xff]  ;;  %v10679_v15 = vld [vmem:[#allocation2 + $0x72] sm:$0xff] }
 0x290   : > { %v2135_v2 = vmax.f32 %v2105_v26, 0.0  ;;  %v2029_v12 = vadd.f32 %v1968_v18, %v1845_v36  ;;  %6919 = vmatmul.mubr.msk.f32.gmra.mrb[24].mxu1 %vm505_vm0, %v10548_v58  ;;  %7127 = vmatprep.mubr.msk.f32.mxu0 %vm505_vm0, %v10548_v58  ;;  %v10611_v31 = vld [vmem:[#allocation2 + $0x30] sm:$0xff]  ;;  %v10624_v5 = vld [vmem:[#allocation2 + $0x38] sm:$0xff]  ;;  %v10631_v25 = vld [vmem:[#allocation2 + $0x42] sm:$0xff] }
 0x291   : > { %v2341_v28 = vmul.f32 %v10482_v17, %v2131_v14  ;;  %6921 = vmatprep.mubr.msk.f32.mxu1 %vm505_vm0, %v10546_v63  ;;  %7128 = vmatmul.mubr.msk.f32.gmra.mrb[22].mxu0 %vm505_vm0, %v10546_v63  ;;  %v10641_v0 = vld [vmem:[#allocation2 + $0x48] sm:$0xff]  ;;  %v10653_v3 = vld [vmem:[#allocation2 + $0x5a] sm:$0xff]  ;;  %v10677_v54 = vld [vmem:[#allocation2 + $0x70] sm:$0xff] }
 0x292   : > { %v2345_v6 = vmul.f32 %v2310_v45, %v2135_v2  ;;  %v2066_v19 = vmul.f32 %v9834_v34, %v2029_v12  ;;  %7368 = vmatprep.subr.bf16.mxu1 %v7367_v10  ;;  %v10657_v23 = vld [vmem:[#allocation2 + $0x58] sm:$0xff]  ;;  %v10661_v43 = vld [vmem:[#allocation2 + $0x60] sm:$0xff]  ;;  %v10669_v26 = vld [vmem:[#allocation2 + $0x6a] sm:$0xff] }
 0x293   : > { %2371 = vst.msk [vmem:[#allocation2 + $0xd9] sm:$0xff] %vm505_vm0, %v2341_v28  ;;  %v10663_v41 = vld [vmem:[#allocation2 + $0x62] sm:$0xff]  ;;  %v10685_v45 = vld [vmem:[#allocation2 + $0x7a] sm:$0xff]  ;;  %v10701_v52 = vld [vmem:[#allocation2 + $0x8a] sm:$0xff] }
 0x294   : > { %2375 = vst.msk [vmem:[#allocation2 + $0xf9] sm:$0xff] %vm505_vm0, %v2345_v6  ;;  %v2103_v37 = vadd.f32 %v9855_v38, %v2066_v19  ;;  %v10576_v38 = vld [vmem:[#allocation2 + $0xf1] sm:$0xff]  ;;  %v3826_v27 = vld [vmem:[#allocation2 + $0x101] sm:$0xf]  ;;  %v10673_v13 = vld [vmem:[#allocation2 + $0x68] sm:$0xff] }
 0x295   : > { %11816 = vst [vmem:[#allocation41_spill] sm:$0xff] %v10576_v38  ;;  %v10689_v42 = vld [vmem:[#allocation2 + $0x78] sm:$0xff]  ;;  %v10693_v36 = vld [vmem:[#allocation2 + $0x80] sm:$0xff]  ;;  %v10705_v33 = vld [vmem:[#allocation2 + $0x88] sm:$0xff] }
 0x296   : > { %v2133_v62 = vmax.f32 %v2103_v37, 0.0  ;;  %v10564_v17 = vld [vmem:[#allocation2 + $0xe1] sm:$0xff]  ;;  %v10709_v18 = vld [vmem:[#allocation2 + $0x90] sm:$0xff]  ;;  %v10721_v12 = vld [vmem:[#allocation2 + $0x98] sm:$0xff] }
 0x297   : > { %11814 = vst [vmem:[#allocation49_spill] sm:$0xff] %v10564_v17  ;;  %v10695_v2 = vld [vmem:[#allocation2 + $0x82] sm:$0xff]  ;;  %v10717_v14 = vld [vmem:[#allocation2 + $0x9a] sm:$0xff]  ;;  %v10733_v19 = vld [vmem:[#allocation2 + $0xaa] sm:$0xff] }
 0x298   : > { %v2343_v20 = vmul.f32 %v2300_v59, %v2133_v62  ;;  %v7371_v59 = vpack.c.bf16 %v3091_v29, %v3090_v57  ;;  %v10725_v6 = vld [vmem:[#allocation2 + $0xa0] sm:$0xff]  ;;  %v10737_v37 = vld [vmem:[#allocation2 + $0xa8] sm:$0xff]  ;;  %v10741_v62 = vld [vmem:[#allocation2 + $0xb0] sm:$0xff] }
 0x299   : > { %v10727_v28 = vld [vmem:[#allocation2 + $0xa2] sm:$0xff] }
 0x29a   : > { %2373 = vst.msk [vmem:[#allocation2 + $0xe9] sm:$0xff] %vm505_vm0, %v2343_v20  ;;  %v10566_v34 = vld [vmem:[#allocation2 + $0xd9] sm:$0xff]  ;;  %v10759_v29 = vld [vmem:[#allocation2 + $0xc2] sm:$0xff] }
 0x29b   : > { %11815 = vst [vmem:[#allocation48_spill] sm:$0xff] %v10566_v34  ;;  %6922 = vmatmul.mubr.msk.f32.gmra.mrb[26].mxu1 %vm505_vm0, %v10566_v34  ;;  %7130 = vmatprep.mubr.msk.f32.mxu0 %vm505_vm0, %v10566_v34  ;;  %v10580_v8 = vld [vmem:[#allocation2 + $0xf9] sm:$0xff]  ;;  %v3057_v56 = vld [vmem:[#allocation2 + $0x2] sm:$0xff]  ;;  %v4941_v34 = vld [vmem:[#allocation8 + $0xf8] sm:$0xff] }
 0x29c   : > { %6924 = vmatprep.mubr.msk.f32.mxu1 %vm505_vm0, %v10564_v17  ;;  %7131 = vmatmul.mubr.msk.f32.gmra.mrb[24].mxu0 %vm505_vm0, %v10564_v17  ;;  %11818 = vst [vmem:[#allocation45_spill] sm:$0xff] %v10580_v8  ;;  %v10743_v20 = vld [vmem:[#allocation2 + $0xb2] sm:$0xff]  ;;  %v10757_v57 = vld [vmem:[#allocation2 + $0xc0] sm:$0xff] }
 0x29d   : > { %v10781_v40 = vld [vmem:[#allocation2 + $0xda] sm:$0xff]  ;;  %v4940_v17 = vld [vmem:[#allocation8 + $0xf0] sm:$0xff] }
 0x29e   : > { %v10785_v32 = vld [vmem:[#allocation2 + $0xd8] sm:$0xff] }
 0x2a1   : > { %v2441_v48 = vld [vmem:[#allocation2 + $0xe9] sm:$0xf] }
 0x2a2   : > { %v10578_v50 = vld [vmem:[#allocation2 + $0xe9] sm:$0xff]  ;;  %6925 = vmatmul.mubr.msk.f32.gmra.mrb[28].mxu1 %vm505_vm0, %v2441_v48  ;;  %v10753_v48 = vld [vmem:[#allocation2 + $0xb8] sm:$0xff] }
 0x2a3   : > { %11817 = vst [vmem:[#allocation47_spill] sm:$0xff] %v10578_v50  ;;  %7133 = vmatprep.mubr.msk.f32.mxu0 %vm505_vm0, %v10578_v50  ;;  %6935 = vmatprep.mubr.msk.f32.mxu1 %vm505_vm0, %v2378_v61  ;;  %v10749_v61 = vld [vmem:[#allocation2 + $0xba] sm:$0xff]  ;;  %v2407_v39 = vld [vmem:[#allocation2 + $0xe8] sm:$0xf]  ;;  %v3059_v50 = vld [vmem:[#allocation2 + $0x12] sm:$0xff] }
 0x2a4   : > { %7134 = vmatmul.mubr.msk.f32.gmra.mrb[26].mxu0 %vm505_vm0, %v10576_v38  ;;  %v3058_v38 = vld [vmem:[#allocation2 + $0xa] sm:$0xff] }
 0x2a5   : > { %7136 = vmatprep.mubr.msk.f32.mxu0 %vm505_vm0, %v10580_v8  ;;  %v10806_v8 = vld [vmem:[#allocation2 + $0xfa] sm:$0xff] }
 0x2a6   : > { %6936 = vmatmul.mubr.msk.f32.vlgmr.msra.gmra.mrb[0].mxu1 %vm505_vm0, %v2379_v16  ;;  %v10765_v16 = vld [vmem:[#allocation2 + $0xca] sm:$0xff]  ;;  %11821 = vst [vmem:[#allocation54_spill] sm:$0xff] %v10806_v8 }
 0x2a7   : > { %6938 = vmatprep.mubr.msk.f32.mxu1 %vm505_vm0, %v2380_v1  ;;  %7370 = vmatpush3.bf16.msra.mxu1 %v7367_v10  ;;  %v10711_v10 = vld [vmem:[#allocation2 + $0x92] sm:$0xff] }
 0x2a8   : > { %7137 = vmatmul.mubr.msk.f32.gmra.mrb[28].mxu0 %vm505_vm0, %v3826_v27  ;;  %7372 = vmatprep.subr.bf16.mxu1 %v7371_v59  ;;  %v10769_v27 = vld [vmem:[#allocation2 + $0xc8] sm:$0xff]  ;;  %v10773_v1 = vld [vmem:[#allocation2 + $0xd0] sm:$0xff] }
 0x2a9   : > { %7147 = vmatprep.mubr.msk.f32.mxu0 %vm505_vm0, %v10592_v4 }
 0x2aa   : > { %6939 = vmatmul.mubr.msk.f32.gmra.mrb[2].mxu1 %vm505_vm0, %v2381_v46  ;;  %v10789_v46 = vld [vmem:[#allocation2 + $0xe0] sm:$0xff] }
 0x2ab   : > { %6941 = vmatprep.mubr.msk.f32.mxu1 %vm505_vm0, %v2382_v21  ;;  %7374 = vmatpush3.bf16.msra.mxu1 %v7371_v59  ;;  %v10775_v59 = vld [vmem:[#allocation2 + $0xd2] sm:$0xff]  ;;  %v10791_v21 = vld [vmem:[#allocation2 + $0xe2] sm:$0xff] }
 0x2ac   : > { %7148 = vmatmul.mubr.msk.f32.vlgmr.msra.gmra.mrb[0].mxu0 %vm505_vm0, %v10598_v51  ;;  %7501 = vmatprep.subr.bf16.mxu1 %v11819_v7 }
 0x2ad   : > { %7150 = vmatprep.mubr.msk.f32.mxu0 %vm505_vm0, %v10603_v53  ;;  %7402 = vmatpush3.bf16.msra.mxu0 %v10531_v9  ;;  %v10647_v9 = vld [vmem:[#allocation2 + $0x52] sm:$0xff] }
 0x2ae   : > { %7404 = vmatprep.subr.bf16.mxu0 %v7403_v60  ;;  %6942 = vmatmul.mubr.msk.f32.gmra.mrb[4].mxu1 %vm505_vm0, %v2383_v55  ;;  %v10802_v55 = vld [vmem:[#allocation2 + $0xf2] sm:$0xff] }
 0x2af   : > { %6944 = vmatprep.mubr.msk.f32.mxu1 %vm505_vm0, %v10611_v31 }
 0x2b0   : > { %7151 = vmatmul.mubr.msk.f32.gmra.mrb[2].mxu0 %vm505_vm0, %v10613_v35 }
 0x2b1   : > { %7153 = vmatprep.mubr.msk.f32.mxu0 %vm505_vm0, %v10620_v44  ;;  %7406 = vmatpush3.bf16.msra.mxu0 %v7403_v60  ;;  %v10797_v60 = vld [vmem:[#allocation2 + $0xea] sm:$0xff] }
 0x2b2   : > { %7408 = vmatprep.subr.bf16.mxu0 %v10608_v22  ;;  %6945 = vmatmul.mubr.msk.f32.gmra.mrb[6].mxu1 %vm505_vm0, %v10624_v5  ;;  %11820 = vst [vmem:[#allocation55_spill] sm:$0xff] %v10797_v60 }
 0x2b3   : > { %6947 = vmatprep.mubr.msk.f32.mxu1 %vm505_vm0, %v10629_v24 }
 0x2b4   : > { %7154 = vmatmul.mubr.msk.f32.gmra.mrb[4].mxu0 %vm505_vm0, %v10631_v25 }
 0x2b5   : > { %7156 = vmatprep.mubr.msk.f32.mxu0 %vm505_vm0, %v10637_v47 }
 0x2b6   : > { %6948 = vmatmul.mubr.msk.f32.gmra.mrb[8].mxu1 %vm505_vm0, %v10641_v0 }
 0x2b7   : > { %6950 = vmatprep.mubr.msk.f32.mxu1 %vm505_vm0, %v10645_v49 }
 0x2b8   : > { %7157 = vmatmul.mubr.msk.f32.gmra.mrb[6].mxu0 %vm505_vm0, %v10647_v9 }
 0x2b9   : > { %7159 = vmatprep.mubr.msk.f32.mxu0 %vm505_vm0, %v10653_v3 }
 0x2ba   : > { %6951 = vmatmul.mubr.msk.f32.gmra.mrb[10].mxu1 %vm505_vm0, %v10657_v23 }
 0x2bb   : > { %6953 = vmatprep.mubr.msk.f32.mxu1 %vm505_vm0, %v10661_v43 }
 0x2bc   : > { %7160 = vmatmul.mubr.msk.f32.gmra.mrb[8].mxu0 %vm505_vm0, %v10663_v41 }
 0x2bd   : > { %7162 = vmatprep.mubr.msk.f32.mxu0 %vm505_vm0, %v10669_v26 }
 0x2be   : > { %6954 = vmatmul.mubr.msk.f32.gmra.mrb[12].mxu1 %vm505_vm0, %v10673_v13 }
 0x2bf   : > { %6956 = vmatprep.mubr.msk.f32.mxu1 %vm505_vm0, %v10677_v54 }
 0x2c0   : > { %7163 = vmatmul.mubr.msk.f32.gmra.mrb[10].mxu0 %vm505_vm0, %v10679_v15 }
 0x2c1   : > { %7165 = vmatprep.mubr.msk.f32.mxu0 %vm505_vm0, %v10685_v45 }
 0x2c2   : > { %6957 = vmatmul.mubr.msk.f32.gmra.mrb[14].mxu1 %vm505_vm0, %v10689_v42 }
 0x2c3   : > { %6959 = vmatprep.mubr.msk.f32.mxu1 %vm505_vm0, %v10693_v36 }
 0x2c4   : > { %7166 = vmatmul.mubr.msk.f32.gmra.mrb[12].mxu0 %vm505_vm0, %v10695_v2 }
 0x2c5   : > { %7168 = vmatprep.mubr.msk.f32.mxu0 %vm505_vm0, %v10701_v52 }
 0x2c6   : > { %6960 = vmatmul.mubr.msk.f32.gmra.mrb[16].mxu1 %vm505_vm0, %v10705_v33 }
 0x2c7   : > { %6962 = vmatprep.mubr.msk.f32.mxu1 %vm505_vm0, %v10709_v18 }
 0x2c8   : > { %7169 = vmatmul.mubr.msk.f32.gmra.mrb[14].mxu0 %vm505_vm0, %v10711_v10 }
 0x2c9   : > { %7171 = vmatprep.mubr.msk.f32.mxu0 %vm505_vm0, %v10717_v14 }
 0x2ca   : > { %6963 = vmatmul.mubr.msk.f32.gmra.mrb[18].mxu1 %vm505_vm0, %v10721_v12 }
 0x2cb   : > { %6965 = vmatprep.mubr.msk.f32.mxu1 %vm505_vm0, %v10725_v6 }
 0x2cc   : > { %7172 = vmatmul.mubr.msk.f32.gmra.mrb[16].mxu0 %vm505_vm0, %v10727_v28 }
 0x2cd   : > { %7174 = vmatprep.mubr.msk.f32.mxu0 %vm505_vm0, %v10733_v19 }
 0x2ce   : > { %6966 = vmatmul.mubr.msk.f32.gmra.mrb[20].mxu1 %vm505_vm0, %v10737_v37 }
 0x2cf   : > { %6968 = vmatprep.mubr.msk.f32.mxu1 %vm505_vm0, %v10741_v62 }
 0x2d0   : > { %7175 = vmatmul.mubr.msk.f32.gmra.mrb[18].mxu0 %vm505_vm0, %v10743_v20 }
 0x2d1   : > { %7177 = vmatprep.mubr.msk.f32.mxu0 %vm505_vm0, %v10749_v61 }
 0x2d2   : > { %6969 = vmatmul.mubr.msk.f32.gmra.mrb[22].mxu1 %vm505_vm0, %v10753_v48 }
 0x2d3   : > { %6971 = vmatprep.mubr.msk.f32.mxu1 %vm505_vm0, %v10757_v57 }
 0x2d4   : > { %7178 = vmatmul.mubr.msk.f32.gmra.mrb[20].mxu0 %vm505_vm0, %v10759_v29 }
 0x2d5   : > { %7180 = vmatprep.mubr.msk.f32.mxu0 %vm505_vm0, %v10765_v16 }
 0x2d6   : > { %6972 = vmatmul.mubr.msk.f32.gmra.mrb[24].mxu1 %vm505_vm0, %v10769_v27 }
 0x2d7   : > { %6974 = vmatprep.mubr.msk.f32.mxu1 %vm505_vm0, %v10773_v1 }
 0x2d8   : > { %7181 = vmatmul.mubr.msk.f32.gmra.mrb[22].mxu0 %vm505_vm0, %v10775_v59 }
 0x2d9   : > { %7183 = vmatprep.mubr.msk.f32.mxu0 %vm505_vm0, %v10781_v40 }
 0x2da   : > { %6975 = vmatmul.mubr.msk.f32.gmra.mrb[26].mxu1 %vm505_vm0, %v10785_v32 }
 0x2db   : > { %6977 = vmatprep.mubr.msk.f32.mxu1 %vm505_vm0, %v10789_v46 }
 0x2dc   : > { %7184 = vmatmul.mubr.msk.f32.gmra.mrb[24].mxu0 %vm505_vm0, %v10791_v21 }
 0x2dd   : > { %7186 = vmatprep.mubr.msk.f32.mxu0 %vm505_vm0, %v10797_v60  ;;  %v4196_v60 = vld [vmem:[#allocation2 + $0x102] sm:$0xf] }
 0x2de   : > { %6978 = vmatmul.mubr.msk.f32.gmra.mrb[28].mxu1 %vm505_vm0, %v2407_v39  ;;  %v11822_v39 = vld [vmem:[#allocation23_spill] sm:$0xff] }
 0x2df   : > { %6988 = vmatprep.mubr.msk.f32.mxu1 %vm505_vm0, %v3057_v56  ;;  %v7411_v56 = vpack.c.bf16 %v4941_v34, %v4940_v17  ;;  %v10913_v34 = vld [vmem:[#allocation2 + $0xe8] sm:$0xff] }
 0x2e0   : > { %7187 = vmatmul.mubr.msk.f32.gmra.mrb[26].mxu0 %vm505_vm0, %v10802_v55 }
 0x2e1   : > { %7189 = vmatprep.mubr.msk.f32.mxu0 %vm505_vm0, %v10806_v8  ;;  %v5308_v8 = vld [vmem:[#allocation8 + $0x100] sm:$0xff] }
 0x2e2   : > { %6989 = vmatmul.mubr.msk.f32.vlgmr.msra.gmra.mrb[0].mxu1 %vm505_vm0, %v3058_v38  ;;  %v5309_v38 = vld [vmem:[#allocation8 + $0x108] sm:$0xff] }
 0x2e3   : > { %6991 = vmatprep.mubr.msk.f32.mxu1 %vm505_vm0, %v3059_v50  ;;  %7503 = vmatpush3.bf16.msra.mxu1 %v11819_v7  ;;  %v10828_v17 = vpack.c.bf16 %v5309_v38, %v5308_v8  ;;  %v10919_v50 = vld [vmem:[#allocation2 + $0xf0] sm:$0xff]  ;;  %v11823_v8 = vmov 0.0   ;;  %v4566_v7 = vld [vmem:[#allocation2 + $0x118] sm:$0xf] }
 0x2e4   : > { %7190 = vmatmul.mubr.msk.f32.gmra.mrb[28].mxu0 %vm505_vm0, %v4196_v60  ;;  %7502 = vmatprep.subr.bf16.mxu1 %v11822_v39  ;;  %515 = vst.msk [vmem:[#allocation2 + $0x11d] sm:$0x7] %vm514_vm5, %v11823_v8  ;;  %v5310_v60 = vld [vmem:[#allocation8 + $0x110] sm:$0xff] }
 0x2e5   : > { %7200 = vmatprep.mubr.msk.f32.mxu0 %vm505_vm0, %v10611_v31  ;;  %v4565_v31 = vld [vmem:[#allocation2 + $0x110] sm:$0xff] }
 0x2e6   : > { %6992 = vmatmul.mubr.msk.f32.gmra.mrb[2].mxu1 %vm505_vm0, %v10592_v4  ;;  %v10926_v4 = vld [vmem:[#allocation2 + $0xf8] sm:$0xff] }
 0x2e7   : > { %6994 = vmatprep.mubr.msk.f32.mxu1 %vm505_vm0, %v10598_v51  ;;  %7504 = vmatpush3.bf16.msra.mxu1 %v11822_v39  ;;  %v4563_v51 = vld [vmem:[#allocation2 + $0x100] sm:$0xff]  ;;  %v4907_v39 = vld [vmem:[#allocation2 + $0x31] sm:$0xff] }
 0x2e8   : > { %7201 = vmatmul.mubr.msk.f32.vlgmr.msra.gmra.mrb[0].mxu0 %vm505_vm0, %v10624_v5 }
 0x2e9   : > { %7203 = vmatprep.mubr.msk.f32.mxu0 %vm505_vm0, %v10629_v24  ;;  %7410 = vmatpush3.bf16.msra.mxu0 %v10608_v22  ;;  %v3086_v22 = vld [vmem:[#allocation2 + $0xea] sm:$0xf] }
 0x2ea   : > { %7412 = vmatprep.subr.bf16.mxu0 %v7411_v56  ;;  %6995 = vmatmul.mubr.msk.f32.gmra.mrb[4].mxu1 %vm505_vm0, %v10603_v53  ;;  %v4564_v53 = vld [vmem:[#allocation2 + $0x108] sm:$0xff] }
 0x2eb   : > { %6997 = vmatprep.mubr.msk.f32.mxu1 %vm505_vm0, %v10613_v35 }
 0x2ec   : > { %7204 = vmatmul.mubr.msk.f32.gmra.mrb[2].mxu0 %vm505_vm0, %v10641_v0 }
 0x2ed   : > { %7206 = vmatprep.mubr.msk.f32.mxu0 %vm505_vm0, %v10645_v49  ;;  %7414 = vmatpush3.bf16.msra.mxu0 %v7411_v56  ;;  %v5311_v56 = vld [vmem:[#allocation8 + $0x118] sm:$0xff] }
 0x2ee   : > { %7416 = vmatprep.subr.bf16.mxu0 %v10828_v17  ;;  %6998 = vmatmul.mubr.msk.f32.gmra.mrb[6].mxu1 %vm505_vm0, %v10620_v44  ;;  %v7419_v38 = vpack.c.bf16 %v5311_v56, %v5310_v60 }
 0x2ef   : > { %7000 = vmatprep.mubr.msk.f32.mxu1 %vm505_vm0, %v10631_v25 }
 0x2f0   : > { %7207 = vmatmul.mubr.msk.f32.gmra.mrb[4].mxu0 %vm505_vm0, %v10657_v23 }
 0x2f1   : > { %7209 = vmatprep.mubr.msk.f32.mxu0 %vm505_vm0, %v10661_v43 }
 0x2f2   : > { %7001 = vmatmul.mubr.msk.f32.gmra.mrb[8].mxu1 %vm505_vm0, %v10637_v47 }
 0x2f3   : > { %7003 = vmatprep.mubr.msk.f32.mxu1 %vm505_vm0, %v10647_v9 }
 0x2f4   : > { %7210 = vmatmul.mubr.msk.f32.gmra.mrb[6].mxu0 %vm505_vm0, %v10673_v13 }
 0x2f5   : > { %7212 = vmatprep.mubr.msk.f32.mxu0 %vm505_vm0, %v10677_v54 }
 0x2f6   : > { %7004 = vmatmul.mubr.msk.f32.gmra.mrb[10].mxu1 %vm505_vm0, %v10653_v3 }
 0x2f7   : > { %7006 = vmatprep.mubr.msk.f32.mxu1 %vm505_vm0, %v10663_v41 }
 0x2f8   : > { %7213 = vmatmul.mubr.msk.f32.gmra.mrb[8].mxu0 %vm505_vm0, %v10689_v42 }
 0x2f9   : > { %7215 = vmatprep.mubr.msk.f32.mxu0 %vm505_vm0, %v10693_v36 }
 0x2fa   : > { %7007 = vmatmul.mubr.msk.f32.gmra.mrb[12].mxu1 %vm505_vm0, %v10669_v26 }
 0x2fb   : > { %7009 = vmatprep.mubr.msk.f32.mxu1 %vm505_vm0, %v10679_v15 }
 0x2fc   : > { %7216 = vmatmul.mubr.msk.f32.gmra.mrb[10].mxu0 %vm505_vm0, %v10705_v33 }
 0x2fd   : > { %7218 = vmatprep.mubr.msk.f32.mxu0 %vm505_vm0, %v10709_v18 }
 0x2fe   : > { %7010 = vmatmul.mubr.msk.f32.gmra.mrb[14].mxu1 %vm505_vm0, %v10685_v45 }
 0x2ff   : > { %7012 = vmatprep.mubr.msk.f32.mxu1 %vm505_vm0, %v10695_v2 }
 0x300   : > { %7219 = vmatmul.mubr.msk.f32.gmra.mrb[12].mxu0 %vm505_vm0, %v10721_v12 }
 0x301   : > { %7221 = vmatprep.mubr.msk.f32.mxu0 %vm505_vm0, %v10725_v6 }
 0x302   : > { %7013 = vmatmul.mubr.msk.f32.gmra.mrb[16].mxu1 %vm505_vm0, %v10701_v52 }
 0x303   : > { %7015 = vmatprep.mubr.msk.f32.mxu1 %vm505_vm0, %v10711_v10 }
 0x304   : > { %7222 = vmatmul.mubr.msk.f32.gmra.mrb[14].mxu0 %vm505_vm0, %v10737_v37 }
 0x305   : > { %7224 = vmatprep.mubr.msk.f32.mxu0 %vm505_vm0, %v10741_v62 }
 0x306   : > { %7016 = vmatmul.mubr.msk.f32.gmra.mrb[18].mxu1 %vm505_vm0, %v10717_v14 }
 0x307   : > { %7018 = vmatprep.mubr.msk.f32.mxu1 %vm505_vm0, %v10727_v28 }
 0x308   : > { %7225 = vmatmul.mubr.msk.f32.gmra.mrb[16].mxu0 %vm505_vm0, %v10753_v48 }
 0x309   : > { %7227 = vmatprep.mubr.msk.f32.mxu0 %vm505_vm0, %v10757_v57 }
 0x30a   : > { %7019 = vmatmul.mubr.msk.f32.gmra.mrb[20].mxu1 %vm505_vm0, %v10733_v19 }
 0x30b   : > { %7021 = vmatprep.mubr.msk.f32.mxu1 %vm505_vm0, %v10743_v20 }
 0x30c   : > { %7228 = vmatmul.mubr.msk.f32.gmra.mrb[18].mxu0 %vm505_vm0, %v10769_v27 }
 0x30d   : > { %7230 = vmatprep.mubr.msk.f32.mxu0 %vm505_vm0, %v10773_v1 }
 0x30e   : > { %7022 = vmatmul.mubr.msk.f32.gmra.mrb[22].mxu1 %vm505_vm0, %v10749_v61 }
 0x30f   : > { %7024 = vmatprep.mubr.msk.f32.mxu1 %vm505_vm0, %v10759_v29 }
 0x310   : > { %7231 = vmatmul.mubr.msk.f32.gmra.mrb[20].mxu0 %vm505_vm0, %v10785_v32 }
 0x311   : > { %7233 = vmatprep.mubr.msk.f32.mxu0 %vm505_vm0, %v10789_v46 }
 0x312   : > { %7025 = vmatmul.mubr.msk.f32.gmra.mrb[24].mxu1 %vm505_vm0, %v10765_v16 }
 0x313   : > { %7027 = vmatprep.mubr.msk.f32.mxu1 %vm505_vm0, %v10775_v59 }
 0x314   : > { %7234 = vmatmul.mubr.msk.f32.gmra.mrb[22].mxu0 %vm505_vm0, %v10913_v34 }
 0x315   : > { %7236 = vmatprep.mubr.msk.f32.mxu0 %vm505_vm0, %v10919_v50 }
 0x316   : > { %7028 = vmatmul.mubr.msk.f32.gmra.mrb[26].mxu1 %vm505_vm0, %v10781_v40 }
 0x317   : > { %7030 = vmatprep.mubr.msk.f32.mxu1 %vm505_vm0, %v10791_v21 }
 0x318   : > { %7237 = vmatmul.mubr.msk.f32.gmra.mrb[24].mxu0 %vm505_vm0, %v10926_v4 }
 0x319   : > { %7239 = vmatprep.mubr.msk.f32.mxu0 %vm505_vm0, %v4563_v51 }
 0x31a   : > { %7031 = vmatmul.mubr.msk.f32.gmra.mrb[28].mxu1 %vm505_vm0, %v3086_v22 }
 0x31b   : > { %7047 = vmatprep.mubr.msk.f32.mxu1 %vm505_vm0, %v10624_v5  ;;  %v4908_v5 = vld [vmem:[#allocation2 + $0x39] sm:$0xff] }
 0x31c   : > { %7240 = vmatmul.mubr.msk.f32.gmra.mrb[26].mxu0 %vm505_vm0, %v4564_v53 }
 0x31d   : > { %7242 = vmatprep.mubr.msk.f32.mxu0 %vm505_vm0, %v4565_v31 }
 0x31e   : > { %7048 = vmatmul.mubr.msk.f32.vlgmr.msra.gmra.mrb[4].mxu1 %vm505_vm0, %v10629_v24  ;;  %v4909_v24 = vld [vmem:[#allocation2 + $0x41] sm:$0xff] }
 0x31f   : > { %7050 = vmatprep.mubr.msk.f32.mxu1 %vm505_vm0, %v10641_v0  ;;  %v4910_v0 = vld [vmem:[#allocation2 + $0x49] sm:$0xff] }
 0x320   : > { %7243 = vmatmul.mubr.msk.f32.gmra.mrb[28].mxu0 %vm505_vm0, %v4566_v7 }
 0x321   : > { %7253 = vmatprep.mubr.msk.f32.mxu0 %vm505_vm0, %v4907_v39 }
 0x322   : > { %7051 = vmatmul.mubr.msk.f32.gmra.mrb[6].mxu1 %vm505_vm0, %v10645_v49  ;;  %v4911_v49 = vld [vmem:[#allocation2 + $0x51] sm:$0xff] }
 0x323   : > { %7053 = vmatprep.mubr.msk.f32.mxu1 %vm505_vm0, %v10657_v23  ;;  %v4912_v23 = vld [vmem:[#allocation2 + $0x59] sm:$0xff] }
 0x324   : > { %7254 = vmatmul.mubr.msk.f32.vlgmr.msra.gmra.mrb[0].mxu0 %vm505_vm0, %v4908_v5 }
 0x325   : > { %7256 = vmatprep.mubr.msk.f32.mxu0 %vm505_vm0, %v4909_v24  ;;  %7418 = vmatpush3.bf16.msra.mxu0 %v10828_v17  ;;  %v4915_v17 = vld [vmem:[#allocation2 + $0x71] sm:$0xff] }
 0x326   : > { %7420 = vmatprep.subr.bf16.mxu0 %v7419_v38  ;;  %7054 = vmatmul.mubr.msk.f32.gmra.mrb[8].mxu1 %vm505_vm0, %v10661_v43  ;;  %v4913_v43 = vld [vmem:[#allocation2 + $0x61] sm:$0xff] }
 0x327   : > { %7056 = vmatprep.mubr.msk.f32.mxu1 %vm505_vm0, %v10673_v13  ;;  %v4914_v13 = vld [vmem:[#allocation2 + $0x69] sm:$0xff] }
 0x328   : > { %7257 = vmatmul.mubr.msk.f32.gmra.mrb[2].mxu0 %vm505_vm0, %v4910_v0 }
 0x329   : > { %7259 = vmatprep.mubr.msk.f32.mxu0 %vm505_vm0, %v4911_v49  ;;  %7422 = vmatpush3.bf16.msra.mxu0 %v7419_v38 }
 0x32a   : > { %7057 = vmatmul.mubr.msk.f32.gmra.mrb[10].mxu1 %vm505_vm0, %v10677_v54  ;;  %v4916_v54 = vld [vmem:[#allocation2 + $0x79] sm:$0xff] }
 0x32b   : > { %7059 = vmatprep.mubr.msk.f32.mxu1 %vm505_vm0, %v10689_v42  ;;  %v4917_v42 = vld [vmem:[#allocation2 + $0x81] sm:$0xff] }
 0x32c   : > { %7260 = vmatmul.mubr.msk.f32.gmra.mrb[4].mxu0 %vm505_vm0, %v4912_v23  ;;  %v11132_v23 = vld [vmem:[#allocation10] ss:$0 sm:$0xff] }
 0x32d   : > { %7262 = vmatprep.mubr.msk.f32.mxu0 %vm505_vm0, %v4913_v43 }
 0x32e   : > { %7060 = vmatmul.mubr.msk.f32.gmra.mrb[12].mxu1 %vm505_vm0, %v10693_v36  ;;  %v4918_v36 = vld [vmem:[#allocation2 + $0x89] sm:$0xff] }
 0x32f   : > { %7062 = vmatprep.mubr.msk.f32.mxu1 %vm505_vm0, %v10705_v33  ;;  %v4919_v33 = vld [vmem:[#allocation2 + $0x91] sm:$0xff] }
 0x330   : > { %7263 = vmatmul.mubr.msk.f32.gmra.mrb[6].mxu0 %vm505_vm0, %v4914_v13 }
 0x331   : > { %7265 = vmatprep.mubr.msk.f32.mxu0 %vm505_vm0, %v4915_v17  ;;  %v11134_v17 = vld [vmem:[#allocation11] ss:$0 sm:$0xff] }
 0x332   : > { %7063 = vmatmul.mubr.msk.f32.gmra.mrb[14].mxu1 %vm505_vm0, %v10709_v18  ;;  %v4920_v18 = vld [vmem:[#allocation2 + $0x99] sm:$0xff] }
 0x333   : > { %7065 = vmatprep.mubr.msk.f32.mxu1 %vm505_vm0, %v10721_v12  ;;  %v4921_v12 = vld [vmem:[#allocation2 + $0xa1] sm:$0xff] }
 0x334   : > { %7266 = vmatmul.mubr.msk.f32.gmra.mrb[8].mxu0 %vm505_vm0, %v4916_v54 }
 0x335   : > { %7268 = vmatprep.mubr.msk.f32.mxu0 %vm505_vm0, %v4917_v42 }
 0x336   : > { %7066 = vmatmul.mubr.msk.f32.gmra.mrb[16].mxu1 %vm505_vm0, %v10725_v6  ;;  %v4922_v6 = vld [vmem:[#allocation2 + $0xa9] sm:$0xff] }
 0x337   : > { %7068 = vmatprep.mubr.msk.f32.mxu1 %vm505_vm0, %v10737_v37  ;;  %v4923_v37 = vld [vmem:[#allocation2 + $0xb1] sm:$0xff] }
 0x338   : > { %7269 = vmatmul.mubr.msk.f32.gmra.mrb[10].mxu0 %vm505_vm0, %v4918_v36 }
 0x339   : > { %7271 = vmatprep.mubr.msk.f32.mxu0 %vm505_vm0, %v4919_v33 }
 0x33a   : > { %7069 = vmatmul.mubr.msk.f32.gmra.mrb[18].mxu1 %vm505_vm0, %v10741_v62  ;;  %v3456_v62 = vld [vmem:[#allocation2 + $0x100] sm:$0xf] }
 0x33b   : > { %7071 = vmatprep.mubr.msk.f32.mxu1 %vm505_vm0, %v10753_v48  ;;  %v11826_v48 = vld [vmem:[#allocation47_spill] sm:$0xff] }
 0x33c   : > { %7272 = vmatmul.mubr.msk.f32.gmra.mrb[12].mxu0 %vm505_vm0, %v4920_v18 }
 0x33d   : > { %7274 = vmatprep.mubr.msk.f32.mxu0 %vm505_vm0, %v4921_v12 }
 0x33e   : > { %7072 = vmatmul.mubr.msk.f32.gmra.mrb[20].mxu1 %vm505_vm0, %v10757_v57  ;;  %v4933_v57 = vld [vmem:[#allocation2 + $0x101] sm:$0xff] }
 0x33f   : > { %7074 = vmatprep.mubr.msk.f32.mxu1 %vm505_vm0, %v10769_v27  ;;  %v4934_v27 = vld [vmem:[#allocation2 + $0x109] sm:$0xff] }
 0x340   : > { %7275 = vmatmul.mubr.msk.f32.gmra.mrb[14].mxu0 %vm505_vm0, %v4922_v6 }
 0x341   : > { %7277 = vmatprep.mubr.msk.f32.mxu0 %vm505_vm0, %v4923_v37 }
 0x342   : > { %7075 = vmatmul.mubr.msk.f32.gmra.mrb[22].mxu1 %vm505_vm0, %v10773_v1  ;;  %v4935_v1 = vld [vmem:[#allocation2 + $0x111] sm:$0xff] }
 0x343   : > { %7077 = vmatprep.mubr.msk.f32.mxu1 %vm505_vm0, %v10785_v32  ;;  %v4936_v32 = vld [vmem:[#allocation2 + $0x119] sm:$0xf] }
 0x344   : > { %7278 = vmatmul.mubr.msk.f32.gmra.mrb[16].mxu0 %vm505_vm0, %v10392_v11  ;;  %v11824_v11 = vld [vmem:[#allocation48_spill] sm:$0xff] }
 0x345   : > { %7280 = vmatprep.mubr.msk.f32.mxu0 %vm505_vm0, %v10466_v30  ;;  %v11825_v30 = vld [vmem:[#allocation49_spill] sm:$0xff] }
 0x346   : > { %7078 = vmatmul.mubr.msk.f32.gmra.mrb[24].mxu1 %vm505_vm0, %v10789_v46 }
 0x347   : > { %7080 = vmatprep.mubr.msk.f32.mxu1 %vm505_vm0, %v10913_v34 }
 0x348   : > { %7281 = vmatmul.mubr.msk.f32.gmra.mrb[18].mxu0 %vm505_vm0, %v10548_v58  ;;  %v11827_v58 = vld [vmem:[#allocation41_spill] sm:$0xff] }
 0x349   : > { %7283 = vmatprep.mubr.msk.f32.mxu0 %vm505_vm0, %v10546_v63  ;;  %v11828_v63 = vld [vmem:[#allocation45_spill] sm:$0xff] }
 0x34a   : > { %7081 = vmatmul.mubr.msk.f32.gmra.mrb[26].mxu1 %vm505_vm0, %v10919_v50 }
 0x34b   : > { %7083 = vmatprep.mubr.msk.f32.mxu1 %vm505_vm0, %v10926_v4 }
 0x34c   : > { %7284 = vmatmul.mubr.msk.f32.gmra.mrb[20].mxu0 %vm505_vm0, %v11824_v11 }
 0x34d   : > { %7286 = vmatprep.mubr.msk.f32.mxu0 %vm505_vm0, %v11825_v30 }
 0x34e   : > { %7084 = vmatmul.mubr.msk.f32.gmra.mrb[28].mxu1 %vm505_vm0, %v3456_v62 }
 0x350   : > { %7287 = vmatmul.mubr.msk.f32.gmra.mrb[22].mxu0 %vm505_vm0, %v11826_v48 }
 0x351   : > { %7289 = vmatprep.mubr.msk.f32.mxu0 %vm505_vm0, %v11827_v58 }
 0x354   : > { %7290 = vmatmul.mubr.msk.f32.gmra.mrb[24].mxu0 %vm505_vm0, %v11828_v63 }
 0x355   : > { %7292 = vmatprep.mubr.msk.f32.mxu0 %vm505_vm0, %v4933_v57 }
 0x358   : > { %7293 = vmatmul.mubr.msk.f32.gmra.mrb[26].mxu0 %vm505_vm0, %v4934_v27 }
 0x359   : > { %7295 = vmatprep.mubr.msk.f32.mxu0 %vm505_vm0, %v4935_v1 }
 0x35c   : > { %7296 = vmatmul.mubr.msk.f32.gmra.mrb[28].mxu0 %vm505_vm0, %v4936_v32 }
 0x35d   : > { %7306 = vmatprep.mubr.msk.f32.mxu0 %vm505_vm0, %v10613_v35  ;;  %v11829_v35 = vld [vmem:[#allocation55_spill] sm:$0xff] }
 0x360   : > { %7307 = vmatmul.mubr.msk.f32.vlgmr.msra.gmra.mrb[0].mxu0 %vm505_vm0, %v10620_v44  ;;  %v11830_v44 = vld [vmem:[#allocation54_spill] sm:$0xff] }
 0x361   : > { %7309 = vmatprep.mubr.msk.f32.mxu0 %vm505_vm0, %v10631_v25  ;;  %v5303_v25 = vld [vmem:[#allocation2 + $0x102] sm:$0xff] }
 0x364   : > { %7310 = vmatmul.mubr.msk.f32.gmra.mrb[2].mxu0 %vm505_vm0, %v10637_v47  ;;  %v5304_v47 = vld [vmem:[#allocation2 + $0x10a] sm:$0xff] }
 0x365   : > { %7312 = vmatprep.mubr.msk.f32.mxu0 %vm505_vm0, %v10647_v9  ;;  %v5305_v9 = vld [vmem:[#allocation2 + $0x112] sm:$0xff] }
 0x368   : > { %7313 = vmatmul.mubr.msk.f32.gmra.mrb[4].mxu0 %vm505_vm0, %v10653_v3  ;;  %v5306_v3 = vld [vmem:[#allocation2 + $0x11a] sm:$0xf] }
 0x369   : > { %7315 = vmatprep.mubr.msk.f32.mxu0 %vm505_vm0, %v10663_v41 }
 0x36c   : > { %7316 = vmatmul.mubr.msk.f32.gmra.mrb[6].mxu0 %vm505_vm0, %v10669_v26 }
 0x36d   : > { %7318 = vmatprep.mubr.msk.f32.mxu0 %vm505_vm0, %v10679_v15 }
 0x370   : > { %7319 = vmatmul.mubr.msk.f32.gmra.mrb[8].mxu0 %vm505_vm0, %v10685_v45 }
 0x371   : > { %7321 = vmatprep.mubr.msk.f32.mxu0 %vm505_vm0, %v10695_v2  ;;  %v8220_v2 = vmov 0.0|0.0  }
 0x372   : > { %7423 = vmatprep.subr.bf16.mxu1 %v8220_v2  ;;  %7462 = vmatprep.subr.bf16.mxu0 %v8220_v2 }
 0x374   : > { %7322 = vmatmul.mubr.msk.f32.gmra.mrb[10].mxu0 %vm505_vm0, %v10701_v52 }
 0x375   : > { %7324 = vmatprep.mubr.msk.f32.mxu0 %vm505_vm0, %v10711_v10 }
 0x378   : > { %7325 = vmatmul.mubr.msk.f32.gmra.mrb[12].mxu0 %vm505_vm0, %v10717_v14 }
 0x379   : > { %7327 = vmatprep.mubr.msk.f32.mxu0 %vm505_vm0, %v10727_v28 }
 0x37c   : > { %7328 = vmatmul.mubr.msk.f32.gmra.mrb[14].mxu0 %vm505_vm0, %v10733_v19 }
 0x37d   : > { %7330 = vmatprep.mubr.msk.f32.mxu0 %vm505_vm0, %v10743_v20 }
 0x380   : > { %7331 = vmatmul.mubr.msk.f32.gmra.mrb[16].mxu0 %vm505_vm0, %v10749_v61  ;;  %v5779_v61 = vld [vmem:[#allocation13 + $0x8] sm:$0xff] }
 0x381   : > { %7333 = vmatprep.mubr.msk.f32.mxu0 %vm505_vm0, %v10759_v29  ;;  %6551 = vmatprep.mubr.msk.f32.mxu1 %vm5792_vm6, %v5779_v61 }
 0x384   : > { %7334 = vmatmul.mubr.msk.f32.gmra.mrb[18].mxu0 %vm505_vm0, %v10765_v16  ;;  %v5919_v16 = vld [vmem:[#allocation14 + $0x8] sm:$0xff] }
 0x385   : > { %7336 = vmatprep.mubr.msk.f32.mxu0 %vm505_vm0, %v10775_v59 }
 0x388   : > { %7337 = vmatmul.mubr.msk.f32.gmra.mrb[20].mxu0 %vm505_vm0, %v10781_v40 }
 0x389   : > { %7339 = vmatprep.mubr.msk.f32.mxu0 %vm505_vm0, %v10791_v21 }
 0x38c   : > { %7340 = vmatmul.mubr.msk.f32.gmra.mrb[22].mxu0 %vm505_vm0, %v11829_v35 }
 0x38d   : > { %7342 = vmatprep.mubr.msk.f32.mxu0 %vm505_vm0, %v10802_v55 }
 0x390   : > { %7343 = vmatmul.mubr.msk.f32.gmra.mrb[24].mxu0 %vm505_vm0, %v11830_v44 }
 0x391   : > { %7345 = vmatprep.mubr.msk.f32.mxu0 %vm505_vm0, %v5303_v25 }
 0x394   : > { %7346 = vmatmul.mubr.msk.f32.gmra.mrb[26].mxu0 %vm505_vm0, %v5304_v47 }
 0x395   : > { %7348 = vmatprep.mubr.msk.f32.mxu0 %vm505_vm0, %v5305_v9 }
 0x398   : > { %7349 = vmatmul.mubr.msk.f32.gmra.mrb[28].mxu0 %vm505_vm0, %v5306_v3 }
 0x399   : > { %6559 = vmatprep.mubr.msk.f32.mxu0 %vm5792_vm6, %v5919_v16 }
 0x3b5   : > { %v6990_v41 = vpop.f32.mrb[0].mxu1 }
 0x3b6   : > { %v3248_v26 = vpop.f32.mrb[1].mxu1 }
 0x3b9   : > { %v6993_v15 = vpop.f32.mrb[2].mxu1 }
 0x3ba   : > { %v3258_v45 = vpop.f32.mrb[3].mxu1 }
 0x3f1   : > { %v7049_v52 = vpop.f32.mrb[4].mxu1 }
 0x3f2   : > { %v3638_v10 = vpop.f32.mrb[5].mxu1 }
 0x3f5   : > { %v7052_v14 = vpop.f32.mrb[6].mxu1 }
 0x3f6   : > { %v3648_v28 = vpop.f32.mrb[7].mxu1 }
 0x3f9   : > { %v11086_v19 = vpop.f32.mrb[8].mxu1 }
 0x3fa   : > { %v11088_v20 = vpop.f32.mrb[9].mxu1 }
 0x3fd   : > { %v11090_v29 = vpop.f32.mrb[10].mxu1 }
 0x3fe   : > { %v11093_v59 = vpop.f32.mrb[11].mxu1 }
 0x401   : > { %v11096_v40 = vpop.f32.mrb[12].mxu1 }
 0x402   : > { %v11098_v46 = vpop.f32.mrb[13].mxu1 }
 0x405   : > { %v11100_v21 = vpop.f32.mrb[14].mxu1 }
 0x406   : > { %v11102_v55 = vpop.f32.mrb[15].mxu1 }
 0x409   : > { %v11104_v34 = vpop.f32.mrb[16].mxu1 }
 0x40a   : > { %v11106_v50 = vpop.f32.mrb[17].mxu1 }
 0x40d   : > { %v11108_v4 = vpop.f32.mrb[18].mxu1 }
 0x40e   : > { %v11110_v51 = vpop.f32.mrb[19].mxu1 }
 0x411   : > { %v11112_v53 = vpop.f32.mrb[20].mxu1 }
 0x412   : > { %v11114_v22 = vpop.f32.mrb[21].mxu1 }
 0x415   : > { %v11116_v31 = vpop.f32.mrb[22].mxu1 }
 0x416   : > { %v11118_v7 = vpop.f32.mrb[23].mxu1 }
 0x419   : > { %v11120_v60 = vpop.f32.mrb[24].mxu1 }
 0x41a   : > { %v11122_v56 = vpop.f32.mrb[25].mxu1 }
 0x41d   : > { %v11124_v39 = vpop.f32.mrb[26].mxu1 }
 0x41e   : > { %v11126_v38 = vpop.f32.mrb[27].mxu1 }
 0x421   : > { %v11128_v5 = vpop.f32.mrb[28].mxu1 }
 0x422   : > { %v11130_v24 = vpop.f32.mrb[29].mxu1 }
 0x433   : > { %v7308_v0 = vpop.f32.mrb[0].mxu0 }
 0x434   : > { %v7533_v49 = vadd.f32 %v7308_v0, %v6990_v41  ;;  %v5468_v43 = vpop.f32.mrb[1].mxu0 }
 0x435   : > { %v7534_v13 = vadd.f32 %v5468_v43, %v3248_v26 }
 0x436   : > { %v5655_v37 = vmul.f32 %v7533_v49, %v11132_v23 }
 0x437   : > { %v5654_v54 = vmul.f32 %v7534_v13, %v11132_v23  ;;  %v7311_v42 = vpop.f32.mrb[2].mxu0 }
 0x438   : > { %v7535_v36 = vadd.f32 %v7311_v42, %v6993_v15  ;;  %v5478_v33 = vpop.f32.mrb[3].mxu0  ;;  %v5692_v35 = vadd.f32 %v11134_v17, %v5655_v37 }
 0x439   : > { %v7536_v18 = vadd.f32 %v5478_v33, %v3258_v45  ;;  %v5691_v12 = vadd.f32 %v11134_v17, %v5654_v54 }
 0x43a   : > { %v5657_v6 = vmul.f32 %v7535_v36, %v11132_v23  ;;  %v5722_v61 = vmax.f32 %v5692_v35, 0.0 }
 0x43b   : > { %v5656_v11 = vmul.f32 %v7536_v18, %v11132_v23  ;;  %v7314_v30 = vpop.f32.mrb[4].mxu0  ;;  %v5721_v57 = vmax.f32 %v5691_v12, 0.0 }
 0x43c   : > { %v5694_v62 = vadd.f32 %v11134_v17, %v5657_v6  ;;  %v7537_v48 = vadd.f32 %v7314_v30, %v7049_v52  ;;  %v5488_v58 = vpop.f32.mrb[5].mxu0 }
 0x43d   : > { %v7538_v63 = vadd.f32 %v5488_v58, %v3638_v10  ;;  %v5693_v1 = vadd.f32 %v11134_v17, %v5656_v11 }
 0x43e   : > { %v5724_v27 = vmax.f32 %v5694_v62, 0.0  ;;  %v5659_v32 = vmul.f32 %v7537_v48, %v11132_v23 }
 0x43f   : > { %v5658_v44 = vmul.f32 %v7538_v63, %v11132_v23  ;;  %v7317_v25 = vpop.f32.mrb[6].mxu0  ;;  %v5723_v45 = vmax.f32 %v5693_v1, 0.0 }
 0x440   : > { %v5751_v47 = vmax.f32 %v5721_v57, %v5724_v27  ;;  %v5696_v9 = vadd.f32 %v11134_v17, %v5659_v32  ;;  %v7539_v3 = vadd.f32 %v7317_v25, %v7052_v14  ;;  %v5498_v41 = vpop.f32.mrb[7].mxu0 }
 0x441   : > { %v5695_v26 = vadd.f32 %v11134_v17, %v5658_v44  ;;  %v7540_v15 = vadd.f32 %v5498_v41, %v3648_v28 }
 0x442   : > { %v5726_v52 = vmax.f32 %v5696_v9, 0.0  ;;  %v5661_v10 = vmul.f32 %v7539_v3, %v11132_v23 }
 0x443   : > { %v5725_v16 = vmax.f32 %v5695_v26, 0.0  ;;  %v5660_v0 = vmul.f32 %v7540_v15, %v11132_v23  ;;  %v7320_v49 = vpop.f32.mrb[8].mxu0 }
 0x444   : > { %v5753_v43 = vmax.f32 %v5723_v45, %v5726_v52  ;;  %v5698_v13 = vadd.f32 %v11134_v17, %v5661_v10  ;;  %v7541_v54 = vadd.f32 %v7320_v49, %v11086_v19  ;;  %v5508_v42 = vpop.f32.mrb[9].mxu0 }
 0x445   : > { %v5752_v14 = vmax.f32 %v5722_v61, %v5725_v16  ;;  %v5697_v36 = vadd.f32 %v11134_v17, %v5660_v0  ;;  %v7542_v28 = vadd.f32 %v5508_v42, %v11088_v20 }
 0x446   : > { %v5728_v33 = vmax.f32 %v5698_v13, 0.0  ;;  %v5663_v18 = vmul.f32 %v7541_v54, %v11132_v23 }
 0x447   : > { %v5727_v12 = vmax.f32 %v5697_v36, 0.0  ;;  %v5662_v6 = vmul.f32 %v7542_v28, %v11132_v23  ;;  %v7323_v37 = vpop.f32.mrb[10].mxu0  ;;  %v11156_v11 = vpack.c.bf16 %v5752_v14, %v5751_v47 }
 0x448   : > { %v5755_v30 = vmax.f32 %v5725_v16, %v5728_v33  ;;  %v5700_v62 = vadd.f32 %v11134_v17, %v5663_v18  ;;  %v7543_v19 = vadd.f32 %v7323_v37, %v11090_v29  ;;  %v5518_v48 = vpop.f32.mrb[11].mxu0 }
 0x449   : > { %v5754_v58 = vmax.f32 %v5724_v27, %v5727_v12  ;;  %v5699_v63 = vadd.f32 %v11134_v17, %v5662_v6  ;;  %v7544_v20 = vadd.f32 %v5518_v48, %v11093_v59  ;;  %7425 = vmatpush1.bf16.msra.mxu1 %v11156_v11  ;;  %7464 = vmatpush1.bf16.msra.mxu0 %v11156_v11 }
 0x44a   : > { %v5730_v57 = vmax.f32 %v5700_v62, 0.0  ;;  %v5665_v1 = vmul.f32 %v7543_v19, %v11132_v23  ;;  %7426 = vmatprep.subr.bf16.mxu1 %v8220_v2  ;;  %7465 = vmatprep.subr.bf16.mxu0 %v8220_v2 }
 0x44b   : > { %v5729_v32 = vmax.f32 %v5699_v63, 0.0  ;;  %v5664_v29 = vmul.f32 %v7544_v20, %v11132_v23  ;;  %v7326_v35 = vpop.f32.mrb[12].mxu0  ;;  %v11168_v27 = vpack.c.bf16 %v5754_v58, %v5753_v43 }
 0x44c   : > { %v5757_v44 = vmax.f32 %v5727_v12, %v5730_v57  ;;  %v5702_v59 = vadd.f32 %v11134_v17, %v5665_v1  ;;  %v7545_v25 = vadd.f32 %v7326_v35, %v11096_v40  ;;  %v5528_v47 = vpop.f32.mrb[13].mxu0 }
 0x44d   : > { %v5756_v9 = vmax.f32 %v5726_v52, %v5729_v32  ;;  %v5701_v3 = vadd.f32 %v11134_v17, %v5664_v29  ;;  %v7546_v41 = vadd.f32 %v5528_v47, %v11098_v46  ;;  %7428 = vmatpush1.bf16.msra.mxu1 %v11168_v27  ;;  %7467 = vmatpush1.bf16.msra.mxu0 %v11168_v27 }
 0x44e   : > { %v5732_v26 = vmax.f32 %v5702_v59, 0.0  ;;  %v5667_v15 = vmul.f32 %v7545_v25, %v11132_v23  ;;  %7429 = vmatprep.subr.bf16.mxu1 %v8220_v2  ;;  %7468 = vmatprep.subr.bf16.mxu0 %v8220_v2 }
 0x44f   : > { %v5731_v45 = vmax.f32 %v5701_v3, 0.0  ;;  %v5666_v40 = vmul.f32 %v7546_v41, %v11132_v23  ;;  %v7329_v10 = vpop.f32.mrb[14].mxu0  ;;  %v11180_v52 = vpack.c.bf16 %v5756_v9, %v5755_v30 }
 0x450   : > { %v5759_v61 = vmax.f32 %v5729_v32, %v5732_v26  ;;  %v5704_v46 = vadd.f32 %v11134_v17, %v5667_v15  ;;  %v7547_v16 = vadd.f32 %v7329_v10, %v11100_v21  ;;  %v5538_v0 = vpop.f32.mrb[15].mxu0 }
 0x451   : > { %v5758_v49 = vmax.f32 %v5728_v33, %v5731_v45  ;;  %v5703_v43 = vadd.f32 %v11134_v17, %v5666_v40  ;;  %v7548_v13 = vadd.f32 %v5538_v0, %v11102_v55  ;;  %7431 = vmatpush1.bf16.msra.mxu1 %v11180_v52  ;;  %7470 = vmatpush1.bf16.msra.mxu0 %v11180_v52 }
 0x452   : > { %v5734_v54 = vmax.f32 %v5704_v46, 0.0  ;;  %v5669_v42 = vmul.f32 %v7547_v16, %v11132_v23  ;;  %7432 = vmatprep.subr.bf16.mxu1 %v8220_v2  ;;  %7471 = vmatprep.subr.bf16.mxu0 %v8220_v2 }
 0x453   : > { %v5733_v14 = vmax.f32 %v5703_v43, 0.0  ;;  %v5668_v21 = vmul.f32 %v7548_v13, %v11132_v23  ;;  %v7332_v36 = vpop.f32.mrb[16].mxu0  ;;  %v11192_v28 = vpack.c.bf16 %v5758_v49, %v5757_v44 }
 0x454   : > { %v5761_v33 = vmax.f32 %v5731_v45, %v5734_v54  ;;  %v5706_v55 = vadd.f32 %v11134_v17, %v5669_v42  ;;  %v7549_v18 = vadd.f32 %v7332_v36, %v11104_v34  ;;  %v5548_v12 = vpop.f32.mrb[17].mxu0 }
 0x455   : > { %v5760_v6 = vmax.f32 %v5730_v57, %v5733_v14  ;;  %v5705_v37 = vadd.f32 %v11134_v17, %v5668_v21  ;;  %v7550_v30 = vadd.f32 %v5548_v12, %v11106_v50  ;;  %7434 = vmatpush1.bf16.msra.mxu1 %v11192_v28  ;;  %7473 = vmatpush1.bf16.msra.mxu0 %v11192_v28 }
 0x456   : > { %v5736_v62 = vmax.f32 %v5706_v55, 0.0  ;;  %v5671_v19 = vmul.f32 %v7549_v18, %v11132_v23  ;;  %7435 = vmatprep.subr.bf16.mxu1 %v8220_v2  ;;  %7474 = vmatprep.subr.bf16.mxu0 %v8220_v2 }
 0x457   : > { %v5735_v48 = vmax.f32 %v5705_v37, 0.0  ;;  %v5670_v34 = vmul.f32 %v7550_v30, %v11132_v23  ;;  %v7335_v58 = vpop.f32.mrb[18].mxu0  ;;  %v11204_v63 = vpack.c.bf16 %v5760_v6, %v5759_v61 }
 0x458   : > { %v5763_v20 = vmax.f32 %v5733_v14, %v5736_v62  ;;  %v5708_v50 = vadd.f32 %v11134_v17, %v5671_v19  ;;  %v7551_v57 = vadd.f32 %v7335_v58, %v11108_v4  ;;  %v5558_v1 = vpop.f32.mrb[19].mxu0 }
 0x459   : > { %v5762_v32 = vmax.f32 %v5732_v26, %v5735_v48  ;;  %v5707_v29 = vadd.f32 %v11134_v17, %v5670_v34  ;;  %v7552_v35 = vadd.f32 %v5558_v1, %v11110_v51  ;;  %7437 = vmatpush1.bf16.msra.mxu1 %v11204_v63  ;;  %7476 = vmatpush1.bf16.msra.mxu0 %v11204_v63 }
 0x45a   : > { %v5738_v44 = vmax.f32 %v5708_v50, 0.0  ;;  %v5673_v59 = vmul.f32 %v7551_v57, %v11132_v23  ;;  %7438 = vmatprep.subr.bf16.mxu1 %v8220_v2  ;;  %7477 = vmatprep.subr.bf16.mxu0 %v8220_v2 }
 0x45b   : > { %v5737_v25 = vmax.f32 %v5707_v29, 0.0  ;;  %v5672_v4 = vmul.f32 %v7552_v35, %v11132_v23  ;;  %v7338_v47 = vpop.f32.mrb[20].mxu0  ;;  %v11216_v9 = vpack.c.bf16 %v5762_v32, %v5761_v33 }
 0x45c   : > { %v5765_v3 = vmax.f32 %v5735_v48, %v5738_v44  ;;  %v5710_v51 = vadd.f32 %v11134_v17, %v5673_v59  ;;  %v7553_v41 = vadd.f32 %v7338_v47, %v11112_v53  ;;  %v5568_v26 = vpop.f32.mrb[21].mxu0 }
 0x45d   : > { %v5764_v15 = vmax.f32 %v5734_v54, %v5737_v25  ;;  %v5709_v45 = vadd.f32 %v11134_v17, %v5672_v4  ;;  %v7554_v40 = vadd.f32 %v5568_v26, %v11114_v22  ;;  %7440 = vmatpush1.bf16.msra.mxu1 %v11216_v9  ;;  %7479 = vmatpush1.bf16.msra.mxu0 %v11216_v9 }
 0x45e   : > { %v5740_v10 = vmax.f32 %v5710_v51, 0.0  ;;  %v5675_v61 = vmul.f32 %v7553_v41, %v11132_v23  ;;  %7441 = vmatprep.subr.bf16.mxu1 %v8220_v2  ;;  %7480 = vmatprep.subr.bf16.mxu0 %v8220_v2 }
 0x45f   : > { %v5739_v46 = vmax.f32 %v5709_v45, 0.0  ;;  %v5674_v53 = vmul.f32 %v7554_v40, %v11132_v23  ;;  %v7341_v16 = vpop.f32.mrb[22].mxu0  ;;  %v11228_v0 = vpack.c.bf16 %v5764_v15, %v5763_v20 }
 0x460   : > { %v5767_v49 = vmax.f32 %v5737_v25, %v5740_v10  ;;  %v5712_v22 = vadd.f32 %v11134_v17, %v5675_v61  ;;  %v7555_v43 = vadd.f32 %v7341_v16, %v11116_v31  ;;  %v5578_v13 = vpop.f32.mrb[23].mxu0 }
 0x461   : > { %v5766_v54 = vmax.f32 %v5736_v62, %v5739_v46  ;;  %v5711_v42 = vadd.f32 %v11134_v17, %v5674_v53  ;;  %v7556_v14 = vadd.f32 %v5578_v13, %v11118_v7  ;;  %7443 = vmatpush1.bf16.msra.mxu1 %v11228_v0  ;;  %7482 = vmatpush1.bf16.msra.mxu0 %v11228_v0 }
 0x462   : > { %v5742_v21 = vmax.f32 %v5712_v22, 0.0  ;;  %v5677_v36 = vmul.f32 %v7555_v43, %v11132_v23  ;;  %7444 = vmatprep.subr.bf16.mxu1 %v8220_v2  ;;  %7483 = vmatprep.subr.bf16.mxu0 %v8220_v2 }
 0x463   : > { %v5741_v33 = vmax.f32 %v5711_v42, 0.0  ;;  %v5676_v31 = vmul.f32 %v7556_v14, %v11132_v23  ;;  %v7344_v55 = vpop.f32.mrb[24].mxu0  ;;  %v11240_v18 = vpack.c.bf16 %v5766_v54, %v5765_v3  ;;  %v5778_v14 = vld [vmem:[#allocation13] sm:$0xff] }
 0x464   : > { %v5769_v12 = vmax.f32 %v5739_v46, %v5742_v21  ;;  %v5714_v7 = vadd.f32 %v11134_v17, %v5677_v36  ;;  %v7557_v6 = vadd.f32 %v7344_v55, %v11120_v60  ;;  %v5588_v37 = vpop.f32.mrb[25].mxu0  ;;  %v5781_v36 = vld [vmem:[#allocation13 + $0x18] sm:$0xff]  ;;  %v5782_v55 = vld [vmem:[#allocation13 + $0x20] sm:$0xff] }
 0x465   : > { %v5768_v30 = vmax.f32 %v5738_v44, %v5741_v33  ;;  %v5713_v62 = vadd.f32 %v11134_v17, %v5676_v31  ;;  %v7558_v19 = vadd.f32 %v5588_v37, %v11122_v56  ;;  %7446 = vmatpush1.bf16.msra.mxu1 %v11240_v18  ;;  %7485 = vmatpush1.bf16.msra.mxu0 %v11240_v18  ;;  %v5783_v31 = vld [vmem:[#allocation13 + $0x28] sm:$0xff] }
 0x466   : > { %v5744_v48 = vmax.f32 %v5714_v7, 0.0  ;;  %v5679_v34 = vmul.f32 %v7557_v6, %v11132_v23  ;;  %7447 = vmatprep.subr.bf16.mxu1 %v8220_v2  ;;  %7486 = vmatprep.subr.bf16.mxu0 %v8220_v2  ;;  %v5787_v7 = vld [vmem:[#allocation13 + $0x48] sm:$0xff]  ;;  %v5789_v6 = vld [vmem:[#allocation13 + $0x58] sm:$0xff] }
 0x467   : > { %v5743_v58 = vmax.f32 %v5713_v62, 0.0  ;;  %v5678_v60 = vmul.f32 %v7558_v19, %v11132_v23  ;;  %v7347_v20 = vpop.f32.mrb[26].mxu0  ;;  %v11252_v50 = vpack.c.bf16 %v5768_v30, %v5767_v49  ;;  %v5791_v37 = vld [vmem:[#allocation13 + $0x68] sm:$0x3]  ;;  %v5924_v62 = vld [vmem:[#allocation14 + $0x30] sm:$0xff] }
 0x468   : > { %v5771_v57 = vmax.f32 %v5741_v33, %v5744_v48  ;;  %v5716_v56 = vadd.f32 %v11134_v17, %v5679_v34  ;;  %v7559_v1 = vadd.f32 %v7347_v20, %v11124_v39  ;;  %v5598_v32 = vpop.f32.mrb[27].mxu0  ;;  %v5780_v33 = vld [vmem:[#allocation13 + $0x10] sm:$0xff]  ;;  %v5921_v30 = vld [vmem:[#allocation14 + $0x18] sm:$0xff]  ;;  %v5931_v34 = vld [vmem:[#allocation14 + $0x68] sm:$0x3] }
 0x469   : > { %v5770_v29 = vmax.f32 %v5740_v10, %v5743_v58  ;;  %v5715_v35 = vadd.f32 %v11134_v17, %v5678_v60  ;;  %v7560_v44 = vadd.f32 %v5598_v32, %v11126_v38  ;;  %7449 = vmatpush1.bf16.msra.mxu1 %v11252_v50  ;;  %7488 = vmatpush1.bf16.msra.mxu0 %v11252_v50  ;;  %v5929_v19 = vld [vmem:[#allocation14 + $0x58] sm:$0xff] }
 0x46a   : > { %v5746_v59 = vmax.f32 %v5716_v56, 0.0  ;;  %v5681_v25 = vmul.f32 %v7559_v1, %v11132_v23  ;;  %7450 = vmatprep.subr.bf16.mxu1 %v8220_v2  ;;  %7489 = vmatprep.subr.bf16.mxu0 %v8220_v2 }
 0x46b   : > { %v5745_v4 = vmax.f32 %v5715_v35, 0.0  ;;  %v5680_v39 = vmul.f32 %v7560_v44, %v11132_v23  ;;  %v7350_v47 = vpop.f32.mrb[28].mxu0  ;;  %v11264_v3 = vpack.c.bf16 %v5770_v29, %v5769_v12  ;;  %v5785_v12 = vld [vmem:[#allocation13 + $0x38] sm:$0xff] }
 0x46c   : > { %v5773_v51 = vmax.f32 %v5743_v58, %v5746_v59  ;;  %v5718_v38 = vadd.f32 %v11134_v17, %v5681_v25  ;;  %v7561_v41 = vadd.f32 %v7350_v47, %v11128_v5  ;;  %v5608_v26 = vpop.f32.mrb[29].mxu0  ;;  %v5930_v58 = vld [vmem:[#allocation14 + $0x60] sm:$0x3] }
 0x46d   : > { %v5772_v15 = vmax.f32 %v5742_v21, %v5745_v4  ;;  %v5717_v45 = vadd.f32 %v11134_v17, %v5680_v39  ;;  %v7562_v40 = vadd.f32 %v5608_v26, %v11130_v24  ;;  %7452 = vmatpush1.bf16.msra.mxu1 %v11264_v3  ;;  %7491 = vmatpush1.bf16.msra.mxu0 %v11264_v3  ;;  %v5918_v21 = vld [vmem:[#allocation14] sm:$0xff] }
 0x46e   : > { %v5748_v10 = vmax.f32 %v5718_v38, 0.0  ;;  %v5683_v61 = vmul.f32 %v7561_v41, %v11132_v23  ;;  %7453 = vmatprep.subr.bf16.mxu1 %v8220_v2  ;;  %7492 = vmatprep.subr.bf16.mxu0 %v8220_v2 }
 0x46f   : > { %v5747_v46 = vmax.f32 %v5717_v45, 0.0  ;;  %v5682_v5 = vmul.f32 %v7562_v40, %v11132_v23  ;;  %v11276_v53 = vpack.c.bf16 %v5772_v15, %v5771_v57 }
 0x470   : > { %v5775_v16 = vmax.f32 %v5745_v4, %v5748_v10  ;;  %v5720_v49 = vadd.f32 %v11134_v17, %v5683_v61 }
 0x471   : > { %v5774_v24 = vmax.f32 %v5744_v48, %v5747_v46  ;;  %v5719_v22 = vadd.f32 %v11134_v17, %v5682_v5  ;;  %7455 = vmatpush1.bf16.msra.mxu1 %v11276_v53  ;;  %7494 = vmatpush1.bf16.msra.mxu0 %v11276_v53  ;;  %v5928_v48 = vld [vmem:[#allocation14 + $0x50] sm:$0xff] }
 0x472   : > { %v5750_v43 = vmax.f32 %v5720_v49, 0.0  ;;  %7456 = vmatprep.subr.bf16.mxu1 %v8220_v2  ;;  %7495 = vmatprep.subr.bf16.mxu0 %v8220_v2 }
 0x473   : > { %v5749_v13 = vmax.f32 %v5719_v22, 0.0  ;;  %v11284_v54 = vpack.c.bf16 %v5774_v24, %v5773_v51 }
 0x474   : > { %v11286_v23 = vmax.f32 %v5747_v46, %v5750_v43 }
 0x475   : > { %v5776_v42 = vmax.f32 %v5746_v59, %v5749_v13  ;;  %7458 = vmatpush1.bf16.msra.mxu1 %v11284_v54  ;;  %7497 = vmatpush1.bf16.msra.mxu0 %v11284_v54 }
 0x476   : > { %7459 = vmatprep.subr.bf16.mxu1 %v8220_v2  ;;  %7498 = vmatprep.subr.bf16.mxu0 %v8220_v2 }
 0x477   : > { %v7460_v17 = vpack.c.bf16 %v5776_v42, %v5775_v16 }
 0x479   : > { %7461 = vmatpush1.bf16.msra.mxu1 %v7460_v17  ;;  %7500 = vmatpush1.bf16.msra.mxu0 %v7460_v17 }
 0x47a   : > { %5870 = vmatprep.subr.mxu1 %v11823_v8  ;;  %6005 = vmatprep.subr.mxu0 %v11823_v8 }
 0x47d   : > { %6550 = vmatpush1.msk.msra.mxu1 %vm5814_vm7, %v11286_v23  ;;  %6558 = vmatpush1.msk.msra.mxu0 %vm5814_vm7, %v11286_v23 }
 0x47e   : > { %5883 = vmatmul.mubr.f32.vlgmr.msra.gmra.mrb[30].mxu1 %v5778_v14  ;;  %7505 = vmatprep.subr.bf16.mxu1 %v8220_v2 }
 0x47f   : > { %7519 = vmatpush1.bf16.msra.mxu1 %v11156_v11  ;;  %6018 = vmatmul.mubr.f32.vlgmr.msra.gmra.mrb[30].mxu0 %v5918_v21  ;;  %v5784_v11 = vld [vmem:[#allocation13 + $0x30] sm:$0xff] }
 0x480   : > { %7506 = vmatprep.subr.bf16.mxu1 %v8220_v2  ;;  %6552 = vmatprep.mubr.msk.f32.mxu1 %vm5792_vm6, %v5781_v36 }
 0x482   : > { %5888 = vmatmul.mubr.f32.gmra.mrb[32].mxu1 %v5780_v33 }
 0x483   : > { %7520 = vmatpush1.bf16.msra.mxu1 %v11168_v27  ;;  %6553 = vmatprep.mubr.msk.f32.mxu1 %vm5792_vm6, %v5783_v31  ;;  %v5786_v27 = vld [vmem:[#allocation13 + $0x40] sm:$0xff] }
 0x484   : > { %7507 = vmatprep.subr.bf16.mxu1 %v8220_v2 }
 0x486   : > { %5893 = vmatmul.mubr.f32.gmra.mrb[34].mxu1 %v5782_v55 }
 0x487   : > { %7521 = vmatpush1.bf16.msra.mxu1 %v11180_v52  ;;  %6554 = vmatprep.mubr.msk.f32.mxu1 %vm5792_vm6, %v5785_v12  ;;  %v5788_v52 = vld [vmem:[#allocation13 + $0x50] sm:$0xff] }
 0x488   : > { %7508 = vmatprep.subr.bf16.mxu1 %v8220_v2 }
 0x48a   : > { %5898 = vmatmul.mubr.f32.gmra.mrb[36].mxu1 %v5784_v11 }
 0x48b   : > { %7522 = vmatpush1.bf16.msra.mxu1 %v11192_v28  ;;  %6555 = vmatprep.mubr.msk.f32.mxu1 %vm5792_vm6, %v5787_v7  ;;  %v5790_v28 = vld [vmem:[#allocation13 + $0x60] sm:$0x3] }
 0x48c   : > { %7509 = vmatprep.subr.bf16.mxu1 %v8220_v2 }
 0x48e   : > { %5903 = vmatmul.mubr.f32.gmra.mrb[38].mxu1 %v5786_v27 }
 0x48f   : > { %7523 = vmatpush1.bf16.msra.mxu1 %v11204_v63  ;;  %6556 = vmatprep.mubr.msk.f32.mxu1 %vm5792_vm6, %v5789_v6  ;;  %v5920_v63 = vld [vmem:[#allocation14 + $0x10] sm:$0xff] }
 0x490   : > { %7510 = vmatprep.subr.bf16.mxu1 %v8220_v2 }
 0x492   : > { %5908 = vmatmul.mubr.f32.gmra.mrb[40].mxu1 %v5788_v52 }
 0x493   : > { %7524 = vmatpush1.bf16.msra.mxu1 %v11216_v9  ;;  %6557 = vmatprep.mubr.msk.f32.mxu1 %vm5792_vm6, %v5791_v37  ;;  %v5923_v9 = vld [vmem:[#allocation14 + $0x28] sm:$0xff] }
 0x494   : > { %7511 = vmatprep.subr.bf16.mxu1 %v8220_v2 }
 0x496   : > { %5913 = vmatmul.mubr.f32.gmra.mrb[42].mxu1 %v5790_v28 }
 0x497   : > { %7525 = vmatpush1.bf16.msra.mxu1 %v11228_v0  ;;  %6560 = vmatprep.mubr.msk.f32.mxu1 %vm5792_vm6, %v5921_v30  ;;  %v5922_v0 = vld [vmem:[#allocation14 + $0x20] sm:$0xff] }
 0x498   : > { %7512 = vmatprep.subr.bf16.mxu1 %v8220_v2 }
 0x49b   : > { %7526 = vmatpush1.bf16.msra.mxu1 %v11240_v18  ;;  %v5925_v18 = vld [vmem:[#allocation14 + $0x38] sm:$0xff] }
 0x49c   : > { %7513 = vmatprep.subr.bf16.mxu1 %v8220_v2 }
 0x49f   : > { %7527 = vmatpush1.bf16.msra.mxu1 %v11252_v50 }
 0x4a0   : > { %7514 = vmatprep.subr.bf16.mxu1 %v8220_v2 }
 0x4a3   : > { %7528 = vmatpush1.bf16.msra.mxu1 %v11264_v3 }
 0x4a4   : > { %7515 = vmatprep.subr.bf16.mxu1 %v8220_v2 }
 0x4a7   : > { %7529 = vmatpush1.bf16.msra.mxu1 %v11276_v53 }
 0x4a8   : > { %7516 = vmatprep.subr.bf16.mxu1 %v8220_v2 }
 0x4ab   : > { %7530 = vmatpush1.bf16.msra.mxu1 %v11284_v54 }
 0x4ac   : > { %7517 = vmatprep.subr.bf16.mxu1 %v8220_v2  ;;  %v5927_v2 = vld [vmem:[#allocation14 + $0x48] sm:$0xff] }
 0x4af   : > { %7531 = vmatpush1.bf16.msra.mxu1 %v7460_v17 }
 0x4b0   : > { %7518 = vmatprep.subr.mxu1 %v11823_v8  ;;  %v5926_v8 = vld [vmem:[#allocation14 + $0x40] sm:$0xff] }
 0x4b3   : > { %7532 = vmatpush1.msk.msra.mxu1 %vm5814_vm7, %v11286_v23 }
 0x4b4   : > { %6023 = vmatmul.mubr.f32.vlgmr.msra.gmra.mrb[44].mxu1 %v5920_v63 }
 0x4b5   : > { %6561 = vmatprep.mubr.msk.f32.mxu1 %vm5792_vm6, %v5923_v9 }
 0x4b8   : > { %6028 = vmatmul.mubr.f32.gmra.mrb[46].mxu1 %v5922_v0 }
 0x4b9   : > { %6562 = vmatprep.mubr.msk.f32.mxu1 %vm5792_vm6, %v5925_v18 }
 0x4bc   : > { %6033 = vmatmul.mubr.f32.gmra.mrb[48].mxu1 %v5924_v62 }
 0x4bd   : > { %6563 = vmatprep.mubr.msk.f32.mxu1 %vm5792_vm6, %v5927_v2 }
 0x4c0   : > { %6038 = vmatmul.mubr.f32.gmra.mrb[50].mxu1 %v5926_v8 }
 0x4c1   : > { %6564 = vmatprep.mubr.msk.f32.mxu1 %vm5792_vm6, %v5929_v19 }
 0x4c4   : > { %6043 = vmatmul.mubr.f32.gmra.mrb[52].mxu1 %v5928_v48 }
 0x4c5   : > { %6565 = vmatprep.mubr.msk.f32.mxu1 %vm5792_vm6, %v5931_v34 }
 0x4c8   : > { %6048 = vmatmul.mubr.f32.gmra.mrb[54].mxu1 %v5930_v58 }
 0x551   : > { %v5884_v60 = vpop.f32.mrb[30].mxu1 }
 0x552   : > { %v5886_v20 = vpop.f32.mrb[31].mxu1  ;;  %v6019_v50 = vpop.f32.mrb[30].mxu0 }
 0x553   : > { %v6053_v57 = vmax.f32 %v5884_v60, %v6019_v50  ;;  %v6021_v56 = vpop.f32.mrb[31].mxu0 }
 0x555   : > { %6061 = vst.msk [vmem:[%s11343_s21] sm:$0xff] %vm6060_vm8, %v6053_v57  ;;  %v5889_v1 = vpop.f32.mrb[32].mxu1 }
 0x556   : > { %v5891_v32 = vpop.f32.mrb[33].mxu1 }
 0x559   : > { %v5894_v29 = vpop.f32.mrb[34].mxu1 }
 0x55a   : > { %v5896_v35 = vpop.f32.mrb[35].mxu1 }
 0x55d   : > { %v5899_v44 = vpop.f32.mrb[36].mxu1 }
 0x55e   : > { %v5901_v59 = vpop.f32.mrb[37].mxu1 }
 0x561   : > { %v5904_v25 = vpop.f32.mrb[38].mxu1 }
 0x562   : > { %v5906_v4 = vpop.f32.mrb[39].mxu1 }
 0x565   : > { %v5909_v39 = vpop.f32.mrb[40].mxu1 }
 0x566   : > { %v5911_v47 = vpop.f32.mrb[41].mxu1 }
 0x569   : > { %v5914_v3 = vpop.f32.mrb[42].mxu1 }
 0x56a   : > { %v5916_v51 = vpop.f32.mrb[43].mxu1 }
 0x587   : > { %v6024_v38 = vpop.f32.mrb[44].mxu1 }
 0x588   : > { %v6054_v41 = vmax.f32 %v5889_v1, %v6024_v38  ;;  %v6026_v26 = vpop.f32.mrb[45].mxu1 }
 0x58a   : > { %6062 = vst.msk [vmem:[%s11343_s21 + $0x8] sm:$0xff] %vm6060_vm8, %v6054_v41 }
 0x58b   : > { %v6029_v15 = vpop.f32.mrb[46].mxu1 }
 0x58c   : > { %v6055_v45 = vmax.f32 %v5894_v29, %v6029_v15  ;;  %v6031_v40 = vpop.f32.mrb[47].mxu1 }
 0x58e   : > { %6063 = vst.msk [vmem:[%s11343_s21 + $0x10] sm:$0xff] %vm6060_vm8, %v6055_v45 }
 0x58f   : > { %v6034_v10 = vpop.f32.mrb[48].mxu1 }
 0x590   : > { %v6056_v61 = vmax.f32 %v5899_v44, %v6034_v10  ;;  %v6036_v46 = vpop.f32.mrb[49].mxu1 }
 0x592   : > { %6064 = vst.msk [vmem:[%s11343_s21 + $0x18] sm:$0xff] %vm6060_vm8, %v6056_v61 }
 0x593   : > { %v6039_v5 = vpop.f32.mrb[50].mxu1 }
 0x594   : > { %v6057_v53 = vmax.f32 %v5904_v25, %v6039_v5  ;;  %v6041_v16 = vpop.f32.mrb[51].mxu1 }
 0x596   : > { %6065 = vst.msk [vmem:[%s11343_s21 + $0x20] sm:$0xff] %vm6060_vm8, %v6057_v53 }
 0x597   : > { %v6044_v49 = vpop.f32.mrb[52].mxu1 }
 0x598   : > { %v6058_v24 = vmax.f32 %v5909_v39, %v6044_v49  ;;  %v6046_v22 = vpop.f32.mrb[53].mxu1 }
 0x59a   : > { %6066 = vst.msk [vmem:[%s11343_s21 + $0x28] sm:$0xff] %vm6060_vm8, %v6058_v24 }
 0x59b   : > { %v6049_v43 = vpop.f32.mrb[54].mxu1 }
 0x59c   : > { %v6059_v13 = vmax.f32 %v5914_v3, %v6049_v43  ;;  %v6051_v54 = vpop.f32.mrb[55].mxu1 }
 0x59e   : > { %6068 = vst.msk [vmem:[%s11343_s21 + $0x30] sm:$0x3] %vm6067_vm9, %v6059_v13 }
 0x59f PF: > { %s11831_s13 = sld [smem:[#allocation21_spill]]  ;;  %s11833_s14 = smov %s8200_s16 }
 0x5a0   : > { %s11835_s16 = smov %s11841_s20 }
 0x5a5   : > { %s25_s17 = sadd.s32 1, %s11831_s13   ;;  %s11832_s13 = smov %s8196_s15 }
 0x5a6   : > { %p22_p3 = scmp.ge.s32.totalorder %s25_s17, 10   ;;  %s11834_s15 = smov %s11837_s12 }
 0x5a8   :  { %24 = sbr.rel (!%p22_p3) target bundleno = 12 (0xc), region = 131 }
 0x5af   :  { %6098 = vsyncpa [#allocation4], 1 }
 0x5b0   :  { %6100 = vsyncpa [#allocation4 + $0x1], 1 }
 0x5b1   :  { %6101 = vsyncpa [#allocation6], 1 }
 0x5b2   :  { %6102 = vsyncpa [#allocation9], 1 }
 0x5b3   :  { %6103 = vsyncpa [#allocation12], 1 }
 0x5b4   :  { %6104 = vsyncpa [#allocation15], 1 }

</bundles_post_ra>
